<compile_context>
chip_gen: v5e
topology: v5e:2x2
jax: 0.10.0
libtpu: 0.0.40
codegen_flags: <defaults>
</compile_context>

<pallas_src>
import jax
import jax.numpy as jnp
from jax.experimental import pallas as pl
from jax.experimental.pallas import tpu as pltpu

PADF = 128  # all feature dims are zero-padded to one full lane width
_VMEM = pl.BlockSpec(memory_space=pltpu.MemorySpace.VMEM)

# bias row indices inside the stacked (8, PADF) bias slab
B_GCN1, B_GCN2, B_R1N, B_R1E, B_R2N, B_R2E, B_ATTN = range(7)
# square-weight slot indices inside the stacked (5, PADF, PADF) slab
W_GCN1, W_GCN2, W_R1E, W_R2E, W_CTX = range(5)
# wide (output-axis concatenated) weight slots inside the (3, PADF, 2*PADF) slab
W_R1N, W_R2N, W_ATTNQ = range(3)


# ----------------------------------------------------------------------------
# Fused Pallas kernel: se_aggr (2xGCN) + re_aggr1 + re_aggr2 + attention
# ----------------------------------------------------------------------------
def _fused_kernel(ag_ref, aw_ref, nh_ref, eh_ref, wh_ref, oh_ref, mask_ref,
                  wsq_ref, wwide_ref, b_ref,
                  out_ref, attn_ref):
    f32 = jnp.float32

    def mm(a, b):
        return jnp.dot(a, b, preferred_element_type=f32)

    def bias(i):
        return b_ref[i:i + 1, :]                                     # (1, PADF)

    # ---- se_aggr: 2-layer GCN on the word graph --------------------------
    # relu((A @ H) @ W + b) reordered as A @ (H @ W) (narrower contraction in
    # the unpadded problem: 100->32, 32->32).
    aw = aw_ref[...]
    wg = jnp.maximum(mm(aw, mm(wh_ref[...], wsq_ref[W_GCN1])) + bias(B_GCN1), 0.0)
    wg = jnp.maximum(mm(aw, mm(wg, wsq_ref[W_GCN2])) + bias(B_GCN2), 0.0)

    # ---- re_aggr1 (h_dim -> out_feat) -------------------------------------
    # one wide MXU pass produces both H@Wn and H@Ws (shared LHS).
    ag = ag_ref[...]
    nh = nh_ref[...]
    wide = mm(nh, wwide_ref[W_R1N])                                  # (Ng, 2*PADF)
    nh = jnp.maximum(mm(ag, wide[:, :PADF]) + wide[:, PADF:] + bias(B_R1N), 0.0)
    eh = jnp.maximum(mm(eh_ref[...], wsq_ref[W_R1E]) + bias(B_R1E), 0.0)

    # ---- re_aggr2 (out_feat -> h_dim) -------------------------------------
    wide = mm(nh, wwide_ref[W_R2N])
    nh = jnp.maximum(mm(ag, wide[:, :PADF]) + wide[:, PADF:] + bias(B_R2N), 0.0)
    eh = jnp.maximum(mm(eh, wsq_ref[W_R2E]) + bias(B_R2E), 0.0)

    # ---- Luong 'general' attention (masked) --------------------------------
    # H_mx[b,m,:] = onehot[b,m,:] @ wg (mask folded into onehot), therefore
    #   scores[b,m] = onehot[b,m,:] . (q[b] Wa . wg)
    #   ctx[b]      = (attn[b,:] @ onehot[b]) @ wg
    # so every h_dim-wide contraction is an MXU matmul; only tiny (B, M, Nw)
    # broadcast-mul/reduces stay on the VPU/XLU.
    q = jnp.concatenate([nh, eh], axis=0)                            # (B, PADF)
    qwide = mm(q, wwide_ref[W_ATTNQ])                                # (B, 2*PADF)
    qw = qwide[:, :PADF]                                             # q @ Wa
    qcq = qwide[:, PADF:]                                            # q @ Wc_q

    oh = oh_ref[...]                                                 # (B, M, Nw)
    mask = mask_ref[...]                                             # (B, M)
    s_all = jax.lax.dot_general(qw, wg, (((1,), (1,)), ((), ())),
                                preferred_element_type=f32)          # (B, Nw)
    scores = jnp.sum(oh * s_all[:, None, :], axis=-1)                # (B, M)
    # masked slots have all-zero onehot rows -> score exactly 0; the single
    # post-exp mask removes them from the softmax (empty rows -> attn = 0).
    mmax = jnp.max(scores, axis=-1, keepdims=True)
    e = jnp.exp(scores - mmax) * mask
    denom = jnp.sum(e, axis=-1, keepdims=True) + 1e-9
    attn = e * pl.reciprocal(denom, approx=True)                     # (B, M)

    w_word = jnp.sum(attn[:, :, None] * oh, axis=1)                  # (B, Nw)
    ctx = mm(w_word, wg)                                             # (B, PADF)
    out = jnp.tanh(mm(ctx, wsq_ref[W_CTX]) + qcq + bias(B_ATTN))

    out_ref[...] = out                                               # lane-dense
    # single lane-dense store of the attention weights: build the (B, 128)
    # slab in vregs (lane concat with zeros), write once.
    pad = jnp.zeros((attn.shape[0], PADF - attn.shape[1]), f32)
    attn_ref[...] = jnp.concatenate([attn, pad], axis=1)


def aggregator_fused(a_g, a_w, node_h0, edge_h0, wg_h0, onehot, mask,
                     wsq, wwide, biases):
    """Single fused pallas_call for the whole dense pipeline."""
    b = node_h0.shape[0] + edge_h0.shape[0]
    ng, nw, m = a_g.shape[0], a_w.shape[0], onehot.shape[1]

    # advisory cost estimate so XLA schedules the surrounding glue around us
    flops = 2 * (2 * nw * PADF * PADF + 2 * nw * nw * PADF            # GCN
                 + 2 * ng * PADF * 2 * PADF + 2 * ng * ng * PADF       # re node
                 + 2 * ng * PADF * PADF                                # re edge
                 + b * PADF * 2 * PADF                                 # q @ [Wa|Wcq]
                 + b * PADF * nw + b * nw * PADF + b * PADF * PADF)    # attn
    transcendentals = b * PADF + b * m + b                             # tanh, exp, rcp
    ins = (a_g, a_w, node_h0, edge_h0, wg_h0, onehot, mask, wsq, wwide, biases)
    bytes_accessed = sum(int(x.size) * 4 for x in ins) + 2 * b * PADF * 4

    out, attn = pl.pallas_call(
        _fused_kernel,
        out_shape=(jax.ShapeDtypeStruct((b, PADF), jnp.float32),
                   jax.ShapeDtypeStruct((b, PADF), jnp.float32)),
        in_specs=[_VMEM] * len(ins),
        out_specs=(_VMEM, _VMEM),
        cost_estimate=pl.CostEstimate(flops=int(flops),
                                      transcendentals=int(transcendentals),
                                      bytes_accessed=int(bytes_accessed)),
    )(*ins)
    return out, attn


# ----------------------------------------------------------------------------
# host-side padding / packing helpers (done once at the boundary)
# ----------------------------------------------------------------------------
def pad_cols(x, width=PADF):
    return jnp.pad(x, ((0, 0), (0, width - x.shape[1])))


def pad_mat(w, rows=PADF, cols=PADF):
    return jnp.pad(w, ((0, rows - w.shape[0]), (0, cols - w.shape[1])))


def pad_row(bvec, cols=PADF):
    bvec = bvec.reshape(1, -1)
    return jnp.pad(bvec, ((0, 0), (0, cols - bvec.shape[1])))


def pack_wide(w_a, w_b):
    """Output-axis concatenation so one MXU pass yields both H@Wa and H@Wb."""
    return jnp.concatenate([pad_mat(w_a), pad_mat(w_b)], axis=1)     # (128, 256)


# ----------------------------------------------------------------------------
# aggregator_actor forward (synthetic graph data; kernel above does the math)
# ----------------------------------------------------------------------------
if __name__ == "__main__":
    key = jax.random.PRNGKey(0)
    keys = iter(jax.random.split(key, 32))

    def rnd(shape, scale=0.1):
        return scale * jax.random.normal(next(keys), shape, dtype=jnp.float32)

    h_dim = 32
    out_feat = h_dim // 2          # 16
    seq_len = 8
    num_nodes_total = 12           # aggregator_actor.num_nodes
    num_rels = 6
    vocab = 30
    word_feat = 100                # se_aggr = GCN(100, h_dim, h_dim, 2, relu, dropout)

    num_graphs = 4
    N_g, E_g = 16, 16              # nodes / edges of the batched event graph
    N_w = 24                       # nodes of the batched word graph
    max_query = 4

    # module "inputs": embedding tables
    ent_embeds = rnd((num_nodes_total, h_dim), 1.0)
    rel_embeds = rnd((num_rels, h_dim), 1.0)
    word_embeds = rnd((vocab, word_feat), 1.0)

    # synthetic graph structure (row-normalized dense adjacency with self loops)
    def norm_adj(k, n):
        a = (jax.random.uniform(k, (n, n)) < 0.25).astype(jnp.float32)
        a = a + jnp.eye(n, dtype=jnp.float32)
        return a / jnp.sum(a, axis=1, keepdims=True)

    A_g = norm_adj(next(keys), N_g)
    A_w = norm_adj(next(keys), N_w)
    node_ids = jax.random.randint(next(keys), (N_g,), 0, num_nodes_total)
    edge_types = jax.random.randint(next(keys), (E_g,), 0, num_rels)
    word_node_ids = jax.random.randint(next(keys), (N_w,), 0, vocab)

    # ---- deterministic parameters ----------------------------------------
    gcn_w1, gcn_b1 = rnd((word_feat, h_dim)), rnd((1, h_dim))
    gcn_w2, gcn_b2 = rnd((h_dim, h_dim)), rnd((1, h_dim))
    r1_wn, r1_ws, r1_bn = rnd((h_dim, out_feat)), rnd((h_dim, out_feat)), rnd((1, out_feat))
    r1_we, r1_be = rnd((h_dim, out_feat)), rnd((1, out_feat))
    r2_wn, r2_ws, r2_bn = rnd((out_feat, h_dim)), rnd((out_feat, h_dim)), rnd((1, h_dim))
    r2_we, r2_be = rnd((out_feat, h_dim)), rnd((1, h_dim))
    attn_wa = rnd((h_dim, h_dim))
    attn_wc_ctx = rnd((h_dim, h_dim))
    attn_wc_q = rnd((h_dim, h_dim))
    attn_bc = rnd((1, h_dim))

    # ---- host-side glue: embedding gathers --------------------------------
    node_h0 = ent_embeds[node_ids]            # batched_g.ndata['h']
    edge_h0 = rel_embeds[edge_types]          # batched_g.edata['e_h']
    wg_h0 = word_embeds[word_node_ids]        # batched_wg.ndata['h'] (pre-GCN)

    # Q_mx / H_mx construction is dict/DGL-driven in the reference; here it is
    # encoded as a masked one-hot selector so H_mx = onehot @ wg inside the
    # kernel (no in-kernel gather needed). Invalid query slots have all-zero
    # rows; the mask is also passed explicitly to the kernel.
    B = N_g + E_g
    h_idx = jax.random.randint(next(keys), (B, max_query), 0, N_w)
    n_valid = jax.random.randint(next(keys), (B,), 0, max_query + 1)
    mask = (jnp.arange(max_query)[None, :] < n_valid[:, None]).astype(jnp.float32)
    onehot = (h_idx[:, :, None] == jnp.arange(N_w)[None, None, :]).astype(jnp.float32)
    onehot = onehot * mask[:, :, None]

    # ---- pack all parameters into three stacked, 128-lane-padded slabs ----
    wsq = jnp.stack([pad_mat(gcn_w1), pad_mat(gcn_w2),
                     pad_mat(r1_we), pad_mat(r2_we),
                     pad_mat(attn_wc_ctx)])                      # (5, 128, 128)
    wwide = jnp.stack([pack_wide(r1_wn, r1_ws),
                       pack_wide(r2_wn, r2_ws),
                       pack_wide(attn_wa, attn_wc_q)])           # (3, 128, 256)
    bias_rows = [pad_row(v) for v in
                 (gcn_b1, gcn_b2, r1_bn, r1_be, r2_bn, r2_be, attn_bc)]
    bias_rows.append(jnp.zeros((1, PADF), jnp.float32))          # sublane pad
    biases = jnp.concatenate(bias_rows, axis=0)                  # (8, 128)

    # ---- single fused Pallas call ------------------------------------------
    out_pad, attn_pad = aggregator_fused(
        A_g, A_w, pad_cols(node_h0), pad_cols(edge_h0), pad_cols(wg_h0),
        onehot, mask, wsq, wwide, biases)

    output = out_pad[:, :h_dim]               # (B, h_dim)  attention output
    weights = attn_pad[:, :max_query]         # (B, max_query) attention weights

    node_out = output[:N_g]                   # batched_g.ndata['h']
    embeds_g_r = output[N_g:]                 # per-edge relation embeddings

    # node_emb_temporal[indices, i, :] = feature   (per-graph scatter, glue)
    nodes_per_graph = N_g // num_graphs
    graph_of_node = jnp.arange(N_g) // nodes_per_graph
    node_emb_temporal = jnp.zeros((num_nodes_total, seq_len, h_dim), jnp.float32)
    node_emb_temporal = node_emb_temporal.at[node_ids, graph_of_node, :].set(node_out)

    # embed_seq_tensor[i, :len_i, :] = embeds_split[i]   (glue)
    lens = [5, 4, 4, 3]
    len_non_zero = jnp.array(lens, dtype=jnp.int32)
    embed_seq_tensor = jnp.zeros((num_graphs, seq_len, h_dim), jnp.float32)
    off = 0
    for i, li in enumerate(lens):
        embed_seq_tensor = embed_seq_tensor.at[i, :li, :].set(embeds_g_r[off:off + li])
        off += li
    # dropout: identity (eval mode)

    idx = jnp.arange(num_graphs, dtype=jnp.int32)

    outs = (embed_seq_tensor, len_non_zero, idx, node_emb_temporal, weights)
    jax.block_until_ready(outs)
    print("KERNEL_OK")
</pallas_src>

<mosaic_0001>
module attributes {stable_mosaic.version = 11 : i64} {
  func.func @_fused_kernel(%arg0: memref<16x16xf32, #tpu.memory_space<vmem>>, %arg1: memref<24x24xf32, #tpu.memory_space<vmem>>, %arg2: memref<16x128xf32, #tpu.memory_space<vmem>>, %arg3: memref<16x128xf32, #tpu.memory_space<vmem>>, %arg4: memref<24x128xf32, #tpu.memory_space<vmem>>, %arg5: memref<32x4x24xf32, #tpu.memory_space<vmem>>, %arg6: memref<32x4xf32, #tpu.memory_space<vmem>>, %arg7: memref<5x128x128xf32, #tpu.memory_space<vmem>>, %arg8: memref<3x128x256xf32, #tpu.memory_space<vmem>>, %arg9: memref<8x128xf32, #tpu.memory_space<vmem>>, %arg10: memref<32x128xf32, #tpu.memory_space<vmem>>, %arg11: memref<32x128xf32, #tpu.memory_space<vmem>>) attributes {dimension_semantics = [], scalar_prefetch = 0 : i64, scratch_operands = 0 : i64, tpu.core_type = #tpu.core_type<tc>} {
    %c0 = arith.constant 0 : index
    %c0_0 = arith.constant 0 : index
    %0 = vector.load %arg1[%c0, %c0_0] : memref<24x24xf32, #tpu.memory_space<vmem>>, vector<24x24xf32>
    %c0_1 = arith.constant 0 : index
    %c0_2 = arith.constant 0 : index
    %1 = vector.load %arg4[%c0_1, %c0_2] : memref<24x128xf32, #tpu.memory_space<vmem>>, vector<24x128xf32>
    %c0_3 = arith.constant 0 : index
    %c0_4 = arith.constant 0 : index
    %c0_5 = arith.constant 0 : index
    %2 = vector.load %arg7[%c0_3, %c0_4, %c0_5] : memref<5x128x128xf32, #tpu.memory_space<vmem>>, vector<1x128x128xf32>
    %3 = vector.shape_cast %2 : vector<1x128x128xf32> to vector<128x128xf32>
    %cst = arith.constant dense<0.000000e+00> : vector<24x128xf32>
    %4 = tpu.matmul %1, %3, %cst {dimension_numbers = #tpu.dot_dimension_numbers<[1], [0], [0], [1], [0, 0, 1, 1], [], []>} : vector<24x128xf32>, vector<128x128xf32>, vector<24x128xf32> -> vector<24x128xf32>
    %cst_6 = arith.constant dense<0.000000e+00> : vector<24x128xf32>
    %5 = tpu.matmul %0, %4, %cst_6 {dimension_numbers = #tpu.dot_dimension_numbers<[1], [0], [0], [1], [0, 0, 1, 1], [], []>} : vector<24x24xf32>, vector<24x128xf32>, vector<24x128xf32> -> vector<24x128xf32>
    %c0_7 = arith.constant 0 : index
    %c0_8 = arith.constant 0 : index
    %6 = vector.load %arg9[%c0_7, %c0_8] : memref<8x128xf32, #tpu.memory_space<vmem>>, vector<1x128xf32>
    %7 = vector.broadcast %6 : vector<1x128xf32> to vector<24x128xf32>
    %8 = arith.addf %5, %7 : vector<24x128xf32>
    %cst_9 = arith.constant 0.000000e+00 : f32
    %9 = vector.broadcast %cst_9 : f32 to vector<24x128xf32>
    %10 = arith.maximumf %8, %9 : vector<24x128xf32>
    %c1 = arith.constant 1 : index
    %c0_10 = arith.constant 0 : index
    %c0_11 = arith.constant 0 : index
    %11 = vector.load %arg7[%c1, %c0_10, %c0_11] : memref<5x128x128xf32, #tpu.memory_space<vmem>>, vector<1x128x128xf32>
    %12 = vector.shape_cast %11 : vector<1x128x128xf32> to vector<128x128xf32>
    %cst_12 = arith.constant dense<0.000000e+00> : vector<24x128xf32>
    %13 = tpu.matmul %10, %12, %cst_12 {dimension_numbers = #tpu.dot_dimension_numbers<[1], [0], [0], [1], [0, 0, 1, 1], [], []>} : vector<24x128xf32>, vector<128x128xf32>, vector<24x128xf32> -> vector<24x128xf32>
    %cst_13 = arith.constant dense<0.000000e+00> : vector<24x128xf32>
    %14 = tpu.matmul %0, %13, %cst_13 {dimension_numbers = #tpu.dot_dimension_numbers<[1], [0], [0], [1], [0, 0, 1, 1], [], []>} : vector<24x24xf32>, vector<24x128xf32>, vector<24x128xf32> -> vector<24x128xf32>
    %c1_14 = arith.constant 1 : index
    %c0_15 = arith.constant 0 : index
    %15 = vector.load %arg9[%c1_14, %c0_15] : memref<8x128xf32, #tpu.memory_space<vmem>>, vector<1x128xf32>
    %16 = vector.broadcast %15 : vector<1x128xf32> to vector<24x128xf32>
    %17 = arith.addf %14, %16 : vector<24x128xf32>
    %cst_16 = arith.constant 0.000000e+00 : f32
    %18 = vector.broadcast %cst_16 : f32 to vector<24x128xf32>
    %19 = arith.maximumf %17, %18 : vector<24x128xf32>
    %c0_17 = arith.constant 0 : index
    %c0_18 = arith.constant 0 : index
    %20 = vector.load %arg0[%c0_17, %c0_18] : memref<16x16xf32, #tpu.memory_space<vmem>>, vector<16x16xf32>
    %c0_19 = arith.constant 0 : index
    %c0_20 = arith.constant 0 : index
    %21 = vector.load %arg2[%c0_19, %c0_20] : memref<16x128xf32, #tpu.memory_space<vmem>>, vector<16x128xf32>
    %c0_21 = arith.constant 0 : index
    %c0_22 = arith.constant 0 : index
    %c0_23 = arith.constant 0 : index
    %22 = vector.load %arg8[%c0_21, %c0_22, %c0_23] : memref<3x128x256xf32, #tpu.memory_space<vmem>>, vector<1x128x256xf32>
    %23 = vector.shape_cast %22 : vector<1x128x256xf32> to vector<128x256xf32>
    %cst_24 = arith.constant dense<0.000000e+00> : vector<16x256xf32>
    %24 = tpu.matmul %21, %23, %cst_24 {dimension_numbers = #tpu.dot_dimension_numbers<[1], [0], [0], [1], [0, 0, 1, 1], [], []>} : vector<16x128xf32>, vector<128x256xf32>, vector<16x256xf32> -> vector<16x256xf32>
    %25 = vector.extract_strided_slice %24 {offsets = [0, 0], sizes = [16, 128], strides = [1, 1]} : vector<16x256xf32> to vector<16x128xf32>
    %cst_25 = arith.constant dense<0.000000e+00> : vector<16x128xf32>
    %26 = tpu.matmul %20, %25, %cst_25 {dimension_numbers = #tpu.dot_dimension_numbers<[1], [0], [0], [1], [0, 0, 1, 1], [], []>} : vector<16x16xf32>, vector<16x128xf32>, vector<16x128xf32> -> vector<16x128xf32>
    %27 = vector.extract_strided_slice %24 {offsets = [0, 128], sizes = [16, 128], strides = [1, 1]} : vector<16x256xf32> to vector<16x128xf32>
    %28 = arith.addf %26, %27 : vector<16x128xf32>
    %c2 = arith.constant 2 : index
    %c0_26 = arith.constant 0 : index
    %29 = vector.load %arg9[%c2, %c0_26] : memref<8x128xf32, #tpu.memory_space<vmem>>, vector<1x128xf32>
    %30 = vector.broadcast %29 : vector<1x128xf32> to vector<16x128xf32>
    %31 = arith.addf %28, %30 : vector<16x128xf32>
    %cst_27 = arith.constant 0.000000e+00 : f32
    %32 = vector.broadcast %cst_27 : f32 to vector<16x128xf32>
    %33 = arith.maximumf %31, %32 : vector<16x128xf32>
    %c0_28 = arith.constant 0 : index
    %c0_29 = arith.constant 0 : index
    %34 = vector.load %arg3[%c0_28, %c0_29] : memref<16x128xf32, #tpu.memory_space<vmem>>, vector<16x128xf32>
    %c2_30 = arith.constant 2 : index
    %c0_31 = arith.constant 0 : index
    %c0_32 = arith.constant 0 : index
    %35 = vector.load %arg7[%c2_30, %c0_31, %c0_32] : memref<5x128x128xf32, #tpu.memory_space<vmem>>, vector<1x128x128xf32>
    %36 = vector.shape_cast %35 : vector<1x128x128xf32> to vector<128x128xf32>
    %cst_33 = arith.constant dense<0.000000e+00> : vector<16x128xf32>
    %37 = tpu.matmul %34, %36, %cst_33 {dimension_numbers = #tpu.dot_dimension_numbers<[1], [0], [0], [1], [0, 0, 1, 1], [], []>} : vector<16x128xf32>, vector<128x128xf32>, vector<16x128xf32> -> vector<16x128xf32>
    %c3 = arith.constant 3 : index
    %c0_34 = arith.constant 0 : index
    %38 = vector.load %arg9[%c3, %c0_34] : memref<8x128xf32, #tpu.memory_space<vmem>>, vector<1x128xf32>
    %39 = vector.broadcast %38 : vector<1x128xf32> to vector<16x128xf32>
    %40 = arith.addf %37, %39 : vector<16x128xf32>
    %cst_35 = arith.constant 0.000000e+00 : f32
    %41 = vector.broadcast %cst_35 : f32 to vector<16x128xf32>
    %42 = arith.maximumf %40, %41 : vector<16x128xf32>
    %c1_36 = arith.constant 1 : index
    %c0_37 = arith.constant 0 : index
    %c0_38 = arith.constant 0 : index
    %43 = vector.load %arg8[%c1_36, %c0_37, %c0_38] : memref<3x128x256xf32, #tpu.memory_space<vmem>>, vector<1x128x256xf32>
    %44 = vector.shape_cast %43 : vector<1x128x256xf32> to vector<128x256xf32>
    %cst_39 = arith.constant dense<0.000000e+00> : vector<16x256xf32>
    %45 = tpu.matmul %33, %44, %cst_39 {dimension_numbers = #tpu.dot_dimension_numbers<[1], [0], [0], [1], [0, 0, 1, 1], [], []>} : vector<16x128xf32>, vector<128x256xf32>, vector<16x256xf32> -> vector<16x256xf32>
    %46 = vector.extract_strided_slice %45 {offsets = [0, 0], sizes = [16, 128], strides = [1, 1]} : vector<16x256xf32> to vector<16x128xf32>
    %cst_40 = arith.constant dense<0.000000e+00> : vector<16x128xf32>
    %47 = tpu.matmul %20, %46, %cst_40 {dimension_numbers = #tpu.dot_dimension_numbers<[1], [0], [0], [1], [0, 0, 1, 1], [], []>} : vector<16x16xf32>, vector<16x128xf32>, vector<16x128xf32> -> vector<16x128xf32>
    %48 = vector.extract_strided_slice %45 {offsets = [0, 128], sizes = [16, 128], strides = [1, 1]} : vector<16x256xf32> to vector<16x128xf32>
    %49 = arith.addf %47, %48 : vector<16x128xf32>
    %c4 = arith.constant 4 : index
    %c0_41 = arith.constant 0 : index
    %50 = vector.load %arg9[%c4, %c0_41] : memref<8x128xf32, #tpu.memory_space<vmem>>, vector<1x128xf32>
    %51 = vector.broadcast %50 : vector<1x128xf32> to vector<16x128xf32>
    %52 = arith.addf %49, %51 : vector<16x128xf32>
    %cst_42 = arith.constant 0.000000e+00 : f32
    %53 = vector.broadcast %cst_42 : f32 to vector<16x128xf32>
    %54 = arith.maximumf %52, %53 : vector<16x128xf32>
    %c3_43 = arith.constant 3 : index
    %c0_44 = arith.constant 0 : index
    %c0_45 = arith.constant 0 : index
    %55 = vector.load %arg7[%c3_43, %c0_44, %c0_45] : memref<5x128x128xf32, #tpu.memory_space<vmem>>, vector<1x128x128xf32>
    %56 = vector.shape_cast %55 : vector<1x128x128xf32> to vector<128x128xf32>
    %cst_46 = arith.constant dense<0.000000e+00> : vector<16x128xf32>
    %57 = tpu.matmul %42, %56, %cst_46 {dimension_numbers = #tpu.dot_dimension_numbers<[1], [0], [0], [1], [0, 0, 1, 1], [], []>} : vector<16x128xf32>, vector<128x128xf32>, vector<16x128xf32> -> vector<16x128xf32>
    %c5 = arith.constant 5 : index
    %c0_47 = arith.constant 0 : index
    %58 = vector.load %arg9[%c5, %c0_47] : memref<8x128xf32, #tpu.memory_space<vmem>>, vector<1x128xf32>
    %59 = vector.broadcast %58 : vector<1x128xf32> to vector<16x128xf32>
    %60 = arith.addf %57, %59 : vector<16x128xf32>
    %cst_48 = arith.constant 0.000000e+00 : f32
    %61 = vector.broadcast %cst_48 : f32 to vector<16x128xf32>
    %62 = arith.maximumf %60, %61 : vector<16x128xf32>
    %63 = tpu.concatenate %54, %62 in 0 : vector<16x128xf32>, vector<16x128xf32> -> vector<32x128xf32>
    %c2_49 = arith.constant 2 : index
    %c0_50 = arith.constant 0 : index
    %c0_51 = arith.constant 0 : index
    %64 = vector.load %arg8[%c2_49, %c0_50, %c0_51] : memref<3x128x256xf32, #tpu.memory_space<vmem>>, vector<1x128x256xf32>
    %65 = vector.shape_cast %64 : vector<1x128x256xf32> to vector<128x256xf32>
    %cst_52 = arith.constant dense<0.000000e+00> : vector<32x256xf32>
    %66 = tpu.matmul %63, %65, %cst_52 {dimension_numbers = #tpu.dot_dimension_numbers<[1], [0], [0], [1], [0, 0, 1, 1], [], []>} : vector<32x128xf32>, vector<128x256xf32>, vector<32x256xf32> -> vector<32x256xf32>
    %67 = vector.extract_strided_slice %66 {offsets = [0, 0], sizes = [32, 128], strides = [1, 1]} : vector<32x256xf32> to vector<32x128xf32>
    %68 = vector.extract_strided_slice %66 {offsets = [0, 128], sizes = [32, 128], strides = [1, 1]} : vector<32x256xf32> to vector<32x128xf32>
    %c0_53 = arith.constant 0 : index
    %c0_54 = arith.constant 0 : index
    %c0_55 = arith.constant 0 : index
    %69 = vector.load %arg5[%c0_53, %c0_54, %c0_55] : memref<32x4x24xf32, #tpu.memory_space<vmem>>, vector<32x4x24xf32>
    %c0_56 = arith.constant 0 : index
    %c0_57 = arith.constant 0 : index
    %70 = vector.load %arg6[%c0_56, %c0_57] : memref<32x4xf32, #tpu.memory_space<vmem>>, vector<32x4xf32>
    %cst_58 = arith.constant dense<0.000000e+00> : vector<32x24xf32>
    %71 = tpu.matmul %67, %19, %cst_58 {dimension_numbers = #tpu.dot_dimension_numbers<[1], [1], [0], [0], [0, 0, 1, 0], [], []>} : vector<32x128xf32>, vector<24x128xf32>, vector<32x24xf32> -> vector<32x24xf32>
    %72 = vector.shape_cast %71 : vector<32x24xf32> to vector<32x1x24xf32>
    %73 = vector.broadcast %72 : vector<32x1x24xf32> to vector<32x4x24xf32>
    %74 = arith.mulf %69, %73 : vector<32x4x24xf32>
    %cst_59 = arith.constant dense<0.000000e+00> : vector<32x4xf32>
    %75 = vector.multi_reduction <add>, %74, %cst_59 [2] : vector<32x4x24xf32> to vector<32x4xf32>
    %cst_60 = arith.constant dense<0xFF800000> : vector<32xf32>
    %76 = vector.multi_reduction <maximumf>, %75, %cst_60 [1] : vector<32x4xf32> to vector<32xf32>
    %77 = vector.shape_cast %76 : vector<32xf32> to vector<32x1xf32>
    %78 = vector.broadcast %77 : vector<32x1xf32> to vector<32x4xf32>
    %79 = arith.subf %75, %78 : vector<32x4xf32>
    %80 = math.exp %79 : vector<32x4xf32>
    %81 = arith.mulf %80, %70 : vector<32x4xf32>
    %cst_61 = arith.constant dense<0.000000e+00> : vector<32xf32>
    %82 = vector.multi_reduction <add>, %81, %cst_61 [1] : vector<32x4xf32> to vector<32xf32>
    %83 = vector.shape_cast %82 : vector<32xf32> to vector<32x1xf32>
    %cst_62 = arith.constant 9.99999971E-10 : f32
    %84 = vector.broadcast %cst_62 : f32 to vector<32x1xf32>
    %85 = arith.addf %83, %84 : vector<32x1xf32>
    %86 = tpu.reciprocal %85 {approx = true} : vector<32x1xf32> -> vector<32x1xf32>
    %87 = vector.broadcast %86 : vector<32x1xf32> to vector<32x4xf32>
    %88 = arith.mulf %81, %87 : vector<32x4xf32>
    %89 = vector.shape_cast %88 : vector<32x4xf32> to vector<32x4x1xf32>
    %90 = vector.broadcast %89 : vector<32x4x1xf32> to vector<32x4x24xf32>
    %91 = arith.mulf %90, %69 : vector<32x4x24xf32>
    %cst_63 = arith.constant dense<0.000000e+00> : vector<32x24xf32>
    %92 = vector.multi_reduction <add>, %91, %cst_63 [1] : vector<32x4x24xf32> to vector<32x24xf32>
    %cst_64 = arith.constant dense<0.000000e+00> : vector<32x128xf32>
    %93 = tpu.matmul %92, %19, %cst_64 {dimension_numbers = #tpu.dot_dimension_numbers<[1], [0], [0], [1], [0, 0, 1, 1], [], []>} : vector<32x24xf32>, vector<24x128xf32>, vector<32x128xf32> -> vector<32x128xf32>
    %c4_65 = arith.constant 4 : index
    %c0_66 = arith.constant 0 : index
    %c0_67 = arith.constant 0 : index
    %94 = vector.load %arg7[%c4_65, %c0_66, %c0_67] : memref<5x128x128xf32, #tpu.memory_space<vmem>>, vector<1x128x128xf32>
    %95 = vector.shape_cast %94 : vector<1x128x128xf32> to vector<128x128xf32>
    %cst_68 = arith.constant dense<0.000000e+00> : vector<32x128xf32>
    %96 = tpu.matmul %93, %95, %cst_68 {dimension_numbers = #tpu.dot_dimension_numbers<[1], [0], [0], [1], [0, 0, 1, 1], [], []>} : vector<32x128xf32>, vector<128x128xf32>, vector<32x128xf32> -> vector<32x128xf32>
    %97 = arith.addf %96, %68 : vector<32x128xf32>
    %c6 = arith.constant 6 : index
    %c0_69 = arith.constant 0 : index
    %98 = vector.load %arg9[%c6, %c0_69] : memref<8x128xf32, #tpu.memory_space<vmem>>, vector<1x128xf32>
    %99 = vector.broadcast %98 : vector<1x128xf32> to vector<32x128xf32>
    %100 = arith.addf %97, %99 : vector<32x128xf32>
    %101 = math.tanh %100 : vector<32x128xf32>
    %c0_70 = arith.constant 0 : index
    %c0_71 = arith.constant 0 : index
    %102 = vector.load %arg10[%c0_70, %c0_71] : memref<32x128xf32, #tpu.memory_space<vmem>>, vector<32x128xf32>
    tpu.vector_store %arg10[%c0_70, %c0_71], %101 {strides = array<i32>} : memref<32x128xf32, #tpu.memory_space<vmem>>, vector<32x128xf32>,
    %cst_72 = arith.constant 0.000000e+00 : f32
    %103 = vector.broadcast %cst_72 : f32 to vector<32x124xf32>
    %104 = tpu.concatenate %88, %103 in 1 : vector<32x4xf32>, vector<32x124xf32> -> vector<32x128xf32>
    %c0_73 = arith.constant 0 : index
    %c0_74 = arith.constant 0 : index
    %105 = vector.load %arg11[%c0_73, %c0_74] : memref<32x128xf32, #tpu.memory_space<vmem>>, vector<32x128xf32>
    tpu.vector_store %arg11[%c0_73, %c0_74], %104 {strides = array<i32>} : memref<32x128xf32, #tpu.memory_space<vmem>>, vector<32x128xf32>,
    return
  }
}

</mosaic_0001>

<bundles_post_ra>
// kernel: tpu_custom_call.1
= control target key start
LH: loop header
LB: loop body
LE: loop exit
PB: predicated region body
PF: predicated region fallthrough
CT: control target
= control target key end

     0   :  { %17 = vsyncpa [#allocation3], 0  ;;  %s3925_s0 = inlined_call_operand.vmem [shape: f32[16,16], index: 0, kind: input, shape index: {}]   ;;  %s3926_s1 = inlined_call_operand.vmem [shape: f32[24,24], index: 1, kind: input, shape index: {}]   ;;  %s3927_s2 = inlined_call_operand.vmem [shape: f32[16,128], index: 2, kind: input, shape index: {}]   ;;  %s3928_s3 = inlined_call_operand.vmem [shape: f32[16,128], index: 3, kind: input, shape index: {}]   ;;  %s3929_s4 = inlined_call_operand.vmem [shape: f32[24,128], index: 4, kind: input, shape index: {}]   ;;  %s3930_s5 = inlined_call_operand.vmem [shape: f32[32,4,24], index: 5, kind: input, shape index: {}]   ;;  %s3931_s6 = inlined_call_operand.vmem [shape: f32[32,4], index: 6, kind: input, shape index: {}]   ;;  %s3932_s7 = inlined_call_operand.hbm [shape: f32[5,128,128], index: 7, kind: input, shape index: {}]   ;;  %s3933_s8 = inlined_call_operand.hbm [shape: f32[3,128,256], index: 8, kind: input, shape index: {}]   ;;  %s3934_s9 = inlined_call_operand.vmem [shape: f32[8,128], index: 9, kind: input, shape index: {}]   ;;  %s3935_s10 = inlined_call_operand.hbm [shape: f32[32,128], index: 10, kind: output, shape index: {0}]   ;;  %s3936_s11 = inlined_call_operand.hbm [shape: f32[32,128], index: 11, kind: output, shape index: {1}]  }
   0x1   :  { %18 = vsyncpa [#allocation6], 0 }
   0x2   :  { %19 = vsyncpa [#allocation4], 0 }
   0x3   :  { %20 = vsyncpa [#allocation9], 0  ;;  %s39_s19 = sshll.u32 %s3932_s7, 4  ;;  %s2768_s20 = smov [#allocation2]   ;;  %s40_s19 = int_to_ptr.hbm [resolvable:$true] %s39_s19 }
   0x4   :  { %s41_s21 = sshll.u32 %s2768_s20, 4  ;;  %s52_s24 = sshll.u32 %s3933_s8, 4  ;;  %s42_s21 = int_to_ptr.vmem [resolvable:$true] %s41_s21  ;;  %s53_s24 = int_to_ptr.hbm [resolvable:$true] %s52_s24 }
   0x5   :  { %s2769_s25 = smov 128   ;;  %s2770_s26 = smov 8  }
   0x6   :  { %47 = dma.hbm_to_vmem [thread:$0]  %s40_s19, 10240, %s42_s21, [#allocation3], %s2769_s25, %s2769_s25, %s2770_s26  }
   0x7   :  { %s2771_s27 = smov [#allocation5]   ;;  %s2772_s29 = smov 256  }
   0x8   :  { %s54_s28 = sshll.u32 %s2771_s27, 4  ;;  %s2773_s7 = smov 16   ;;  %s55_s28 = int_to_ptr.vmem [resolvable:$true] %s54_s28 }
   0x9   :  { %60 = dma.hbm_to_vmem [thread:$0]  %s53_s24, 12288, %s55_s28, [#allocation6], %s2772_s29, %s2772_s29, %s2773_s7  }
   0xa   :  { %2760 = dma.done.wait [#allocation3], 10240  }
   0xb   :  { %2761 = vsyncadd [#allocation3], 4294957056 }
   0xc   :  { %2762 = dma.done.wait [#allocation6], 12288  }
   0xd   :  { %2763 = vsyncadd [#allocation6], 4294955008  ;;  %v92_v0 = vld [vmem:[#allocation2 + $0x78] sm:$0xff]  ;;  %v91_v1 = vld [vmem:[#allocation2 + $0x70] sm:$0xff]  ;;  %vm121_vm0 = vcmask 195584   ;;  %vm316_vm1 = vcmask 130048  }
   0xe   :  { %93 = vmatpush.msra.mxu0 %v92_v0  ;;  %v90_v2 = vld [vmem:[#allocation2 + $0x68] sm:$0xff]  ;;  %v89_v3 = vld [vmem:[#allocation2 + $0x60] sm:$0xff]  ;;  %v88_v4 = vld [vmem:[#allocation2 + $0x58] sm:$0xff]  ;;  %vm834_vm2 = vcmask 191488   ;;  %vm997_vm3 = vcmask 1041409   ;;  %vm999_vm4 = vcmask 1042434  }
   0xf   :  { %v87_v5 = vld [vmem:[#allocation2 + $0x50] sm:$0xff]  ;;  %v86_v6 = vld [vmem:[#allocation2 + $0x48] sm:$0xff]  ;;  %v85_v7 = vld [vmem:[#allocation2 + $0x40] sm:$0xff]  ;;  %vm1001_vm5 = vcmask 1043459   ;;  %vm1003_vm6 = vcmask 1044484   ;;  %vm1005_vm7 = vcmask 1045509  }
  0x10   :  { %94 = vmatpush.msra.mxu0 %v91_v1  ;;  %v84_v8 = vld [vmem:[#allocation2 + $0x38] sm:$0xff]  ;;  %v83_v9 = vld [vmem:[#allocation2 + $0x30] sm:$0xff]  ;;  %v82_v10 = vld [vmem:[#allocation2 + $0x28] sm:$0xff]  ;;  %vm1007_vm8 = vcmask 1046534   ;;  %vm1009_vm9 = vcmask 1047559   ;;  %vm1036_vm10 = vcmask 31744  }
  0x11   :  { %v81_v11 = vld [vmem:[#allocation2 + $0x20] sm:$0xff]  ;;  %v80_v12 = vld [vmem:[#allocation2 + $0x18] sm:$0xff]  ;;  %v79_v13 = vld [vmem:[#allocation2 + $0x10] sm:$0xff]  ;;  %s2481_s12 = sshll.u32 %s3936_s11, 4  ;;  %s2482_s12 = int_to_ptr.hbm [resolvable:$true] %s2481_s12 }
  0x12   :  { %95 = vmatpush.msra.mxu0 %v90_v2  ;;  %v78_v14 = vld [vmem:[#allocation2 + $0x8] sm:$0xff]  ;;  %v77_v15 = vld [vmem:[#allocation2] sm:$0xff]  ;;  %v76_v18 = vld [vmem:[%s3929_s4 + $0x10] sm:$0xff] }
  0x13   :  { %v74_v16 = vld [vmem:[%s3929_s4] sm:$0xff]  ;;  %v75_v17 = vld [vmem:[%s3929_s4 + $0x8] sm:$0xff]  ;;  %v176_v20 = vld [vmem:[#allocation2 + $0xf8] sm:$0xff] }
  0x14   :  { %96 = vmatpush.msra.mxu0 %v89_v3  ;;  %v175_v21 = vld [vmem:[#allocation2 + $0xf0] sm:$0xff]  ;;  %177 = vmatpush.msra.mxu2 %v176_v20  ;;  %v174_v23 = vld [vmem:[#allocation2 + $0xe8] sm:$0xff]  ;;  %v173_v24 = vld [vmem:[#allocation2 + $0xe0] sm:$0xff] }
  0x15   :  { %v172_v25 = vld [vmem:[#allocation2 + $0xd8] sm:$0xff]  ;;  %v171_v26 = vld [vmem:[#allocation2 + $0xd0] sm:$0xff]  ;;  %v170_v28 = vld [vmem:[#allocation2 + $0xc8] sm:$0xff] }
  0x16   :  { %97 = vmatpush.msra.mxu0 %v88_v4  ;;  %178 = vmatpush.msra.mxu2 %v175_v21  ;;  %v169_v29 = vld [vmem:[#allocation2 + $0xc0] sm:$0xff]  ;;  %v168_v31 = vld [vmem:[#allocation2 + $0xb8] sm:$0xff]  ;;  %v167_v32 = vld [vmem:[#allocation2 + $0xb0] sm:$0xff] }
  0x17   :  { %v2858_v30 = vld [vmem:[%s3926_s1] sm:$0xff]  ;;  %v166_v33 = vld [vmem:[#allocation2 + $0xa8] sm:$0xff]  ;;  %v164_v36 = vld [vmem:[#allocation2 + $0x98] sm:$0xff] }
  0x18   :  { %98 = vmatpush.msra.mxu0 %v87_v5  ;;  %179 = vmatpush.msra.mxu2 %v174_v23  ;;  %v165_v34 = vld [vmem:[#allocation2 + $0xa0] sm:$0xff]  ;;  %v2865_v35 = vld [vmem:[%s3926_s1 + $0x8] sm:$0xff]  ;;  %v2872_v37 = vld [vmem:[%s3926_s1 + $0x10] sm:$0xff] }
  0x19   :  { %v163_v38 = vld [vmem:[#allocation2 + $0x90] sm:$0xff]  ;;  %v162_v39 = vld [vmem:[#allocation2 + $0x88] sm:$0xff]  ;;  %v161_v40 = vld [vmem:[#allocation2 + $0x80] sm:$0xff] }
  0x1a   :  { %99 = vmatpush.msra.mxu0 %v86_v6  ;;  %180 = vmatpush.msra.mxu2 %v173_v24  ;;  %v268_v41 = vld [vmem:[#allocation5 + $0xf0] sm:$0xff]  ;;  %v266_v42 = vld [vmem:[#allocation5 + $0xe0] sm:$0xff]  ;;  %v2888_v4 = vld [vmem:[%s3927_s2 + $0x8] sm:$0xff] }
  0x1b   :  { %v264_v43 = vld [vmem:[#allocation5 + $0xd0] sm:$0xff]  ;;  %v262_v44 = vld [vmem:[#allocation5 + $0xc0] sm:$0xff]  ;;  %v257_v20 = vld [vmem:[#allocation5 + $0x98] sm:$0xff] }
  0x1c   :  { %100 = vmatpush.msra.mxu0 %v85_v7  ;;  %181 = vmatpush.msra.mxu2 %v172_v25  ;;  %v260_v45 = vld [vmem:[#allocation5 + $0xb0] sm:$0xff]  ;;  %v258_v46 = vld [vmem:[#allocation5 + $0xa0] sm:$0xff]  ;;  %v368_v21 = vld [vmem:[#allocation2 + $0x168] sm:$0xff] }
  0x1d   :  { %v256_v47 = vld [vmem:[#allocation5 + $0x90] sm:$0xff]  ;;  %v254_v48 = vld [vmem:[#allocation5 + $0x80] sm:$0xff]  ;;  %v253_v24 = vld [vmem:[#allocation5 + $0x78] sm:$0xff] }
  0x1e   :  { %101 = vmatpush.msra.mxu0 %v84_v8  ;;  %182 = vmatpush.msra.mxu2 %v171_v26  ;;  %v2545_v49 = vld [vmem:[%s3934_s9] ss:$0 sm:$0xff]  ;;  %v252_v50 = vld [vmem:[#allocation5 + $0x70] sm:$0xff]  ;;  %v366_v25 = vld [vmem:[#allocation2 + $0x158] sm:$0xff] }
  0x1f   :  { %v250_v52 = vld [vmem:[#allocation5 + $0x60] sm:$0xff]  ;;  %v248_v54 = vld [vmem:[#allocation5 + $0x50] sm:$0xff]  ;;  %v251_v26 = vld [vmem:[#allocation5 + $0x68] sm:$0xff] }
  0x20   :  { %102 = vmatpush.msra.mxu0 %v83_v9  ;;  %183 = vmatpush.msra.mxu2 %v170_v28  ;;  %v246_v56 = vld [vmem:[#allocation5 + $0x40] sm:$0xff]  ;;  %v244_v57 = vld [vmem:[#allocation5 + $0x30] sm:$0xff]  ;;  %v249_v28 = vld [vmem:[#allocation5 + $0x58] sm:$0xff] }
  0x21   :  { %v242_v59 = vld [vmem:[#allocation5 + $0x20] sm:$0xff]  ;;  %v240_v61 = vld [vmem:[#allocation5 + $0x10] sm:$0xff] }
  0x22   :  { %103 = vmatpush.msra.mxu0 %v82_v10  ;;  %184 = vmatpush.msra.mxu2 %v169_v29  ;;  %v238_v63 = vld [vmem:[#allocation5] sm:$0xff]  ;;  %v269_v10 = vld [vmem:[#allocation5 + $0xf8] sm:$0xff]  ;;  %v364_v29 = vld [vmem:[#allocation2 + $0x148] sm:$0xff] }
  0x23   :  { %v2882_v0 = vld [vmem:[%s3927_s2] sm:$0xff] }
  0x24   :  { %104 = vmatpush.msra.mxu0 %v81_v11  ;;  %185 = vmatpush.msra.mxu2 %v168_v31  ;;  %v267_v11 = vld [vmem:[#allocation5 + $0xe8] sm:$0xff]  ;;  %v367_v23 = vld [vmem:[#allocation2 + $0x160] sm:$0xff] }
  0x25   :  { %v363_v31 = vld [vmem:[#allocation2 + $0x140] sm:$0xff] }
  0x26   :  { %105 = vmatpush.msra.mxu0 %v80_v12  ;;  %186 = vmatpush.msra.mxu2 %v167_v32  ;;  %v2896_v12 = vld [vmem:[%s3925_s0] sm:$0xff]  ;;  %v245_v32 = vld [vmem:[#allocation5 + $0x38] sm:$0xff] }
  0x28   :  { %106 = vmatpush.msra.mxu0 %v79_v13  ;;  %187 = vmatpush.msra.mxu2 %v166_v33  ;;  %v265_v13 = vld [vmem:[#allocation5 + $0xd8] sm:$0xff] }
  0x29   :  { %v362_v33 = vld [vmem:[#allocation2 + $0x138] sm:$0xff] }
  0x2a   :  { %107 = vmatpush.msra.mxu0 %v78_v14  ;;  %188 = vmatpush.msra.mxu2 %v165_v34  ;;  %v263_v14 = vld [vmem:[#allocation5 + $0xc8] sm:$0xff] }
  0x2b   :  { %v243_v34 = vld [vmem:[#allocation5 + $0x28] sm:$0xff] }
  0x2c   :  { %108 = vmatpush.msra.mxu0 %v77_v15  ;;  %189 = vmatpush.msra.mxu2 %v164_v36  ;;  %v261_v15 = vld [vmem:[#allocation5 + $0xb8] sm:$0xff] }
  0x2d   :  { %109 = vmatmul.f32.vlgmr.msra.gmra.mxu0 %v74_v16  ;;  %v259_v16 = vld [vmem:[#allocation5 + $0xa8] sm:$0xff]  ;;  %v241_v36 = vld [vmem:[#allocation5 + $0x18] sm:$0xff] }
  0x2e   :  { %190 = vmatpush.msra.mxu2 %v163_v38  ;;  %v239_v38 = vld [vmem:[#allocation5 + $0x8] sm:$0xff] }
  0x30   :  { %191 = vmatpush.msra.mxu2 %v162_v39  ;;  %v359_v39 = vld [vmem:[#allocation2 + $0x120] sm:$0xff] }
  0x32   :  { %192 = vmatpush.msra.mxu2 %v161_v40  ;;  %v430_v40 = vld [vmem:[#allocation5 + $0x1f8] sm:$0xff] }
  0x35   :  { %112 = vmatmul.f32.gmra.mxu0 %v75_v17  ;;  %v2905_v17 = vld [vmem:[%s3925_s0 + $0x8] sm:$0xff] }
  0x3d   :  { %115 = vmatmul.f32.gmra.mxu0 %v76_v18  ;;  %v370_v18 = vld [vmem:[#allocation2 + $0x178] sm:$0xff] }
  0x3e   :  { %373 = vmatpush.msrb.mxu0 %v370_v18  ;;  %v417_v18 = vld [vmem:[#allocation5 + $0x190] sm:$0xff] }
  0xaa   :  { %v110_v19 = vpop.f32.mrf.mxu0 }
  0xb2   :  { %v113_v22 = vpop.f32.mrf.mxu0 }
  0xba   :  { %v116_v27 = vpop.f32.mrf.mxu0 }
  0xbb   :  { %144 = vmatpush.msra.mxu1 %v116_v27  ;;  %v365_v27 = vld [vmem:[#allocation2 + $0x150] sm:$0xff] }
  0xbd   :  { %145 = vmatpush.msra.mxu1 %v113_v22  ;;  %v255_v22 = vld [vmem:[#allocation5 + $0x88] sm:$0xff] }
  0xbf   :  { %146 = vmatpush.msra.mxu1 %v110_v19  ;;  %v369_v19 = vld [vmem:[#allocation2 + $0x170] sm:$0xff] }
  0xc0   :  { %2500 = vmatmul.msk.f32.vlgmr.msra.gmra.mxu1 %vm121_vm0, %v2858_v30  ;;  %374 = vmatpush.msrb.mxu0 %v369_v19  ;;  %v400_v19 = vld [vmem:[#allocation5 + $0x108] sm:$0xff] }
  0xc1   :  { %270 = vmatpush.msrb.mxu1 %v268_v41  ;;  %v358_v41 = vld [vmem:[#allocation2 + $0x118] sm:$0xff] }
  0xc2   :  { %375 = vmatpush.msrb.mxu0 %v368_v21  ;;  %v352_v21 = vld [vmem:[%s3928_s3] sm:$0xff] }
  0xc3   :  { %271 = vmatpush.msrb.mxu1 %v266_v42  ;;  %v428_v42 = vld [vmem:[#allocation5 + $0x1e8] sm:$0xff] }
  0xc4   :  { %376 = vmatpush.msrb.mxu0 %v367_v23  ;;  %v413_v23 = vld [vmem:[#allocation5 + $0x170] sm:$0xff] }
  0xc5   :  { %272 = vmatpush.msrb.mxu1 %v264_v43  ;;  %v357_v43 = vld [vmem:[#allocation2 + $0x110] sm:$0xff] }
  0xc6   :  { %377 = vmatpush.msrb.mxu0 %v366_v25  ;;  %v409_v25 = vld [vmem:[#allocation5 + $0x150] sm:$0xff] }
  0xc7   :  { %273 = vmatpush.msrb.mxu1 %v262_v44  ;;  %v426_v44 = vld [vmem:[#allocation5 + $0x1d8] sm:$0xff] }
  0xc8   :  { %2501 = vmatmul.msk.f32.gmra.mxu1 %vm121_vm0, %v2865_v35  ;;  %378 = vmatpush.msrb.mxu0 %v365_v27  ;;  %v405_v27 = vld [vmem:[#allocation5 + $0x130] sm:$0xff] }
  0xc9   :  { %274 = vmatpush.msrb.mxu1 %v260_v45  ;;  %v356_v45 = vld [vmem:[#allocation2 + $0x108] sm:$0xff] }
  0xca   :  { %379 = vmatpush.msrb.mxu0 %v364_v29  ;;  %v403_v29 = vld [vmem:[#allocation5 + $0x120] sm:$0xff] }
  0xcb   :  { %275 = vmatpush.msrb.mxu1 %v258_v46  ;;  %v424_v46 = vld [vmem:[#allocation5 + $0x1c8] sm:$0xff] }
  0xcc   :  { %380 = vmatpush.msrb.mxu0 %v363_v31  ;;  %v399_v31 = vld [vmem:[#allocation5 + $0x100] sm:$0xff] }
  0xcd   :  { %276 = vmatpush.msrb.mxu1 %v256_v47  ;;  %v355_v47 = vld [vmem:[#allocation2 + $0x100] sm:$0xff] }
  0xce   :  { %381 = vmatpush.msrb.mxu0 %v362_v33  ;;  %v2546_v33 = vld [vmem:[%s3934_s9 + $0x1] ss:$0 sm:$0xff] }
  0xcf   :  { %277 = vmatpush.msrb.mxu1 %v254_v48  ;;  %v522_v48 = vld [vmem:[#allocation2 + $0x1f8] sm:$0xff] }
  0xd0   :  { %2502 = vmatmul.msk.f32.gmra.mxu1 %vm121_vm0, %v2872_v37 }
  0xd1   :  { %278 = vmatpush.msrb.mxu1 %v252_v50  ;;  %v521_v50 = vld [vmem:[#allocation2 + $0x1f0] sm:$0xff] }
  0xd3   :  { %279 = vmatpush.msrb.mxu1 %v250_v52  ;;  %v519_v52 = vld [vmem:[#allocation2 + $0x1e0] sm:$0xff] }
  0xd5   :  { %280 = vmatpush.msrb.mxu1 %v248_v54  ;;  %v420_v54 = vld [vmem:[#allocation5 + $0x1a8] sm:$0xff] }
  0xd7   :  { %281 = vmatpush.msrb.mxu1 %v246_v56  ;;  %v418_v56 = vld [vmem:[#allocation5 + $0x198] sm:$0xff] }
  0xd9   :  { %282 = vmatpush.msrb.mxu1 %v244_v57  ;;  %v516_v57 = vld [vmem:[#allocation2 + $0x1c8] sm:$0xff] }
  0xdb   :  { %283 = vmatpush.msrb.mxu1 %v242_v59  ;;  %v515_v59 = vld [vmem:[#allocation2 + $0x1c0] sm:$0xff] }
  0xdd   :  { %284 = vmatpush.msrb.mxu1 %v240_v61  ;;  %v514_v61 = vld [vmem:[#allocation2 + $0x1b8] sm:$0xff] }
  0xdf   :  { %285 = vmatpush.msrb.mxu1 %v238_v63  ;;  %v412_v63 = vld [vmem:[#allocation5 + $0x168] sm:$0xff] }
  0xe0   :  { %286 = vmatmul.f32.vlgmr.msrb.gmra.mxu1 %v2882_v0 }
  0xe8   :  { %289 = vmatmul.f32.gmra.mxu1 %v2888_v4 }
 0x13d   :  { %v148_v51 = vpop.f32.mrf.mxu1 }
 0x13e   :  { %v149_v53 = vadd.f32 %v2545_v49, %v148_v51  ;;  %v520_v51 = vld [vmem:[#allocation2 + $0x1e8] sm:$0xff] }
 0x140   :  { %v157_v55 = vmax.f32 %v149_v53, 0.0  ;;  %v518_v53 = vld [vmem:[#allocation2 + $0x1d8] sm:$0xff] }
 0x142   :  { %193 = vmatmul.f32.vlgmr.msra.gmra.mxu2 %v157_v55  ;;  %v517_v55 = vld [vmem:[#allocation2 + $0x1d0] sm:$0xff] }
 0x145   :  { %v151_v58 = vpop.f32.mrf.mxu1 }
 0x146   :  { %v152_v60 = vadd.f32 %v2545_v49, %v151_v58  ;;  %v416_v58 = vld [vmem:[#allocation5 + $0x188] sm:$0xff] }
 0x148   :  { %v158_v62 = vmax.f32 %v152_v60, 0.0  ;;  %v414_v60 = vld [vmem:[#allocation5 + $0x178] sm:$0xff] }
 0x14a   :  { %196 = vmatmul.f32.gmra.mxu2 %v158_v62  ;;  %v429_v62 = vld [vmem:[#allocation5 + $0x1f0] sm:$0xff] }
 0x14b   :  { %431 = vmatpush.msrb.mxu2 %v429_v62 }
 0x14d   :  { %v154_v1 = vpop.f32.mrf.mxu1 }
 0x14e   :  { %v155_v2 = vadd.f32 %v2545_v49, %v154_v1  ;;  %v422_v49 = vld [vmem:[#allocation5 + $0x1b8] sm:$0xff]  ;;  %v427_v1 = vld [vmem:[#allocation5 + $0x1e0] sm:$0xff] }
 0x14f   :  { %432 = vmatpush.msrb.mxu2 %v427_v1  ;;  %v569_v1 = vld [vmem:[#allocation5 + $0x290] sm:$0xff] }
 0x150   :  { %v159_v3 = vmax.f32 %v155_v2, 0.0  ;;  %v410_v2 = vld [vmem:[#allocation5 + $0x158] sm:$0xff] }
 0x152   :  { %199 = vmatmul.f32.gmra.mxu2 %v159_v3  ;;  %v512_v3 = vld [vmem:[#allocation2 + $0x1a8] sm:$0xff] }
 0x15d   :  { %v287_v6 = vpop.f32.mrf.mxu1 }
 0x165   :  { %v290_v8 = vpop.f32.mrf.mxu1 }
 0x166   :  { %337 = vmatpush.msra.mxu1 %v290_v8  ;;  %v406_v8 = vld [vmem:[#allocation5 + $0x138] sm:$0xff] }
 0x168   :  { %338 = vmatpush.msra.mxu1 %v287_v6  ;;  %v511_v6 = vld [vmem:[#allocation2 + $0x1a0] sm:$0xff] }
 0x169   :  { %2506 = vmatmul.msk.f32.vlgmr.msra.gmra.mxu1 %vm316_vm1, %v2896_v12 }
 0x171   :  { %2507 = vmatmul.msk.f32.gmra.mxu1 %vm316_vm1, %v2905_v17 }
 0x1c5   :  { %v194_v5 = vpop.f32.mrf.mxu2 }
 0x1cd   :  { %v197_v7 = vpop.f32.mrf.mxu2 }
 0x1d5   :  { %v200_v9 = vpop.f32.mrf.mxu2 }
 0x1d6   :  { %218 = vmatpush.msra.mxu3 %v200_v9  ;;  %v510_v9 = vld [vmem:[#allocation2 + $0x198] sm:$0xff] }
 0x1d8   :  { %219 = vmatpush.msra.mxu3 %v197_v7  ;;  %v423_v7 = vld [vmem:[#allocation5 + $0x1c0] sm:$0xff] }
 0x1da   :  { %220 = vmatpush.msra.mxu3 %v194_v5  ;;  %v408_v5 = vld [vmem:[#allocation5 + $0x148] sm:$0xff] }
 0x1db   :  { %2503 = vmatmul.msk.f32.vlgmr.msra.gmra.mxu3 %vm121_vm0, %v2858_v30  ;;  %v247_v30 = vld [vmem:[#allocation5 + $0x48] sm:$0xff] }
 0x1dc   :  { %293 = vmatpush.msrb.mxu3 %v269_v10  ;;  %v421_v10 = vld [vmem:[#allocation5 + $0x1b0] sm:$0xff] }
 0x1de   :  { %294 = vmatpush.msrb.mxu3 %v267_v11  ;;  %v404_v11 = vld [vmem:[#allocation5 + $0x128] sm:$0xff] }
 0x1e0   :  { %295 = vmatpush.msrb.mxu3 %v265_v13  ;;  %v509_v13 = vld [vmem:[#allocation2 + $0x190] sm:$0xff] }
 0x1e2   :  { %296 = vmatpush.msrb.mxu3 %v263_v14  ;;  %v419_v14 = vld [vmem:[#allocation5 + $0x1a0] sm:$0xff] }
 0x1e3   :  { %2504 = vmatmul.msk.f32.gmra.mxu3 %vm121_vm0, %v2865_v35  ;;  %v361_v35 = vld [vmem:[#allocation2 + $0x130] sm:$0xff] }
 0x1e4   :  { %297 = vmatpush.msrb.mxu3 %v261_v15  ;;  %382 = vmatpush.msrb.mxu0 %v361_v35  ;;  %v402_v15 = vld [vmem:[#allocation5 + $0x118] sm:$0xff] }
 0x1e6   :  { %298 = vmatpush.msrb.mxu3 %v259_v16  ;;  %v508_v16 = vld [vmem:[#allocation2 + $0x188] sm:$0xff] }
 0x1e8   :  { %299 = vmatpush.msrb.mxu3 %v257_v20  ;;  %v507_v20 = vld [vmem:[#allocation2 + $0x180] sm:$0xff] }
 0x1ea   :  { %300 = vmatpush.msrb.mxu3 %v255_v22  ;;  %v415_v22 = vld [vmem:[#allocation5 + $0x180] sm:$0xff] }
 0x1eb   :  { %2505 = vmatmul.msk.f32.gmra.mxu3 %vm121_vm0, %v2872_v37  ;;  %v360_v37 = vld [vmem:[#allocation2 + $0x128] sm:$0xff] }
 0x1ec   :  { %301 = vmatpush.msrb.mxu3 %v253_v24  ;;  %383 = vmatpush.msrb.mxu0 %v360_v37  ;;  %v411_v24 = vld [vmem:[#allocation5 + $0x160] sm:$0xff] }
 0x1ee   :  { %302 = vmatpush.msrb.mxu3 %v251_v26  ;;  %384 = vmatpush.msrb.mxu0 %v359_v39  ;;  %v407_v26 = vld [vmem:[#allocation5 + $0x140] sm:$0xff] }
 0x1f0   :  { %303 = vmatpush.msrb.mxu3 %v249_v28  ;;  %385 = vmatpush.msrb.mxu0 %v358_v41 }
 0x1f2   :  { %304 = vmatpush.msrb.mxu3 %v247_v30  ;;  %386 = vmatpush.msrb.mxu0 %v357_v43  ;;  %v401_v30 = vld [vmem:[#allocation5 + $0x110] sm:$0xff]  ;;  %v2547_v43 = vld [vmem:[%s3934_s9 + $0x2] ss:$0 sm:$0xff] }
 0x1f4   :  { %305 = vmatpush.msrb.mxu3 %v245_v32  ;;  %387 = vmatpush.msrb.mxu0 %v356_v45 }
 0x1f6   :  { %306 = vmatpush.msrb.mxu3 %v243_v34  ;;  %388 = vmatpush.msrb.mxu0 %v355_v47  ;;  %v353_v34 = vld [vmem:[%s3928_s3 + $0x8] sm:$0xff]  ;;  %s2468_s3 = sshll.u32 %s3935_s10, 4  ;;  %s2469_s3 = int_to_ptr.hbm [resolvable:$true] %s2468_s3 }
 0x1f7   :  { %389 = vmatmul.f32.vlgmr.msrb.gmra.mxu0 %v352_v21  ;;  %v562_v21 = vld [vmem:[#allocation5 + $0x258] sm:$0xff] }
 0x1f8   :  { %307 = vmatpush.msrb.mxu3 %v241_v36  ;;  %525 = vmatpush.msra.mxu0 %v522_v48 }
 0x1fa   :  { %308 = vmatpush.msrb.mxu3 %v239_v38  ;;  %526 = vmatpush.msra.mxu0 %v521_v50 }
 0x1fb   :  { %309 = vmatmul.f32.vlgmr.msrb.gmra.mxu3 %v2882_v0  ;;  %v513_v0 = vld [vmem:[#allocation2 + $0x1b0] sm:$0xff] }
 0x1fc   :  { %454 = vmatpush.msra.mxu3 %v430_v40  ;;  %527 = vmatpush.msra.mxu0 %v520_v51 }
 0x1fe   :  { %455 = vmatpush.msra.mxu3 %v428_v42  ;;  %528 = vmatpush.msra.mxu0 %v519_v52  ;;  %v340_v42 = vpop.f32.mrf.mxu1 }
 0x1ff   :  { %392 = vmatmul.f32.gmra.mxu0 %v353_v34 }
 0x200   :  { %456 = vmatpush.msra.mxu3 %v426_v44  ;;  %529 = vmatpush.msra.mxu0 %v518_v53  ;;  %v2548_v53 = vld [vmem:[%s3934_s9 + $0x3] ss:$0 sm:$0xff] }
 0x202   :  { %457 = vmatpush.msra.mxu3 %v424_v46  ;;  %530 = vmatpush.msra.mxu0 %v517_v55  ;;  %v581_v55 = vld [vmem:[#allocation5 + $0x2f0] sm:$0xff] }
 0x203   :  { %312 = vmatmul.f32.gmra.mxu3 %v2888_v4  ;;  %v425_v4 = vld [vmem:[#allocation5 + $0x1d0] sm:$0xff] }
 0x204   :  { %458 = vmatpush.msra.mxu3 %v422_v49  ;;  %531 = vmatpush.msra.mxu0 %v516_v57 }
 0x205   :  { %433 = vmatpush.msrb.mxu2 %v425_v4  ;;  %v567_v4 = vld [vmem:[#allocation5 + $0x280] sm:$0xff] }
 0x206   :  { %459 = vmatpush.msra.mxu3 %v420_v54  ;;  %532 = vmatpush.msra.mxu0 %v515_v59  ;;  %v343_v48 = vpop.f32.mrf.mxu1 }
 0x207   :  { %434 = vmatpush.msrb.mxu2 %v423_v7  ;;  %v561_v7 = vld [vmem:[#allocation5 + $0x250] sm:$0xff] }
 0x208   :  { %460 = vmatpush.msra.mxu3 %v418_v56  ;;  %533 = vmatpush.msra.mxu0 %v514_v61  ;;  %v579_v56 = vld [vmem:[#allocation5 + $0x2e0] sm:$0xff]  ;;  %v573_v61 = vld [vmem:[#allocation5 + $0x2b0] sm:$0xff] }
 0x209   :  { %435 = vmatpush.msrb.mxu2 %v421_v10  ;;  %v582_v10 = vld [vmem:[#allocation5 + $0x2f8] sm:$0xff] }
 0x20a   :  { %461 = vmatpush.msra.mxu3 %v416_v58  ;;  %534 = vmatpush.msra.mxu0 %v513_v0  ;;  %v577_v58 = vld [vmem:[#allocation5 + $0x2d0] sm:$0xff] }
 0x20b   :  { %436 = vmatpush.msrb.mxu2 %v419_v14  ;;  %v576_v14 = vld [vmem:[#allocation5 + $0x2c8] sm:$0xff] }
 0x20c   :  { %462 = vmatpush.msra.mxu3 %v414_v60  ;;  %535 = vmatpush.msra.mxu0 %v512_v3  ;;  %v575_v60 = vld [vmem:[#allocation5 + $0x2c0] sm:$0xff] }
 0x20d   :  { %437 = vmatpush.msrb.mxu2 %v417_v18  ;;  %v570_v18 = vld [vmem:[#allocation5 + $0x298] sm:$0xff] }
 0x20e   :  { %463 = vmatpush.msra.mxu3 %v412_v63  ;;  %536 = vmatpush.msra.mxu0 %v511_v6  ;;  %v571_v63 = vld [vmem:[#allocation5 + $0x2a0] sm:$0xff] }
 0x20f   :  { %438 = vmatpush.msrb.mxu2 %v415_v22  ;;  %v563_v6 = vld [vmem:[#allocation5 + $0x260] sm:$0xff]  ;;  %v560_v22 = vld [vmem:[#allocation5 + $0x248] sm:$0xff] }
 0x210   :  { %464 = vmatpush.msra.mxu3 %v410_v2  ;;  %537 = vmatpush.msra.mxu0 %v510_v9  ;;  %v559_v9 = vld [vmem:[#allocation5 + $0x240] sm:$0xff] }
 0x211   :  { %439 = vmatpush.msrb.mxu2 %v413_v23  ;;  %v557_v23 = vld [vmem:[#allocation5 + $0x230] sm:$0xff] }
 0x212   :  { %465 = vmatpush.msra.mxu3 %v408_v5  ;;  %538 = vmatpush.msra.mxu0 %v509_v13  ;;  %v565_v5 = vld [vmem:[#allocation5 + $0x270] sm:$0xff]  ;;  %v578_v13 = vld [vmem:[#allocation5 + $0x2d8] sm:$0xff] }
 0x213   :  { %440 = vmatpush.msrb.mxu2 %v411_v24  ;;  %v558_v24 = vld [vmem:[#allocation5 + $0x238] sm:$0xff] }
 0x214   :  { %466 = vmatpush.msra.mxu3 %v406_v8  ;;  %539 = vmatpush.msra.mxu0 %v508_v16  ;;  %v572_v16 = vld [vmem:[#allocation5 + $0x2a8] sm:$0xff] }
 0x215   :  { %441 = vmatpush.msrb.mxu2 %v409_v25  ;;  %v556_v25 = vld [vmem:[#allocation5 + $0x228] sm:$0xff] }
 0x216   :  { %467 = vmatpush.msra.mxu3 %v404_v11  ;;  %540 = vmatpush.msra.mxu0 %v507_v20  ;;  %v580_v11 = vld [vmem:[#allocation5 + $0x2e8] sm:$0xff]  ;;  %v566_v20 = vld [vmem:[#allocation5 + $0x278] sm:$0xff] }
 0x217   :  { %442 = vmatpush.msrb.mxu2 %v407_v26  ;;  %v553_v26 = vld [vmem:[#allocation5 + $0x210] sm:$0xff] }
 0x218   :  { %468 = vmatpush.msra.mxu3 %v402_v15  ;;  %v574_v15 = vld [vmem:[#allocation5 + $0x2b8] sm:$0xff] }
 0x219   :  { %443 = vmatpush.msrb.mxu2 %v405_v27  ;;  %v554_v27 = vld [vmem:[#allocation5 + $0x218] sm:$0xff] }
 0x21a   :  { %469 = vmatpush.msra.mxu3 %v400_v19  ;;  %v568_v19 = vld [vmem:[#allocation5 + $0x288] sm:$0xff] }
 0x21b   :  { %444 = vmatpush.msrb.mxu2 %v403_v29  ;;  %v552_v29 = vld [vmem:[#allocation5 + $0x208] sm:$0xff] }
 0x21d   :  { %445 = vmatpush.msrb.mxu2 %v401_v30 }
 0x21f   :  { %446 = vmatpush.msrb.mxu2 %v399_v31  ;;  %v2549_v31 = vld [vmem:[%s3934_s9 + $0x4] ss:$0 sm:$0xff] }
 0x221   :  { %583 = vmatpush.msra.mxu2 %v581_v55 }
 0x223   :  { %584 = vmatpush.msra.mxu2 %v579_v56 }
 0x225   :  { %585 = vmatpush.msra.mxu2 %v577_v58  ;;  %v674_v58 = vld [vmem:[%s3931_s6 + $0x8] sm:$0xff] }
 0x227   :  { %586 = vmatpush.msra.mxu2 %v575_v60 }
 0x229   :  { %587 = vmatpush.msra.mxu2 %v573_v61  ;;  %v1280_v61 = vperm.slane %v674_v58, 1 }
 0x22b   :  { %588 = vmatpush.msra.mxu2 %v571_v63  ;;  %v1308_v63 = vperm.slane %v674_v58, 5 }
 0x22d   :  { %589 = vmatpush.msra.mxu2 %v569_v1  ;;  %v1294_v1 = vperm.slane %v674_v58, 3 }
 0x22f   :  { %590 = vmatpush.msra.mxu2 %v567_v4  ;;  %v675_v4 = vld [vmem:[%s3931_s6 + $0x10] sm:$0xff] }
 0x231   :  { %591 = vmatpush.msra.mxu2 %v565_v5  ;;  %v1329_v5 = vperm.slane %v675_v4, 0 }
 0x233   :  { %592 = vmatpush.msra.mxu2 %v563_v6  ;;  %v1343_v6 = vperm.slane %v675_v4, 2 }
 0x235   :  { %593 = vmatpush.msra.mxu2 %v561_v7  ;;  %v1336_v7 = vperm.slane %v675_v4, 1 }
 0x237   :  { %594 = vmatpush.msra.mxu2 %v559_v9  ;;  %v1364_v9 = vperm.slane %v675_v4, 5 }
 0x239   :  { %595 = vmatpush.msra.mxu2 %v557_v23 }
 0x25e   :  { %v222_v28 = vpop.f32.mrf.mxu3 }
 0x25f   :  { %v223_v38 = vadd.f32 %v2546_v33, %v222_v28  ;;  %v551_v28 = vld [vmem:[#allocation5 + $0x200] sm:$0xff] }
 0x261   :  { %v231_v41 = vmax.f32 %v223_v38, 0.0 }
 0x266   :  { %v225_v32 = vpop.f32.mrf.mxu3 }
 0x267   :  { %v226_v36 = vadd.f32 %v2546_v33, %v225_v32  ;;  %v963_v32 = vlaneseq }
 0x269   :  { %v232_v40 = vmax.f32 %v226_v36, 0.0 }
 0x26e   :  { %v228_v35 = vpop.f32.mrf.mxu3 }
 0x26f   :  { %v229_v37 = vadd.f32 %v2546_v33, %v228_v35  ;;  %v1219_v35 = vshrl.u32 %v963_v32, 7 }
 0x271   :  { %v233_v39 = vmax.f32 %v229_v37, 0.0  ;;  %2540 = vset.pattern.permute.xlu1 %v1219_v35  ;;  %2541 = vset.pattern.permute.xlu2 %v1219_v35  ;;  %v673_v37 = vld [vmem:[%s3931_s6] sm:$0xff] }
 0x272   :  { %2539 = vset.pattern.permute.xlu0 %v1219_v35  ;;  %v1259_v56 = vperm.slane %v673_v37, 6 }
 0x273   :  { %690 = vmatpush.xpose.msrb.mxu3 %v233_v39  ;;  %2314 = vmatpush.msrb.mxu0 %v233_v39  ;;  %v1224_v39 = vperm.slane %v673_v37, 1 }
 0x274   :  { %v390_v54 = vpop.f32.mrf.mxu0 }
 0x275   :  { %2315 = vmatpush.msrb.mxu0 %v232_v40  ;;  %v391_v57 = vadd.f32 %v2548_v53, %v390_v54 }
 0x277   :  { %691 = vmatpush.xpose.msrb.mxu3 %v232_v40  ;;  %2316 = vmatpush.msrb.mxu0 %v231_v41  ;;  %v396_v59 = vmax.f32 %v391_v57, 0.0  ;;  %v1231_v40 = vperm.slane %v673_v37, 2  ;;  %v1252_v57 = vperm.slane %v673_v37, 5 }
 0x279   :  { %541 = vmatmul.f32.vlgmr.msra.gmra.mxu0 %v396_v59  ;;  %1229 = vperm.xlu1 %2540, %v1224_v39   ;;  %v1287_v59 = vperm.slane %v674_v58, 2 }
 0x27a   :  { %1236 = vperm.xlu2 %2541, %v1231_v40  }
 0x27b   :  { %692 = vmatpush.xpose.msrb.mxu3 %v231_v41 }
 0x27c   :  { %v393_v62 = vpop.f32.mrf.mxu0 }
 0x27d   :  { %v394_v0 = vadd.f32 %v2548_v53, %v393_v62  ;;  %v1273_v62 = vperm.slane %v674_v58, 0 }
 0x27e   :  { %v310_v44 = vpop.f32.mrf.mxu3 }
 0x27f   :  { %v341_v45 = vadd.f32 %v340_v42, %v310_v44  ;;  %v397_v2 = vmax.f32 %v394_v0, 0.0  ;;  %v1301_v0 = vperm.slane %v674_v58, 4 }
 0x281   :  { %v348_v46 = vadd.f32 %v2547_v43, %v341_v45  ;;  %544 = vmatmul.f32.gmra.mxu0 %v397_v2  ;;  %v1322_v2 = vperm.slane %v674_v58, 7 }
 0x283   :  { %v350_v47 = vmax.f32 %v348_v46, 0.0  ;;  %v2550_v46 = vld [vmem:[%s3934_s9 + $0x5] ss:$0 sm:$0xff] }
 0x285   :  { %447 = vmatmul.f32.vlgmr.msrb.gmra.mxu2 %v350_v47  ;;  %470 = vmatmul.f32.vlgmr.msra.gmra.mxu3 %v350_v47 }
 0x286   :  { %v313_v49 = vpop.f32.mrf.mxu3 }
 0x287   :  { %v344_v50 = vadd.f32 %v343_v48, %v313_v49 }
 0x289   :  { %v349_v51 = vadd.f32 %v2547_v43, %v344_v50  ;;  %v1217_v43 = vperm.slane %v673_v37, 0  ;;  %v1245_v50 = vperm.slane %v673_v37, 4 }
 0x28b   :  { %v351_v52 = vmax.f32 %v349_v51, 0.0  ;;  %1222 = vperm.xlu0 %2539, %v1217_v43   ;;  %v1238_v51 = vperm.slane %v673_v37, 3  ;;  %1250 = vperm.xlu1 %2540, %v1245_v50   ;;  %v644_v50 = vld [vmem:[%s3930_s5 + $0xc] sm:$0xf] }
 0x28d   :  { %450 = vmatmul.f32.gmra.mxu2 %v351_v52  ;;  %473 = vmatmul.f32.gmra.mxu3 %v351_v52  ;;  %v1266_v52 = vperm.slane %v673_v37, 7 }
 0x28e   :  { %1243 = vperm.xlu2 %2541, %v1238_v51  }
 0x293   :  { %1271 = vperm.xlu0 %2539, %v1266_v52   ;;  %1264 = vperm.xlu1 %2540, %v1259_v56  }
 0x296   :  { %1257 = vperm.xlu2 %2541, %v1252_v57  }
 0x29b   :  { %1292 = vperm.xlu0 %2539, %v1287_v59   ;;  %1285 = vperm.xlu1 %2540, %v1280_v61   ;;  %v647_v59 = vld [vmem:[%s3930_s5 + $0x18] sm:$0xf] }
 0x29e   :  { %1278 = vperm.xlu2 %2541, %v1273_v62  }
 0x2a3   :  { %1313 = vperm.xlu0 %2539, %v1308_v63   ;;  %1306 = vperm.xlu1 %2540, %v1301_v0  }
 0x2a6   :  { %1299 = vperm.xlu2 %2541, %v1294_v1  }
 0x2ab   :  { %1327 = vperm.xlu1 %2540, %v1322_v2   ;;  %1334 = vperm.xlu0 %2539, %v1329_v5   ;;  %v648_v2 = vld [vmem:[%s3930_s5 + $0x1c] sm:$0xf] }
 0x2b3   :  { %1348 = vperm.xlu1 %2540, %v1343_v6  }
 0x2bb   :  { %1369 = vperm.xlu1 %2540, %v1364_v9  }
 0x2eb   :  { %v2980_v61 = vpop.permute.xlu1 %1229 }
 0x2f6   :  { %v542_v47 = vpop.f32.mrf.mxu0 }
 0x2f7   :  { %v543_v49 = vadd.f32 %v2550_v46, %v542_v47 }
 0x2f9   :  { %v548_v53 = vmax.f32 %v543_v49, 0.0  ;;  %v646_v49 = vld [vmem:[%s3930_s5 + $0x14] sm:$0xf] }
 0x2fe   :  { %v545_v54 = vpop.f32.mrf.mxu0 }
 0x2ff   :  { %v546_v55 = vadd.f32 %v2550_v46, %v545_v54 }
 0x301   :  { %v549_v60 = vmax.f32 %v546_v55, 0.0 }
 0x308   :  { %v448_v3 = vpop.f32.mrf.mxu2  ;;  %v471_v30 = vpop.f32.mrf.mxu3 }
 0x310   :  { %v451_v8 = vpop.f32.mrf.mxu2  ;;  %v474_v41 = vpop.f32.mrf.mxu3 }
 0x311   :  { %491 = vmatpush.msrb.mxu1 %v451_v8  ;;  %v1350_v8 = vperm.slane %v675_v4, 3 }
 0x313   :  { %492 = vmatpush.msrb.mxu1 %v448_v3  ;;  %v1315_v3 = vperm.slane %v674_v58, 6  ;;  %1355 = vperm.xlu0 %2539, %v1350_v8  }
 0x314   :  { %2508 = vmatmul.msk.f32.vlgmr.msrb.gmra.mxu1 %vm316_vm1, %v2896_v12  ;;  %v564_v12 = vld [vmem:[#allocation5 + $0x268] sm:$0xff] }
 0x315   :  { %612 = vmatpush.msra.mxu1 %v582_v10  ;;  %1320 = vperm.xlu2 %2541, %v1315_v3   ;;  %v1357_v10 = vperm.slane %v675_v4, 4  ;;  %v649_v3 = vld [vmem:[%s3930_s5 + $0x20] sm:$0xf] }
 0x317   :  { %613 = vmatpush.msra.mxu1 %v580_v11  ;;  %v1371_v11 = vperm.slane %v675_v4, 6 }
 0x319   :  { %614 = vmatpush.msra.mxu1 %v578_v13  ;;  %v676_v13 = vld [vmem:[%s3931_s6 + $0x18] sm:$0xff] }
 0x31b   :  { %615 = vmatpush.msra.mxu1 %v576_v14  ;;  %v1385_v14 = vperm.slane %v676_v13, 0  ;;  %1376 = vperm.xlu0 %2539, %v1371_v11  }
 0x31c   :  { %2509 = vmatmul.msk.f32.gmra.mxu1 %vm316_vm1, %v2905_v17  ;;  %v555_v17 = vld [vmem:[#allocation5 + $0x220] sm:$0xff] }
 0x31d   :  { %616 = vmatpush.msra.mxu1 %v574_v15  ;;  %596 = vmatpush.msra.mxu2 %v555_v17  ;;  %v1378_v15 = vperm.slane %v675_v4, 7 }
 0x31e   :  { %1341 = vperm.xlu2 %2541, %v1336_v7   ;;  %1390 = vperm.xlu1 %2540, %v1385_v14   ;;  %v2998_v14 = vpop.permute.xlu0 %1222 }
 0x31f   :  { %617 = vmatpush.msra.mxu1 %v572_v16  ;;  %597 = vmatpush.msra.mxu2 %v553_v26  ;;  %v1392_v16 = vperm.slane %v676_v13, 1 }
 0x321   :  { %618 = vmatpush.msra.mxu1 %v570_v18  ;;  %598 = vmatpush.msra.mxu2 %v551_v28  ;;  %v1406_v18 = vperm.slane %v676_v13, 3 }
 0x323   :  { %619 = vmatpush.msra.mxu1 %v568_v19  ;;  %1397 = vperm.xlu0 %2539, %v1392_v16   ;;  %v1399_v19 = vperm.slane %v676_v13, 2 }
 0x325   :  { %620 = vmatpush.msra.mxu1 %v566_v20  ;;  %v1413_v20 = vperm.slane %v676_v13, 4 }
 0x326   :  { %1362 = vperm.xlu2 %2541, %v1357_v10   ;;  %1411 = vperm.xlu1 %2540, %v1406_v18  }
 0x327   :  { %621 = vmatpush.msra.mxu1 %v564_v12  ;;  %v1427_v12 = vperm.slane %v676_v13, 6 }
 0x329   :  { %622 = vmatpush.msra.mxu1 %v562_v21  ;;  %v1420_v21 = vperm.slane %v676_v13, 5 }
 0x32b   :  { %623 = vmatpush.msra.mxu1 %v560_v22  ;;  %1418 = vperm.xlu0 %2539, %v1413_v20   ;;  %v1434_v22 = vperm.slane %v676_v13, 7  ;;  %v650_v13 = vld [vmem:[%s3930_s5 + $0x24] sm:$0xf]  ;;  %v652_v20 = vld [vmem:[%s3930_s5 + $0x2c] sm:$0xf] }
 0x32d   :  { %624 = vmatpush.msra.mxu1 %v558_v24 }
 0x32e   :  { %1383 = vperm.xlu2 %2541, %v1378_v15   ;;  %1432 = vperm.xlu1 %2540, %v1427_v12   ;;  %v651_v12 = vld [vmem:[%s3930_s5 + $0x28] sm:$0xf] }
 0x32f   :  { %625 = vmatpush.msra.mxu1 %v556_v25 }
 0x331   :  { %626 = vmatpush.msra.mxu1 %v554_v27  ;;  %v641_v27 = vld [vmem:[%s3930_s5] sm:$0xf] }
 0x333   :  { %627 = vmatpush.msra.mxu1 %v552_v29  ;;  %1439 = vperm.xlu0 %2539, %v1434_v22   ;;  %v3010_v22 = vpop.permute.xlu1 %1250 }
 0x336   :  { %1404 = vperm.xlu2 %2541, %v1399_v19  }
 0x33e   :  { %1425 = vperm.xlu2 %2541, %v1420_v21  }
 0x391   :  { %v494_v33 = vpop.f32.mrf.mxu1 }
 0x392   :  { %v495_v34 = vadd.f32 %v494_v33, %v471_v30  ;;  %v645_v33 = vld [vmem:[%s3930_s5 + $0x10] sm:$0xf] }
 0x394   :  { %v502_v36 = vadd.f32 %v2549_v31, %v495_v34  ;;  %v643_v34 = vld [vmem:[%s3930_s5 + $0x8] sm:$0xf] }
 0x396   :  { %v504_v38 = vmax.f32 %v502_v36, 0.0 }
 0x398   :  { %599 = vmatmul.f32.vlgmr.msra.gmra.mxu2 %v504_v38  ;;  %628 = vmatmul.f32.vlgmr.msra.gmra.mxu1 %v504_v38 }
 0x399   :  { %v497_v42 = vpop.f32.mrf.mxu1 }
 0x39a   :  { %v498_v44 = vadd.f32 %v497_v42, %v474_v41 }
 0x39c   :  { %v503_v45 = vadd.f32 %v2549_v31, %v498_v44  ;;  %v642_v44 = vld [vmem:[%s3930_s5 + $0x4] sm:$0xf] }
 0x39e   :  { %v505_v48 = vmax.f32 %v503_v45, 0.0 }
 0x3a0   :  { %602 = vmatmul.f32.gmra.mxu2 %v505_v48  ;;  %631 = vmatmul.f32.gmra.mxu1 %v505_v48 }
 0x3a8   :  { %605 = vmatmul.f32.gmra.mxu2 %v548_v53  ;;  %634 = vmatmul.f32.gmra.mxu1 %v548_v53 }
 0x3b0   :  { %608 = vmatmul.f32.gmra.mxu2 %v549_v60  ;;  %637 = vmatmul.f32.gmra.mxu1 %v549_v60  ;;  %v2978_v60 = vpop.permute.xlu2 %1236 }
 0x3b8   :  { %v3008_v21 = vpop.permute.xlu2 %1243 }
 0x41b   :  { %v600_v23 = vpop.f32.mrf.mxu2 }
 0x41c   :  { %693 = vmatmul.f32.vlgmr.msrb.gmra.mxu3 %v600_v23 }
 0x423   :  { %v603_v24 = vpop.f32.mrf.mxu2 }
 0x424   :  { %696 = vmatmul.f32.gmra.mxu3 %v603_v24 }
 0x42b   :  { %v606_v17 = vpop.f32.mrf.mxu2 }
 0x42c   :  { %699 = vmatmul.f32.gmra.mxu3 %v606_v17 }
 0x433   :  { %v609_v25 = vpop.f32.mrf.mxu2 }
 0x434   :  { %702 = vmatmul.f32.gmra.mxu3 %v609_v25 }
 0x49f   :  { %v694_v26 = vpop.f32.mrf.mxu3 }
 0x4a0   :  { %v738_v28 = vperm.slane %v694_v26, 0  ;;  %v713_v29 = vrot.slane %v694_v26, 4  ;;  %v711_v30 = vrot.slane %v694_v26, 2  ;;  %v710_v31 = vrot.slane %v694_v26, 1 }
 0x4a1   :  { %v714_v35 = vrot.slane %v694_v26, 5  ;;  %v712_v39 = vrot.slane %v694_v26, 3  ;;  %v715_v52 = vrot.slane %v694_v26, 6  ;;  %v716_v55 = vrot.slane %v694_v26, 7 }
 0x4a2   :  { %v802_v36 = vmul.f32 %v738_v28, %v641_v27  ;;  %v742_v37 = vperm.slane %v713_v29, 0  ;;  %v740_v38 = vperm.slane %v711_v30, 0  ;;  %v739_v43 = vperm.slane %v710_v31, 0  ;;  %v653_v30 = vld [vmem:[%s3930_s5 + $0x30] sm:$0xf] }
 0x4a3   :  { %v743_v47 = vperm.slane %v714_v35, 0  ;;  %v741_v48 = vperm.slane %v712_v39, 0  ;;  %v744_v58 = vperm.slane %v715_v52, 0  ;;  %v745_v0 = vperm.slane %v716_v55, 0  ;;  %v3029_v39 = vpop.permute.xlu0 %1271  ;;  %v657_v52 = vld [vmem:[%s3930_s5 + $0x40] sm:$0xf] }
 0x4a4   :  { %v835_v40 = vsel %vm834_vm2, %v802_v36, 0.0  ;;  %v806_v41 = vmul.f32 %v742_v37, %v645_v33  ;;  %v804_v42 = vmul.f32 %v740_v38, %v643_v34  ;;  %v803_v51 = vmul.f32 %v739_v43, %v642_v44  ;;  %v655_v37 = vld [vmem:[%s3930_s5 + $0x38] sm:$0xf]  ;;  %v654_v38 = vld [vmem:[%s3930_s5 + $0x34] sm:$0xf]  ;;  %v3033_v43 = vpop.permute.xlu2 %1257  ;;  %v3035_v44 = vpop.permute.xlu1 %1264 }
 0x4a5   :  { %836 = vadd.xlane.f32.xlu0 %v835_v40  ;;  %v807_v53 = vmul.f32 %v743_v47, %v646_v49  ;;  %v805_v54 = vmul.f32 %v741_v48, %v644_v50  ;;  %v808_v4 = vmul.f32 %v744_v58, %v647_v59  ;;  %v809_v6 = vmul.f32 %v745_v0, %v648_v2 }
 0x4a6   :  { %v847_v45 = vsel %vm834_vm2, %v806_v41, 0.0  ;;  %v841_v46 = vsel %vm834_vm2, %v804_v42, 0.0  ;;  %v838_v57 = vsel %vm834_vm2, %v803_v51, 0.0  ;;  %v656_v51 = vld [vmem:[%s3930_s5 + $0x3c] sm:$0xf] }
 0x4a7   :  { %848 = vadd.xlane.f32.xlu2 %v847_v45  ;;  %842 = vadd.xlane.f32.xlu1 %v841_v46  ;;  %v2972_v56 = vpop.f32.mrf.mxu3  ;;  %v850_v62 = vsel %vm834_vm2, %v807_v53, 0.0  ;;  %v844_v63 = vsel %vm834_vm2, %v805_v54, 0.0  ;;  %v853_v10 = vsel %vm834_vm2, %v808_v4, 0.0  ;;  %v856_v15 = vsel %vm834_vm2, %v809_v6, 0.0  ;;  %v658_v53 = vld [vmem:[%s3930_s5 + $0x44] sm:$0xf] }
 0x4a8   :  { %v746_v1 = vperm.slane %v2972_v56, 0  ;;  %v717_v5 = vrot.slane %v2972_v56, 1  ;;  %v719_v8 = vrot.slane %v2972_v56, 3  ;;  %v718_v9 = vrot.slane %v2972_v56, 2 }
 0x4a9   :  { %v720_v24 = vrot.slane %v2972_v56, 4  ;;  %v722_v26 = vrot.slane %v2972_v56, 6  ;;  %v721_v27 = vrot.slane %v2972_v56, 5  ;;  %v723_v41 = vrot.slane %v2972_v56, 7 }
 0x4aa   :  { %v810_v7 = vmul.f32 %v746_v1, %v649_v3  ;;  %v747_v11 = vperm.slane %v717_v5, 0  ;;  %v749_v18 = vperm.slane %v719_v8, 0  ;;  %v748_v19 = vperm.slane %v718_v9, 0 }
 0x4ab   :  { %v750_v29 = vperm.slane %v720_v24, 0  ;;  %v752_v35 = vperm.slane %v722_v26, 0  ;;  %v751_v36 = vperm.slane %v721_v27, 0  ;;  %v753_v48 = vperm.slane %v723_v41, 0 }
 0x4ac   :  { %v859_v16 = vsel %vm834_vm2, %v810_v7, 0.0  ;;  %v811_v23 = vmul.f32 %v747_v11, %v650_v13  ;;  %v813_v17 = vmul.f32 %v749_v18, %v652_v20  ;;  %v812_v25 = vmul.f32 %v748_v19, %v651_v12  ;;  %v3055_v1 = vpop.permute.xlu2 %1278  ;;  %v3057_v2 = vpop.permute.xlu1 %1285  ;;  %v659_v7 = vld [vmem:[%s3930_s5 + $0x48] sm:$0xf]  ;;  %v661_v11 = vld [vmem:[%s3930_s5 + $0x50] sm:$0xf] }
 0x4ad   :  { %839 = vadd.xlane.f32.xlu0 %v838_v57  ;;  %v814_v40 = vmul.f32 %v750_v29, %v653_v30  ;;  %v816_v45 = vmul.f32 %v752_v35, %v655_v37  ;;  %v815_v46 = vmul.f32 %v751_v36, %v654_v38  ;;  %v817_v56 = vmul.f32 %v753_v48, %v656_v51  ;;  %v666_v48 = vld [vmem:[%s3930_s5 + $0x64] sm:$0xf] }
 0x4ae   :  { %v862_v28 = vsel %vm834_vm2, %v811_v23, 0.0  ;;  %v868_v33 = vsel %vm834_vm2, %v813_v17, 0.0  ;;  %v865_v34 = vsel %vm834_vm2, %v812_v25, 0.0  ;;  %v662_v17 = vld [vmem:[%s3930_s5 + $0x54] sm:$0xf] }
 0x4af   :  { %851 = vadd.xlane.f32.xlu2 %v850_v62  ;;  %845 = vadd.xlane.f32.xlu1 %v844_v63  ;;  %v3019_v31 = vpop.f32.mrf.mxu3  ;;  %v871_v47 = vsel %vm834_vm2, %v814_v40, 0.0  ;;  %v877_v54 = vsel %vm834_vm2, %v816_v45, 0.0  ;;  %v874_v55 = vsel %vm834_vm2, %v815_v46, 0.0  ;;  %v3051_v62 = vpop.permute.xlu0 %1292  ;;  %v880_v3 = vsel %vm834_vm2, %v817_v56, 0.0 }
 0x4b0   :  { %v724_v42 = vrot.slane %v3019_v31, 1  ;;  %v754_v49 = vperm.slane %v3019_v31, 0  ;;  %v725_v59 = vrot.slane %v3019_v31, 2  ;;  %v726_v63 = vrot.slane %v3019_v31, 3 }
 0x4b1   :  { %v727_v0 = vrot.slane %v3019_v31, 4  ;;  %v729_v19 = vrot.slane %v3019_v31, 6  ;;  %v730_v20 = vrot.slane %v3019_v31, 7 }
 0x4b2   :  { %v755_v50 = vperm.slane %v724_v42, 0  ;;  %v818_v57 = vmul.f32 %v754_v49, %v657_v52  ;;  %v756_v6 = vperm.slane %v725_v59, 0  ;;  %v757_v8 = vperm.slane %v726_v63, 0  ;;  %v665_v42 = vld [vmem:[%s3930_s5 + $0x60] sm:$0xf] }
 0x4b3   :  { %v758_v9 = vperm.slane %v727_v0, 0  ;;  %v760_v30 = vperm.slane %v729_v19, 0  ;;  %v667_v49 = vld [vmem:[%s3930_s5 + $0x68] sm:$0xf] }
 0x4b4   :  { %v819_v58 = vmul.f32 %v755_v50, %v658_v53  ;;  %v883_v4 = vsel %vm834_vm2, %v818_v57, 0.0  ;;  %v820_v13 = vmul.f32 %v756_v6, %v659_v7  ;;  %v3082_v26 = vpop.permute.xlu2 %1299  ;;  %v3084_v27 = vpop.permute.xlu1 %1306  ;;  %v668_v6 = vld [vmem:[%s3930_s5 + $0x6c] sm:$0xf] }
 0x4b5   :  { %854 = vadd.xlane.f32.xlu0 %v853_v10  ;;  %v660_v10 = vld [vmem:[%s3930_s5 + $0x4c] sm:$0xf]  ;;  %v822_v18 = vmul.f32 %v758_v9, %v661_v11  ;;  %v669_v9 = vld [vmem:[%s3930_s5 + $0x70] sm:$0xf] }
 0x4b6   :  { %v886_v5 = vsel %vm834_vm2, %v819_v58, 0.0  ;;  %v889_v23 = vsel %vm834_vm2, %v820_v13, 0.0 }
 0x4b7   :  { %857 = vadd.xlane.f32.xlu1 %v856_v15  ;;  %860 = vadd.xlane.f32.xlu2 %v859_v16  ;;  %v728_v15 = vrot.slane %v3019_v31, 5  ;;  %v821_v16 = vmul.f32 %v757_v8, %v660_v10  ;;  %v3074_v12 = vpop.permute.xlu0 %1313  ;;  %v3080_v25 = vpop.f32.mrf.mxu3  ;;  %v895_v29 = vsel %vm834_vm2, %v822_v18, 0.0  ;;  %v761_v31 = vperm.slane %v730_v20, 0  ;;  %v670_v10 = vld [vmem:[%s3930_s5 + $0x74] sm:$0xf] }
 0x4b8   :  { %v731_v36 = vrot.slane %v3080_v25, 1  ;;  %v732_v37 = vrot.slane %v3080_v25, 2  ;;  %v762_v41 = vperm.slane %v3080_v25, 0  ;;  %v733_v58 = vrot.slane %v3080_v25, 3 }
 0x4b9   :  { %v759_v24 = vperm.slane %v728_v15, 0  ;;  %v734_v63 = vrot.slane %v3080_v25, 4  ;;  %v735_v0 = vrot.slane %v3080_v25, 5  ;;  %v736_v15 = vrot.slane %v3080_v25, 6 }
 0x4ba   :  { %v763_v46 = vperm.slane %v731_v36, 0  ;;  %v826_v53 = vmul.f32 %v762_v41, %v665_v42 }
 0x4bb   :  { %v823_v35 = vmul.f32 %v759_v24, %v662_v17  ;;  %v766_v7 = vperm.slane %v734_v63, 0  ;;  %v767_v8 = vperm.slane %v735_v0, 0  ;;  %v768_v17 = vperm.slane %v736_v15, 0 }
 0x4bc   :  { %v827_v56 = vmul.f32 %v763_v46, %v666_v48  ;;  %v907_v59 = vsel %vm834_vm2, %v826_v53, 0.0 }
 0x4bd   :  { %863 = vadd.xlane.f32.xlu0 %v862_v28  ;;  %v892_v28 = vsel %vm834_vm2, %v821_v16, 0.0  ;;  %v898_v45 = vsel %vm834_vm2, %v823_v35, 0.0  ;;  %v830_v19 = vmul.f32 %v766_v7, %v669_v9  ;;  %v831_v20 = vmul.f32 %v767_v8, %v670_v10 }
 0x4bf   :  { %869 = vadd.xlane.f32.xlu2 %v868_v33  ;;  %866 = vadd.xlane.f32.xlu1 %v865_v34  ;;  %v663_v33 = vld [vmem:[%s3930_s5 + $0x58] sm:$0xf]  ;;  %v664_v34 = vld [vmem:[%s3930_s5 + $0x5c] sm:$0xf]  ;;  %v3107_v50 = vpop.permute.xlu0 %1334 }
 0x4c0   :  { %v824_v38 = vmul.f32 %v760_v30, %v663_v33  ;;  %v825_v40 = vmul.f32 %v761_v31, %v664_v34  ;;  %v922_v30 = vsel %vm834_vm2, %v831_v20, 0.0  ;;  %v672_v33 = vld [vmem:[%s3930_s5 + $0x7c] sm:$0xf] }
 0x4c2   :  { %v901_v51 = vsel %vm834_vm2, %v824_v38, 0.0  ;;  %v904_v52 = vsel %vm834_vm2, %v825_v40, 0.0 }
 0x4c5   :  { %872 = vadd.xlane.f32.xlu0 %v871_v47  ;;  %v764_v47 = vperm.slane %v732_v37, 0 }
 0x4c7   :  { %878 = vadd.xlane.f32.xlu2 %v877_v54  ;;  %875 = vadd.xlane.f32.xlu1 %v874_v55  ;;  %v3111_v54 = vpop.permute.xlu2 %1320  ;;  %v3113_v55 = vpop.permute.xlu1 %1327  ;;  %v828_v57 = vmul.f32 %v764_v47, %v667_v49 }
 0x4c8   :  { %v3130_v11 = vpop.permute.xlu0 %1355 }
 0x4cd   :  { %881 = vadd.xlane.f32.xlu0 %v880_v3  ;;  %v910_v3 = vsel %vm834_vm2, %v827_v56, 0.0 }
 0x4cf   :  { %884 = vadd.xlane.f32.xlu1 %v883_v4  ;;  %887 = vadd.xlane.f32.xlu2 %v886_v5  ;;  %v913_v4 = vsel %vm834_vm2, %v828_v57, 0.0  ;;  %v765_v5 = vperm.slane %v733_v58, 0  ;;  %v3133_v16 = vpop.permute.xlu2 %1341  ;;  %v3135_v18 = vpop.permute.xlu1 %1348  ;;  %v3180_v58 = vand.u32 127, %v963_v32 }
 0x4d0   :  { %v3147_v34 = vpop.permute.xlu0 %1376 }
 0x4d1   :  { %v829_v13 = vmul.f32 %v765_v5, %v668_v6  ;;  %3945 = vst [vmem:[#allocation14_spill] sm:$0xff] %v3147_v34 }
 0x4d2   :  { %3957 = vst [vmem:[#allocation26_spill] sm:$0xff] %v3180_v58 }
 0x4d3   :  { %v916_v24 = vsel %vm834_vm2, %v829_v13, 0.0 }
 0x4d5   :  { %890 = vadd.xlane.f32.xlu0 %v889_v23  ;;  %v737_v23 = vrot.slane %v3080_v25, 7 }
 0x4d7   :  { %893 = vadd.xlane.f32.xlu1 %v892_v28  ;;  %896 = vadd.xlane.f32.xlu2 %v895_v29  ;;  %v671_v28 = vld [vmem:[%s3930_s5 + $0x78] sm:$0xf]  ;;  %v919_v29 = vsel %vm834_vm2, %v830_v19, 0.0  ;;  %v769_v31 = vperm.slane %v737_v23, 0  ;;  %v3149_v36 = vpop.permute.xlu2 %1362  ;;  %v3151_v37 = vpop.permute.xlu1 %1369 }
 0x4d8   :  { %v832_v25 = vmul.f32 %v768_v17, %v671_v28  ;;  %3946 = vst [vmem:[#allocation15_spill] sm:$0xff] %v3149_v36  ;;  %v3155_v41 = vpop.permute.xlu0 %1397 }
 0x4d9   :  { %v833_v35 = vmul.f32 %v769_v31, %v672_v33  ;;  %3947 = vst [vmem:[#allocation16_spill] sm:$0xff] %v3151_v37 }
 0x4da   :  { %v925_v38 = vsel %vm834_vm2, %v832_v25, 0.0  ;;  %3948 = vst [vmem:[#allocation17_spill] sm:$0xff] %v3155_v41 }
 0x4db   :  { %v928_v40 = vsel %vm834_vm2, %v833_v35, 0.0 }
 0x4dd   :  { %899 = vadd.xlane.f32.xlu0 %v898_v45 }
 0x4df   :  { %902 = vadd.xlane.f32.xlu1 %v901_v51  ;;  %905 = vadd.xlane.f32.xlu2 %v904_v52  ;;  %v3157_v42 = vpop.permute.xlu2 %1383  ;;  %v3159_v45 = vpop.permute.xlu1 %1390 }
 0x4e0   :  { %3949 = vst [vmem:[#allocation18_spill] sm:$0xff] %v3157_v42  ;;  %v3161_v46 = vpop.permute.xlu0 %1418 }
 0x4e1   :  { %3950 = vst [vmem:[#allocation19_spill] sm:$0xff] %v3159_v45 }
 0x4e2   :  { %3951 = vst [vmem:[#allocation20_spill] sm:$0xff] %v3161_v46 }
 0x4e5   :  { %908 = vadd.xlane.f32.xlu0 %v907_v59 }
 0x4e7   :  { %911 = vadd.xlane.f32.xlu1 %v910_v3  ;;  %914 = vadd.xlane.f32.xlu2 %v913_v4  ;;  %v3163_v47 = vpop.permute.xlu2 %1404  ;;  %v3165_v48 = vpop.permute.xlu1 %1411 }
 0x4e8   :  { %3952 = vst [vmem:[#allocation21_spill] sm:$0xff] %v3163_v47  ;;  %v3167_v49 = vpop.permute.xlu0 %1439 }
 0x4e9   :  { %3953 = vst [vmem:[#allocation22_spill] sm:$0xff] %v3165_v48 }
 0x4ea   :  { %3954 = vst [vmem:[#allocation23_spill] sm:$0xff] %v3167_v49 }
 0x4ed   :  { %917 = vadd.xlane.f32.xlu0 %v916_v24 }
 0x4ef   :  { %920 = vadd.xlane.f32.xlu1 %v919_v29  ;;  %923 = vadd.xlane.f32.xlu2 %v922_v30  ;;  %v3169_v51 = vpop.permute.xlu2 %1425  ;;  %v3171_v52 = vpop.permute.xlu1 %1432 }
 0x4f0   :  { %3955 = vst [vmem:[#allocation24_spill] sm:$0xff] %v3169_v51 }
 0x4f1   :  { %3956 = vst [vmem:[#allocation25_spill] sm:$0xff] %v3171_v52 }
 0x4f5   :  { %926 = vadd.xlane.f32.xlu0 %v925_v38 }
 0x4f7   :  { %929 = vadd.xlane.f32.xlu1 %v928_v40 }
 0x518   :  { %v3173_v53 = vpop.xlane.xlu0 %836 }
 0x519   :  { %v965_v63 = vperm.slane %v3173_v53, %v3180_v58 }
 0x51a   :  { %v3175_v56 = vpop.xlane.xlu2 %848  ;;  %v3177_v57 = vpop.xlane.xlu1 %842 }
 0x51b   :  { %v967_v3 = vperm.slane %v3177_v57, %v3180_v58  ;;  %v969_v8 = vperm.slane %v3175_v56, %v3180_v58 }
 0x520   :  { %v3182_v59 = vpop.xlane.xlu0 %839 }
 0x521   :  { %v966_v0 = vperm.slane %v3182_v59, %v3180_v58 }
 0x522   :  { %v3190_v4 = vpop.xlane.xlu2 %851  ;;  %v3192_v5 = vpop.xlane.xlu1 %845 }
 0x523   :  { %v998_v32 = vsel %vm997_vm3, %v966_v0, %v965_v63  ;;  %v968_v6 = vperm.slane %v3192_v5, %v3180_v58  ;;  %v970_v13 = vperm.slane %v3190_v4, %v3180_v58 }
 0x524   :  { %v1000_v7 = vsel %vm999_vm4, %v967_v3, %v998_v32 }
 0x525   :  { %v1002_v9 = vsel %vm1001_vm5, %v968_v6, %v1000_v7 }
 0x526   :  { %v1004_v10 = vsel %vm1003_vm6, %v969_v8, %v1002_v9 }
 0x527   :  { %v1006_v24 = vsel %vm1005_vm7, %v970_v13, %v1004_v10 }
 0x528   :  { %v3204_v15 = vpop.xlane.xlu0 %854 }
 0x529   :  { %v971_v19 = vperm.slane %v3204_v15, %v3180_v58 }
 0x52a   :  { %v3208_v20 = vpop.xlane.xlu1 %857  ;;  %v3210_v23 = vpop.xlane.xlu2 %860 }
 0x52b   :  { %v972_v17 = vperm.slane %v3208_v20, %v3180_v58  ;;  %v1008_v28 = vsel %vm1007_vm8, %v971_v19, %v1006_v24  ;;  %v973_v38 = vperm.slane %v3210_v23, %v3180_v58 }
 0x52d   :  { %v1010_v29 = vsel %vm1009_vm9, %v972_v17, %v1008_v28 }
 0x52e   :  { %v1037_v30 = vsel %vm1036_vm10, %v1010_v29, -inf }
 0x52f   :  { %1038 = vmax.xlane.f32.xlu2 %v1037_v30 }
 0x530   :  { %v3218_v31 = vpop.xlane.xlu0 %863 }
 0x531   :  { %v974_v33 = vperm.slane %v3218_v31, %v3180_v58 }
 0x532   :  { %v3222_v25 = vpop.xlane.xlu2 %869  ;;  %v3224_v35 = vpop.xlane.xlu1 %866 }
 0x533   :  { %v975_v40 = vperm.slane %v3224_v35, %v3180_v58  ;;  %v1011_v63 = vsel %vm997_vm3, %v974_v33, %v973_v38  ;;  %v976_v0 = vperm.slane %v3222_v25, %v3180_v58 }
 0x535   :  { %v1012_v3 = vsel %vm999_vm4, %v975_v40, %v1011_v63 }
 0x536   :  { %v1013_v9 = vsel %vm1001_vm5, %v976_v0, %v1012_v3 }
 0x538   :  { %v3234_v32 = vpop.xlane.xlu0 %872 }
 0x539   :  { %v977_v6 = vperm.slane %v3234_v32, %v3180_v58 }
 0x53a   :  { %v3238_v7 = vpop.xlane.xlu2 %878  ;;  %v3240_v8 = vpop.xlane.xlu1 %875 }
 0x53b   :  { %v978_v10 = vperm.slane %v3240_v8, %v3180_v58  ;;  %v1014_v13 = vsel %vm1003_vm6, %v977_v6, %v1013_v9  ;;  %v979_v19 = vperm.slane %v3238_v7, %v3180_v58 }
 0x53d   :  { %v1015_v24 = vsel %vm1005_vm7, %v978_v10, %v1014_v13 }
 0x53e   :  { %v1016_v33 = vsel %vm1007_vm8, %v979_v19, %v1015_v24 }
 0x540   :  { %v3249_v17 = vpop.xlane.xlu0 %881 }
 0x541   :  { %v980_v28 = vperm.slane %v3249_v17, %v3180_v58 }
 0x542   :  { %v3253_v29 = vpop.xlane.xlu1 %884  ;;  %v3255_v30 = vpop.xlane.xlu2 %887 }
 0x543   :  { %v1017_v38 = vsel %vm1009_vm9, %v980_v28, %v1016_v33  ;;  %v981_v63 = vperm.slane %v3253_v29, %v3180_v58  ;;  %v982_v0 = vperm.slane %v3255_v30, %v3180_v58 }
 0x544   :  { %v1040_v40 = vsel %vm1036_vm10, %v1017_v38, -inf }
 0x545   :  { %1041 = vmax.xlane.f32.xlu0 %v1040_v40  ;;  %v1018_v13 = vsel %vm997_vm3, %v982_v0, %v981_v63 }
 0x548   :  { %v3264_v3 = vpop.xlane.xlu0 %890 }
 0x549   :  { %v983_v6 = vperm.slane %v3264_v3, %v3180_v58 }
 0x54a   :  { %v3268_v9 = vpop.xlane.xlu1 %893  ;;  %v3270_v10 = vpop.xlane.xlu2 %896 }
 0x54b   :  { %v984_v19 = vperm.slane %v3268_v9, %v3180_v58  ;;  %v1019_v24 = vsel %vm999_vm4, %v983_v6, %v1018_v13  ;;  %v985_v28 = vperm.slane %v3270_v10, %v3180_v58 }
 0x54d   :  { %v1020_v33 = vsel %vm1001_vm5, %v984_v19, %v1019_v24 }
 0x54e   :  { %v1021_v51 = vsel %vm1003_vm6, %v985_v28, %v1020_v33 }
 0x550   :  { %v3279_v38 = vpop.xlane.xlu0 %899 }
 0x551   :  { %v986_v40 = vperm.slane %v3279_v38, %v3180_v58 }
 0x552   :  { %v3284_v49 = vpop.xlane.xlu1 %902  ;;  %v3286_v63 = vpop.xlane.xlu2 %905 }
 0x553   :  { %v987_v0 = vperm.slane %v3284_v49, %v3180_v58  ;;  %v988_v6 = vperm.slane %v3286_v63, %v3180_v58  ;;  %v1022_v13 = vsel %vm1005_vm7, %v986_v40, %v1021_v51 }
 0x555   :  { %v1023_v19 = vsel %vm1007_vm8, %v987_v0, %v1022_v13 }
 0x556   :  { %v1024_v24 = vsel %vm1009_vm9, %v988_v6, %v1023_v19 }
 0x557   :  { %v1043_v52 = vsel %vm1036_vm10, %v1024_v24, -inf }
 0x558   :  { %v3296_v47 = vpop.xlane.xlu0 %908  ;;  %1044 = vmax.xlane.f32.xlu1 %v1043_v52 }
 0x559   :  { %v989_v48 = vperm.slane %v3296_v47, %v3180_v58 }
 0x55a   :  { %v3298_v28 = vpop.xlane.xlu1 %911  ;;  %v3300_v33 = vpop.xlane.xlu2 %914 }
 0x55b   :  { %3958 = vst [vmem:[#allocation27_spill] sm:$0xff] %v3300_v33  ;;  %v990_v46 = vperm.slane %v3298_v28, %v3180_v58  ;;  %v991_v51 = vperm.slane %v3300_v33, %v3180_v58 }
 0x55d   :  { %v1025_v40 = vsel %vm997_vm3, %v990_v46, %v989_v48 }
 0x55e   :  { %v1026_v13 = vsel %vm999_vm4, %v991_v51, %v1025_v40 }
 0x560   :  { %v3309_v0 = vpop.xlane.xlu0 %917 }
 0x561   :  { %3959 = vst [vmem:[#allocation28_spill] sm:$0xff] %v3309_v0  ;;  %v992_v52 = vperm.slane %v3309_v0, %v3180_v58 }
 0x562   :  { %v3313_v6 = vpop.xlane.xlu1 %920  ;;  %v3318_v24 = vpop.xlane.xlu2 %923 }
 0x563   :  { %3960 = vst [vmem:[#allocation29_spill] sm:$0xff] %v3313_v6  ;;  %v993_v19 = vperm.slane %v3313_v6, %v3180_v58  ;;  %v1027_v42 = vsel %vm1001_vm5, %v992_v52, %v1026_v13  ;;  %v994_v41 = vperm.slane %v3318_v24, %v3180_v58 }
 0x564   :  { %3961 = vst [vmem:[#allocation30_spill] sm:$0xff] %v3318_v24 }
 0x565   :  { %v1028_v46 = vsel %vm1003_vm6, %v993_v19, %v1027_v42  ;;  %v2774_v42 = vmov 0  }
 0x566   :  { %v1029_v51 = vsel %vm1005_vm7, %v994_v41, %v1028_v46  ;;  %2542 = vset.pattern.permute.xlu2 %v2774_v42  ;;  %2543 = vset.pattern.permute.xlu1 %v2774_v42 }
 0x567   :  { %2544 = vset.pattern.permute.xlu0 %v2774_v42 }
 0x568   :  { %v3324_v48 = vpop.xlane.xlu0 %926 }
 0x569   :  { %3962 = vst [vmem:[#allocation31_spill] sm:$0xff] %v3324_v48  ;;  %v995_v45 = vperm.slane %v3324_v48, %v3180_v58 }
 0x56a   :  { %v3328_v36 = vpop.xlane.xlu1 %929 }
 0x56b   :  { %3963 = vst [vmem:[#allocation32_spill] sm:$0xff] %v3328_v36  ;;  %v996_v40 = vperm.slane %v3328_v36, %v3180_v58  ;;  %v1030_v33 = vsel %vm1007_vm8, %v995_v45, %v1029_v51 }
 0x56d   :  { %v1031_v52 = vsel %vm1009_vm9, %v996_v40, %v1030_v33 }
 0x56e   :  { %v1046_v13 = vsel %vm1036_vm10, %v1031_v52, -inf }
 0x56f   :  { %1047 = vmax.xlane.f32.xlu2 %v1046_v13 }
 0x5a2   :  { %v1039_v19 = vpop.xlane.xlu2 %1038 }
 0x5a3   :  { %v1055_v24 = vperm.slane %v1039_v19, 2  ;;  %v1054_v48 = vperm.slane %v1039_v19, 1  ;;  %v1053_v34 = vperm.slane %v1039_v19, 0  ;;  %v1060_v37 = vperm.slane %v1039_v19, 7 }
 0x5a4   :  { %v1057_v41 = vperm.slane %v1039_v19, 4  ;;  %v1056_v33 = vperm.slane %v1039_v19, 3 }
 0x5a5   :  { %v1119_v46 = vsub.f32 %v3177_v57, %v1055_v24  ;;  %v1118_v58 = vsub.f32 %v3182_v59, %v1054_v48  ;;  %v1117_v45 = vsub.f32 %v3173_v53, %v1053_v34  ;;  %v1124_v51 = vsub.f32 %v3208_v20, %v1060_v37 }
 0x5a6   :  { %v1121_v42 = vsub.f32 %v3175_v56, %v1057_v41  ;;  %v1120_v36 = vsub.f32 %v3192_v5, %v1056_v33  ;;  %v1059_v57 = vperm.slane %v1039_v19, 6  ;;  %v1058_v24 = vperm.slane %v1039_v19, 5 }
 0x5a7   :  { %v1153_v40 = vmul.f32 1.442695, %v1119_v46  ;;  %v1151_v52 = vmul.f32 1.442695, %v1118_v58  ;;  %v1149_v13 = vmul.f32 1.442695, %v1117_v45 }
 0x5a8   :  { %v1163_v6 = vmul.f32 1.442695, %v1124_v51  ;;  %v1157_v0 = vmul.f32 1.442695, %v1121_v42  ;;  %v1155_v59 = vmul.f32 1.442695, %v1120_v36  ;;  %v1123_v37 = vsub.f32 %v3204_v15, %v1059_v57 }
 0x5a9   :  { %2552 = vpow2.f32 %v1153_v40  ;;  %v1122_v56 = vsub.f32 %v3190_v4, %v1058_v24 }
 0x5aa   :  { %2554 = vpow2.f32 %v1151_v52 }
 0x5ab   :  { %2556 = vpow2.f32 %v1149_v13 }
 0x5ac   :  { %2558 = vpow2.f32 %v1163_v6 }
 0x5ad   :  { %2560 = vpow2.f32 %v1157_v0  ;;  %v1161_v0 = vmul.f32 1.442695, %v1123_v37 }
 0x5ae   :  { %2562 = vpow2.f32 %v1155_v59 }
 0x5af   :  { %v2553_v34 = vpop.eup %2552  ;;  %2564 = vpow2.f32 %v1161_v0 }
 0x5b0   :  { %v2555_v53 = vpop.eup %2554  ;;  %v3344_v58 = vmul.f32 %v2553_v34, %v2978_v60  ;;  %v1159_v60 = vmul.f32 1.442695, %v1122_v56 }
 0x5b1   :  { %v2557_v20 = vpop.eup %2556  ;;  %v3348_v5 = vmul.f32 %v2555_v53, %v2980_v61 }
 0x5b2   :  { %1544 = vperm.xlu0 %2544, %v3344_v58   ;;  %v3352_v36 = vmul.f32 %v2557_v20, %v2998_v14  ;;  %v2559_v15 = vpop.eup %2558  ;;  %2566 = vpow2.f32 %v1159_v60 }
 0x5b3   :  { %1541 = vperm.xlu1 %2543, %v3348_v5   ;;  %v2561_v6 = vpop.eup %2560  ;;  %v3357_v61 = vmul.f32 %v2559_v15, %v3029_v39 }
 0x5b4   :  { %1538 = vperm.xlu2 %2542, %v3352_v36   ;;  %v2563_v48 = vpop.eup %2562  ;;  %v3360_v19 = vmul.f32 %v2561_v6, %v3010_v22 }
 0x5b5   :  { %v3364_v33 = vmul.f32 %v2563_v48, %v3008_v21  ;;  %v2565_v13 = vpop.eup %2564 }
 0x5b8   :  { %v1042_v4 = vpop.xlane.xlu0 %1041  ;;  %v2567_v21 = vpop.eup %2566 }
 0x5b9   :  { %v1063_v14 = vperm.slane %v1042_v4, 2  ;;  %v1062_v41 = vperm.slane %v1042_v4, 1  ;;  %v1061_v46 = vperm.slane %v1042_v4, 0  ;;  %v1066_v45 = vperm.slane %v1042_v4, 5 }
 0x5ba   :  { %1559 = vperm.xlu0 %2544, %v3357_v61   ;;  %v1065_v22 = vperm.slane %v1042_v4, 4  ;;  %v1064_v52 = vperm.slane %v1042_v4, 3  ;;  %v3378_v37 = vmul.f32 %v2567_v21, %v3033_v43  ;;  %v1068_v53 = vperm.slane %v1042_v4, 7 }
 0x5bb   :  { %1550 = vperm.xlu1 %2543, %v3360_v19   ;;  %v1127_v51 = vsub.f32 %v3224_v35, %v1063_v14  ;;  %v1126_v39 = vsub.f32 %v3218_v31, %v1062_v41  ;;  %v1125_v40 = vsub.f32 %v3210_v23, %v1061_v46  ;;  %v1130_v59 = vsub.f32 %v3240_v8, %v1066_v45 }
 0x5bc   :  { %1547 = vperm.xlu2 %2542, %v3364_v33   ;;  %v1129_v34 = vsub.f32 %v3234_v32, %v1065_v22  ;;  %v3374_v35 = vmul.f32 %v2565_v13, %v3035_v44  ;;  %v1128_v31 = vsub.f32 %v3222_v25, %v1064_v52  ;;  %v1067_v32 = vperm.slane %v1042_v4, 6 }
 0x5bd   :  { %v1169_v42 = vmul.f32 1.442695, %v1127_v51  ;;  %v1167_v57 = vmul.f32 1.442695, %v1126_v39  ;;  %v1165_v24 = vmul.f32 1.442695, %v1125_v40  ;;  %v1132_v43 = vsub.f32 %v3249_v17, %v1068_v53 }
 0x5be   :  { %v1175_v23 = vmul.f32 1.442695, %v1130_v59  ;;  %v1173_v8 = vmul.f32 1.442695, %v1129_v34  ;;  %v1171_v20 = vmul.f32 1.442695, %v1128_v31  ;;  %v1131_v60 = vsub.f32 %v3238_v7, %v1067_v32 }
 0x5bf   :  { %2568 = vpow2.f32 %v1169_v42  ;;  %v1179_v4 = vmul.f32 1.442695, %v1132_v43 }
 0x5c0   :  { %2570 = vpow2.f32 %v1167_v57  ;;  %v1177_v46 = vmul.f32 1.442695, %v1131_v60 }
 0x5c1   :  { %2572 = vpow2.f32 %v1165_v24 }
 0x5c2   :  { %2574 = vpow2.f32 %v1175_v23 }
 0x5c3   :  { %1556 = vperm.xlu1 %2543, %v3374_v35   ;;  %2576 = vpow2.f32 %v1173_v8 }
 0x5c4   :  { %1553 = vperm.xlu2 %2542, %v3378_v37   ;;  %2578 = vpow2.f32 %v1171_v20 }
 0x5c5   :  { %v2569_v56 = vpop.eup %2568  ;;  %2580 = vpow2.f32 %v1179_v4 }
 0x5c6   :  { %v2571_v0 = vpop.eup %2570  ;;  %v3383_v44 = vmul.f32 %v2569_v56, %v3051_v62  ;;  %2582 = vpow2.f32 %v1177_v46 }
 0x5c7   :  { %v2573_v15 = vpop.eup %2572  ;;  %v3388_v25 = vmul.f32 %v2571_v0, %v3057_v2 }
 0x5c8   :  { %1568 = vperm.xlu0 %2544, %v3383_v44   ;;  %v3392_v6 = vmul.f32 %v2573_v15, %v3055_v1  ;;  %v2575_v48 = vpop.eup %2574 }
 0x5c9   :  { %v2577_v2 = vpop.eup %2576  ;;  %v3397_v51 = vmul.f32 %v2575_v48, %v3074_v12 }
 0x5ca   :  { %v2579_v1 = vpop.eup %2578  ;;  %v3404_v52 = vmul.f32 %v2577_v2, %v3084_v27 }
 0x5cb   :  { %1565 = vperm.xlu1 %2543, %v3388_v25   ;;  %v1045_v62 = vpop.xlane.xlu1 %1044  ;;  %v3408_v12 = vmul.f32 %v2579_v1, %v3082_v26  ;;  %v2581_v59 = vpop.eup %2580 }
 0x5cc   :  { %1562 = vperm.xlu2 %2542, %v3392_v6   ;;  %v1069_v14 = vperm.slane %v1045_v62, 0  ;;  %v1071_v41 = vperm.slane %v1045_v62, 2  ;;  %v1070_v17 = vperm.slane %v1045_v62, 1  ;;  %v1072_v45 = vperm.slane %v1045_v62, 3  ;;  %v2583_v27 = vpop.eup %2582 }
 0x5cd   :  { %v1075_v57 = vperm.slane %v1045_v62, 6  ;;  %v3415_v34 = vmul.f32 %v2581_v59, %v3113_v55  ;;  %v3422_v8 = vmul.f32 %v2583_v27, %v3111_v54  ;;  %v1076_v53 = vperm.slane %v1045_v62, 7 }
 0x5ce   :  { %v1133_v7 = vsub.f32 %v3253_v29, %v1069_v14  ;;  %v1135_v39 = vsub.f32 %v3264_v3, %v1071_v41  ;;  %v1136_v22 = vsub.f32 %v3268_v9, %v1072_v45  ;;  %v1134_v13 = vsub.f32 %v3255_v30, %v1070_v17  ;;  %v3964_v45 = vld [vmem:[#allocation28_spill] sm:$0xff] }
 0x5cf   :  { %v1074_v3 = vperm.slane %v1045_v62, 5  ;;  %v1073_v9 = vperm.slane %v1045_v62, 4  ;;  %v1139_v26 = vsub.f32 %v3284_v49, %v1075_v57 }
 0x5d0   :  { %1577 = vperm.xlu0 %2544, %v3397_v51   ;;  %v1181_v40 = vmul.f32 1.442695, %v1133_v7  ;;  %v1185_v29 = vmul.f32 1.442695, %v1135_v39  ;;  %v1187_v42 = vmul.f32 1.442695, %v1136_v22 }
 0x5d1   :  { %v1183_v24 = vmul.f32 1.442695, %v1134_v13  ;;  %v1138_v21 = vsub.f32 %v3279_v38, %v1074_v3  ;;  %v1137_v31 = vsub.f32 %v3270_v10, %v1073_v9  ;;  %v1193_v49 = vmul.f32 1.442695, %v1139_v26  ;;  %v3965_v7 = vld [vmem:[#allocation29_spill] sm:$0xff]  ;;  %v3966_v39 = vld [vmem:[#allocation16_spill] sm:$0xff] }
 0x5d2   :  { %2584 = vpow2.f32 %v1181_v40  ;;  %v1140_v10 = vsub.f32 %v3286_v63, %v1076_v53  ;;  %v3967_v22 = vld [vmem:[#allocation14_spill] sm:$0xff]  ;;  %v3970_v26 = vld [vmem:[#allocation31_spill] sm:$0xff] }
 0x5d3   :  { %1574 = vperm.xlu1 %2543, %v3404_v52   ;;  %2586 = vpow2.f32 %v1185_v29  ;;  %v1191_v38 = vmul.f32 1.442695, %v1138_v21  ;;  %v1189_v56 = vmul.f32 1.442695, %v1137_v31 }
 0x5d4   :  { %1571 = vperm.xlu2 %2542, %v3408_v12   ;;  %2588 = vpow2.f32 %v1187_v42  ;;  %v1195_v63 = vmul.f32 1.442695, %v1140_v10  ;;  %v3974_v10 = vld [vmem:[#allocation30_spill] sm:$0xff] }
 0x5d5   :  { %2590 = vpow2.f32 %v1183_v24 }
 0x5d6   :  { %2592 = vpow2.f32 %v1191_v38 }
 0x5d7   :  { %2594 = vpow2.f32 %v1193_v49  ;;  %v3971_v49 = vld [vmem:[#allocation19_spill] sm:$0xff] }
 0x5d8   :  { %v2585_v30 = vpop.eup %2584  ;;  %2596 = vpow2.f32 %v1189_v56 }
 0x5d9   :  { %v3418_v23 = vmul.f32 %v2585_v30, %v3107_v50  ;;  %v2587_v55 = vpop.eup %2586  ;;  %2598 = vpow2.f32 %v1195_v63 }
 0x5da   :  { %v2589_v20 = vpop.eup %2588  ;;  %v3429_v54 = vmul.f32 %v2587_v55, %v3135_v18  ;;  %v3972_v55 = vld [vmem:[#allocation32_spill] sm:$0xff] }
 0x5db   :  { %1583 = vperm.xlu1 %2543, %v3415_v34   ;;  %1586 = vperm.xlu0 %2544, %v3418_v23   ;;  %v2591_v50 = vpop.eup %2590  ;;  %v3432_v32 = vmul.f32 %v2589_v20, %v3130_v11  ;;  %v3973_v20 = vld [vmem:[#allocation17_spill] sm:$0xff] }
 0x5dc   :  { %1580 = vperm.xlu2 %2542, %v3422_v8   ;;  %v3435_v15 = vmul.f32 %v2591_v50, %v3133_v16  ;;  %v2593_v62 = vpop.eup %2592 }
 0x5dd   :  { %v2595_v41 = vpop.eup %2594  ;;  %v3445_v40 = vmul.f32 %v2593_v62, %v3966_v39  ;;  %v3979_v39 = vld [vmem:[#allocation25_spill] sm:$0xff] }
 0x5de   :  { %v2597_v16 = vpop.eup %2596  ;;  %v3448_v13 = vmul.f32 %v2595_v41, %v3967_v22 }
 0x5df   :  { %v2599_v21 = vpop.eup %2598 }
 0x5e2   :  { %v1048_v0 = vpop.xlane.xlu2 %1047 }
 0x5e3   :  { %1592 = vperm.xlu1 %2543, %v3429_v54   ;;  %1595 = vperm.xlu0 %2544, %v3432_v32   ;;  %v1077_v43 = vperm.slane %v1048_v0, 0  ;;  %v1078_v60 = vperm.slane %v1048_v0, 1  ;;  %v1080_v48 = vperm.slane %v1048_v0, 3  ;;  %v1081_v18 = vperm.slane %v1048_v0, 4 }
 0x5e4   :  { %1589 = vperm.xlu2 %2542, %v3435_v15   ;;  %v1079_v14 = vperm.slane %v1048_v0, 2  ;;  %v1083_v57 = vperm.slane %v1048_v0, 6  ;;  %v1084_v9 = vperm.slane %v1048_v0, 7  ;;  %v1082_v27 = vperm.slane %v1048_v0, 5 }
 0x5e5   :  { %v1141_v11 = vsub.f32 %v3296_v47, %v1077_v43  ;;  %v1142_v4 = vsub.f32 %v3298_v28, %v1078_v60  ;;  %v1144_v2 = vsub.f32 %v3964_v45, %v1080_v48  ;;  %v1145_v1 = vsub.f32 %v3965_v7, %v1081_v18  ;;  %v3968_v47 = vld [vmem:[#allocation27_spill] sm:$0xff]  ;;  %v3975_v60 = vld [vmem:[#allocation18_spill] sm:$0xff] }
 0x5e6   :  { %v1143_v29 = vsub.f32 %v3968_v47, %v1079_v14  ;;  %v3969_v28 = vld [vmem:[#allocation15_spill] sm:$0xff]  ;;  %v1147_v31 = vsub.f32 %v3970_v26, %v1083_v57  ;;  %v1148_v56 = vsub.f32 %v3972_v55, %v1084_v9  ;;  %v1146_v43 = vsub.f32 %v3974_v10, %v1082_v27  ;;  %v3976_v14 = vld [vmem:[#allocation22_spill] sm:$0xff] }
 0x5e7   :  { %v1197_v46 = vmul.f32 1.442695, %v1141_v11  ;;  %v1199_v17 = vmul.f32 1.442695, %v1142_v4  ;;  %v3452_v3 = vmul.f32 %v2597_v16, %v3969_v28  ;;  %v1203_v42 = vmul.f32 1.442695, %v1144_v2 }
 0x5e8   :  { %v1205_v24 = vmul.f32 1.442695, %v1145_v1  ;;  %v1201_v59 = vmul.f32 1.442695, %v1143_v29  ;;  %v3467_v0 = vmul.f32 %v2599_v21, %v3975_v60  ;;  %v1209_v48 = vmul.f32 1.442695, %v1147_v31 }
 0x5e9   :  { %2600 = vpow2.f32 %v1197_v46  ;;  %v1211_v63 = vmul.f32 1.442695, %v1148_v56  ;;  %v1207_v62 = vmul.f32 1.442695, %v1146_v43  ;;  %v3977_v16 = vld [vmem:[#allocation20_spill] sm:$0xff]  ;;  %v3980_v47 = vld [vmem:[#allocation23_spill] sm:$0xff] }
 0x5ea   :  { %2602 = vpow2.f32 %v1199_v17  ;;  %v3978_v17 = vld [vmem:[#allocation21_spill] sm:$0xff]  ;;  %v3981_v28 = vld [vmem:[#allocation24_spill] sm:$0xff]  ;;  %v3982_v21 = vld [vmem:[#allocation26_spill] sm:$0xff] }
 0x5eb   :  { %1601 = vperm.xlu1 %2543, %v3445_v40   ;;  %1604 = vperm.xlu0 %2544, %v3448_v13   ;;  %2604 = vpow2.f32 %v1203_v42 }
 0x5ec   :  { %1598 = vperm.xlu2 %2542, %v3452_v3   ;;  %2606 = vpow2.f32 %v1205_v24 }
 0x5ed   :  { %2608 = vpow2.f32 %v1201_v59 }
 0x5ee   :  { %2610 = vpow2.f32 %v1209_v48 }
 0x5ef   :  { %v2601_v30 = vpop.eup %2600  ;;  %2612 = vpow2.f32 %v1211_v63 }
 0x5f0   :  { %v2603_v38 = vpop.eup %2602  ;;  %v3459_v53 = vmul.f32 %v2601_v30, %v3971_v49  ;;  %2614 = vpow2.f32 %v1207_v62 }
 0x5f1   :  { %v3463_v50 = vmul.f32 %v2603_v38, %v3973_v20  ;;  %v2605_v18 = vpop.eup %2604 }
 0x5f2   :  { %v2607_v11 = vpop.eup %2606  ;;  %v3473_v41 = vmul.f32 %v2605_v18, %v3976_v14 }
 0x5f3   :  { %1610 = vperm.xlu1 %2543, %v3459_v53   ;;  %1613 = vperm.xlu0 %2544, %v3463_v50   ;;  %v2609_v4 = vpop.eup %2608  ;;  %v3476_v46 = vmul.f32 %v2607_v11, %v3977_v16 }
 0x5f4   :  { %1607 = vperm.xlu2 %2542, %v3467_v0   ;;  %v3479_v45 = vmul.f32 %v2609_v4, %v3978_v17  ;;  %v2611_v2 = vpop.eup %2610 }
 0x5f5   :  { %v2613_v7 = vpop.eup %2612  ;;  %v3485_v22 = vmul.f32 %v2611_v2, %v3979_v39 }
 0x5f6   :  { %v2615_v1 = vpop.eup %2614  ;;  %v3488_v29 = vmul.f32 %v2613_v7, %v3980_v47 }
 0x5f7   :  { %v3491_v42 = vmul.f32 %v2615_v1, %v3981_v28 }
 0x5fb   :  { %1619 = vperm.xlu1 %2543, %v3473_v41   ;;  %1622 = vperm.xlu0 %2544, %v3476_v46  }
 0x5fc   :  { %1616 = vperm.xlu2 %2542, %v3479_v45  }
 0x603   :  { %1628 = vperm.xlu1 %2543, %v3485_v22   ;;  %1631 = vperm.xlu0 %2544, %v3488_v29  }
 0x604   :  { %1625 = vperm.xlu2 %2542, %v3491_v42  }
 0x60e   :  { %v1539_v57 = vpop.permute.xlu2 %1538 }
 0x60f   :  { %v1633_v31 = vperm.slane %v1539_v57, %v3982_v21 }
 0x616   :  { %v1548_v24 = vpop.permute.xlu2 %1547 }
 0x617   :  { %v1636_v10 = vperm.slane %v1548_v24, %v3982_v21 }
 0x61e   :  { %v1554_v9 = vpop.permute.xlu2 %1553 }
 0x61f   :  { %v1638_v18 = vperm.slane %v1554_v9, %v3982_v21 }
 0x624   :  { %v1545_v27 = vpop.permute.xlu0 %1544 }
 0x625   :  { %v1542_v59 = vpop.permute.xlu1 %1541  ;;  %v1635_v38 = vperm.slane %v1545_v27, %v3982_v21 }
 0x626   :  { %v1634_v30 = vperm.slane %v1542_v59, %v3982_v21  ;;  %v1563_v26 = vpop.permute.xlu2 %1562 }
 0x627   :  { %v1641_v28 = vperm.slane %v1563_v26, %v3982_v21 }
 0x628   :  { %v1665_v49 = vsel %vm997_vm3, %v1634_v30, %v1633_v31 }
 0x629   :  { %v1666_v56 = vsel %vm999_vm4, %v1635_v38, %v1665_v49 }
 0x62a   :  { %v1667_v60 = vsel %vm1001_vm5, %v1636_v10, %v1666_v56 }
 0x62c   :  { %v1560_v43 = vpop.permute.xlu0 %1559 }
 0x62d   :  { %v1551_v55 = vpop.permute.xlu1 %1550  ;;  %v1640_v4 = vperm.slane %v1560_v43, %v3982_v21 }
 0x62e   :  { %v1637_v20 = vperm.slane %v1551_v55, %v3982_v21  ;;  %v1572_v48 = vpop.permute.xlu2 %1571 }
 0x62f   :  { %v1644_v30 = vperm.slane %v1572_v48, %v3982_v21 }
 0x630   :  { %v1668_v63 = vsel %vm1003_vm6, %v1637_v20, %v1667_v60 }
 0x631   :  { %v1669_v14 = vsel %vm1005_vm7, %v1638_v18, %v1668_v63 }
 0x635   :  { %v1557_v62 = vpop.permute.xlu1 %1556 }
 0x636   :  { %v1639_v11 = vperm.slane %v1557_v62, %v3982_v21  ;;  %v1581_v39 = vpop.permute.xlu2 %1580 }
 0x637   :  { %v1647_v20 = vperm.slane %v1581_v39, %v3982_v21 }
 0x638   :  { %v1670_v16 = vsel %vm1007_vm8, %v1639_v11, %v1669_v14 }
 0x639   :  { %v1671_v17 = vsel %vm1009_vm9, %v1640_v4, %v1670_v16 }
 0x63a   :  { %v1697_v2 = vsel %vm1036_vm10, %v1671_v17, 0.0  ;;  %v1569_v7 = vpop.permute.xlu0 %1568 }
 0x63b   :  { %1698 = vadd.xlane.f32.xlu2 %v1697_v2  ;;  %v1643_v24 = vperm.slane %v1569_v7, %v3982_v21 }
 0x63d   :  { %v1566_v1 = vpop.permute.xlu1 %1565 }
 0x63e   :  { %v1642_v47 = vperm.slane %v1566_v1, %v3982_v21  ;;  %v1590_v38 = vpop.permute.xlu2 %1589 }
 0x63f   :  { %v1650_v16 = vperm.slane %v1590_v38, %v3982_v21 }
 0x640   :  { %v1672_v57 = vsel %vm997_vm3, %v1642_v47, %v1641_v28 }
 0x641   :  { %v1673_v9 = vsel %vm999_vm4, %v1643_v24, %v1672_v57 }
 0x642   :  { %v1578_v59 = vpop.permute.xlu0 %1577  ;;  %v1674_v49 = vsel %vm1001_vm5, %v1644_v30, %v1673_v9 }
 0x643   :  { %v1646_v56 = vperm.slane %v1578_v59, %v3982_v21 }
 0x645   :  { %v1575_v27 = vpop.permute.xlu1 %1574 }
 0x646   :  { %v1645_v31 = vperm.slane %v1575_v27, %v3982_v21  ;;  %v1599_v62 = vpop.permute.xlu2 %1598 }
 0x647   :  { %v1653_v28 = vperm.slane %v1599_v62, %v3982_v21 }
 0x648   :  { %v1675_v55 = vsel %vm1003_vm6, %v1645_v31, %v1674_v49 }
 0x649   :  { %v1676_v26 = vsel %vm1005_vm7, %v1646_v56, %v1675_v55 }
 0x64a   :  { %v1677_v63 = vsel %vm1007_vm8, %v1647_v20, %v1676_v26 }
 0x64d   :  { %v1584_v10 = vpop.permute.xlu1 %1583  ;;  %v1587_v43 = vpop.permute.xlu0 %1586 }
 0x64e   :  { %v1648_v60 = vperm.slane %v1584_v10, %v3982_v21  ;;  %v1649_v11 = vperm.slane %v1587_v43, %v3982_v21  ;;  %v1608_v39 = vpop.permute.xlu2 %1607 }
 0x64f   :  { %v1656_v30 = vperm.slane %v1608_v39, %v3982_v21 }
 0x650   :  { %v1678_v48 = vsel %vm1009_vm9, %v1648_v60, %v1677_v63  ;;  %v1679_v2 = vsel %vm997_vm3, %v1650_v16, %v1649_v11 }
 0x651   :  { %v1700_v18 = vsel %vm1036_vm10, %v1678_v48, 0.0 }
 0x652   :  { %1701 = vadd.xlane.f32.xlu1 %v1700_v18 }
 0x655   :  { %v1593_v4 = vpop.permute.xlu1 %1592  ;;  %v1596_v14 = vpop.permute.xlu0 %1595 }
 0x656   :  { %v1651_v17 = vperm.slane %v1593_v4, %v3982_v21  ;;  %v1652_v7 = vperm.slane %v1596_v14, %v3982_v21  ;;  %v1617_v20 = vpop.permute.xlu2 %1616 }
 0x657   :  { %v1659_v18 = vperm.slane %v1617_v20, %v3982_v21 }
 0x658   :  { %v1680_v1 = vsel %vm999_vm4, %v1651_v17, %v1679_v2 }
 0x659   :  { %v1681_v47 = vsel %vm1001_vm5, %v1652_v7, %v1680_v1 }
 0x65a   :  { %v1682_v27 = vsel %vm1003_vm6, %v1653_v28, %v1681_v47 }
 0x65d   :  { %v1602_v57 = vpop.permute.xlu1 %1601  ;;  %v1605_v24 = vpop.permute.xlu0 %1604 }
 0x65e   :  { %v1654_v9 = vperm.slane %v1602_v57, %v3982_v21  ;;  %v1655_v59 = vperm.slane %v1605_v24, %v3982_v21  ;;  %v1626_v16 = vpop.permute.xlu2 %1625 }
 0x65f   :  { %v1662_v2 = vperm.slane %v1626_v16, %v3982_v21 }
 0x660   :  { %v1683_v31 = vsel %vm1005_vm7, %v1654_v9, %v1682_v27 }
 0x661   :  { %v1684_v38 = vsel %vm1007_vm8, %v1655_v59, %v1683_v31 }
 0x662   :  { %v1685_v49 = vsel %vm1009_vm9, %v1656_v30, %v1684_v38 }
 0x663   :  { %v1703_v55 = vsel %vm1036_vm10, %v1685_v49, 0.0 }
 0x664   :  { %1704 = vadd.xlane.f32.xlu0 %v1703_v55 }
 0x665   :  { %v1611_v56 = vpop.permute.xlu1 %1610  ;;  %v1614_v26 = vpop.permute.xlu0 %1613 }
 0x666   :  { %v1657_v10 = vperm.slane %v1611_v56, %v3982_v21  ;;  %v1658_v43 = vperm.slane %v1614_v26, %v3982_v21 }
 0x668   :  { %v1686_v60 = vsel %vm997_vm3, %v1658_v43, %v1657_v10 }
 0x669   :  { %v1687_v11 = vsel %vm999_vm4, %v1659_v18, %v1686_v60 }
 0x66d   :  { %v1620_v63 = vpop.permute.xlu1 %1619  ;;  %v1623_v48 = vpop.permute.xlu0 %1622 }
 0x66e   :  { %v1660_v62 = vperm.slane %v1620_v63, %v3982_v21  ;;  %v1661_v4 = vperm.slane %v1623_v48, %v3982_v21 }
 0x670   :  { %v1688_v14 = vsel %vm1001_vm5, %v1660_v62, %v1687_v11 }
 0x671   :  { %v1689_v17 = vsel %vm1003_vm6, %v1661_v4, %v1688_v14 }
 0x672   :  { %v1690_v28 = vsel %vm1005_vm7, %v1662_v2, %v1689_v17 }
 0x675   :  { %v1629_v7 = vpop.permute.xlu1 %1628  ;;  %v1632_v1 = vpop.permute.xlu0 %1631 }
 0x676   :  { %v1663_v39 = vperm.slane %v1629_v7, %v3982_v21  ;;  %v1664_v47 = vperm.slane %v1632_v1, %v3982_v21 }
 0x678   :  { %v1691_v57 = vsel %vm1007_vm8, %v1663_v39, %v1690_v28 }
 0x679   :  { %v1692_v24 = vsel %vm1009_vm9, %v1664_v47, %v1691_v57 }
 0x67a   :  { %v1706_v9 = vsel %vm1036_vm10, %v1692_v24, 0.0 }
 0x67b   :  { %1707 = vadd.xlane.f32.xlu2 %v1706_v9 }
 0x6ae   :  { %v1699_v59 = vpop.xlane.xlu2 %1698 }
 0x6af   :  { %v1709_v27 = vadd.f32 1e-09, %v1699_v59 }
 0x6b1   :  { %2616 = vrcp.f32 %v1709_v27 }
 0x6b7   :  { %v2617_v30 = vpop.eup %2616 }
 0x6b8   :  { %v1721_v31 = vperm.slane %v2617_v30, 0  ;;  %v1723_v38 = vperm.slane %v2617_v30, 2  ;;  %v1722_v49 = vperm.slane %v2617_v30, 1  ;;  %v1724_v20 = vperm.slane %v2617_v30, 3 }
 0x6b9   :  { %v1725_v10 = vperm.slane %v2617_v30, 4  ;;  %v1726_v43 = vperm.slane %v2617_v30, 5  ;;  %v1728_v62 = vperm.slane %v2617_v30, 7 }
 0x6ba   :  { %v1785_v55 = vmul.f32 %v1721_v31, %v3352_v36  ;;  %v1787_v56 = vmul.f32 %v1723_v38, %v3344_v58  ;;  %v1786_v26 = vmul.f32 %v1722_v49, %v3348_v5  ;;  %v1788_v60 = vmul.f32 %v1724_v20, %v3364_v33 }
 0x6bb   :  { %v1789_v63 = vmul.f32 %v1725_v10, %v3360_v19  ;;  %v1790_v48 = vmul.f32 %v1726_v43, %v3378_v37  ;;  %v1727_v58 = vperm.slane %v2617_v30, 6  ;;  %v1792_v11 = vmul.f32 %v1728_v62, %v3357_v61 }
 0x6bc   :  { %1819 = vperm.xlu1 %2543, %v1785_v55   ;;  %1829 = vperm.xlu0 %2544, %v1787_v56  }
 0x6bd   :  { %1824 = vperm.xlu2 %2542, %v1786_v26   ;;  %v1791_v5 = vmul.f32 %v1727_v58, %v3374_v35 }
 0x6c4   :  { %1834 = vperm.xlu1 %2543, %v1788_v60   ;;  %1839 = vperm.xlu0 %2544, %v1789_v63  }
 0x6c5   :  { %1844 = vperm.xlu2 %2542, %v1790_v48   ;;  %v1702_v36 = vpop.xlane.xlu1 %1701 }
 0x6c6   :  { %v1710_v18 = vadd.f32 1e-09, %v1702_v36 }
 0x6c8   :  { %2618 = vrcp.f32 %v1710_v18 }
 0x6cc   :  { %1849 = vperm.xlu1 %2543, %v1791_v5   ;;  %1854 = vperm.xlu0 %2544, %v1792_v11   ;;  %v2633_v11 = vld [vmem:[%s3930_s5 + $0x14] sm:$0xf] }
 0x6ce   :  { %v2619_v4 = vpop.eup %2618 }
 0x6cf   :  { %v1729_v33 = vperm.slane %v2619_v4, 0  ;;  %v1731_v14 = vperm.slane %v2619_v4, 2  ;;  %v1730_v19 = vperm.slane %v2619_v4, 1  ;;  %v1732_v2 = vperm.slane %v2619_v4, 3 }
 0x6d0   :  { %v1734_v7 = vperm.slane %v2619_v4, 5  ;;  %v1733_v35 = vperm.slane %v2619_v4, 4 }
 0x6d1   :  { %v1793_v37 = vmul.f32 %v1729_v33, %v3392_v6  ;;  %v1795_v16 = vmul.f32 %v1731_v14, %v3383_v44  ;;  %v1794_v17 = vmul.f32 %v1730_v19, %v3388_v25  ;;  %v1796_v39 = vmul.f32 %v1732_v2, %v3408_v12  ;;  %v2634_v19 = vld [vmem:[%s3930_s5 + $0x20] sm:$0xf] }
 0x6d2   :  { %v1798_v47 = vmul.f32 %v1734_v7, %v3397_v51  ;;  %v1797_v28 = vmul.f32 %v1733_v35, %v3404_v52  ;;  %v1735_v44 = vperm.slane %v2619_v4, 6  ;;  %v1736_v25 = vperm.slane %v2619_v4, 7  ;;  %v2635_v7 = vld [vmem:[%s3930_s5 + $0x8] sm:$0xf] }
 0x6d3   :  { %1859 = vperm.xlu2 %2542, %v1793_v37  }
 0x6d4   :  { %1869 = vperm.xlu0 %2544, %v1795_v16   ;;  %1864 = vperm.xlu1 %2543, %v1794_v17   ;;  %v1799_v57 = vmul.f32 %v1735_v44, %v3422_v8  ;;  %v1800_v9 = vmul.f32 %v1736_v25, %v3415_v34 }
 0x6d7   :  { %v1705_v1 = vpop.xlane.xlu0 %1704 }
 0x6d8   :  { %v1711_v61 = vadd.f32 1e-09, %v1705_v1  ;;  %v2636_v1 = vld [vmem:[%s3930_s5] sm:$0xf] }
 0x6da   :  { %2620 = vrcp.f32 %v1711_v61 }
 0x6db   :  { %1874 = vperm.xlu2 %2542, %v1796_v39  }
 0x6dc   :  { %1884 = vperm.xlu0 %2544, %v1798_v47   ;;  %1879 = vperm.xlu1 %2543, %v1797_v28  }
 0x6e0   :  { %v2621_v6 = vpop.eup %2620 }
 0x6e1   :  { %v1737_v24 = vperm.slane %v2621_v6, 0  ;;  %v1738_v12 = vperm.slane %v2621_v6, 1  ;;  %v1739_v51 = vperm.slane %v2621_v6, 2  ;;  %v1740_v27 = vperm.slane %v2621_v6, 3 }
 0x6e2   :  { %v1741_v8 = vperm.slane %v2621_v6, 4  ;;  %v1742_v34 = vperm.slane %v2621_v6, 5  ;;  %v1743_v55 = vperm.slane %v2621_v6, 6 }
 0x6e3   :  { %1889 = vperm.xlu2 %2542, %v1799_v57   ;;  %v1801_v59 = vmul.f32 %v1737_v24, %v3418_v23  ;;  %v1802_v52 = vmul.f32 %v1738_v12, %v3435_v15  ;;  %v1803_v30 = vmul.f32 %v1739_v51, %v3429_v54  ;;  %v1804_v31 = vmul.f32 %v1740_v27, %v3432_v32 }
 0x6e4   :  { %1894 = vperm.xlu1 %2543, %v1800_v9   ;;  %v1805_v23 = vmul.f32 %v1741_v8, %v3452_v3  ;;  %v1806_v56 = vmul.f32 %v1742_v34, %v3445_v40  ;;  %v1807_v15 = vmul.f32 %v1743_v55, %v3448_v13  ;;  %v1744_v54 = vperm.slane %v2621_v6, 7 }
 0x6e5   :  { %1899 = vperm.xlu0 %2544, %v1801_v59  }
 0x6e6   :  { %v1808_v10 = vmul.f32 %v1744_v54, %v3467_v0 }
 0x6eb   :  { %1904 = vperm.xlu2 %2542, %v1802_v52  }
 0x6ec   :  { %1909 = vperm.xlu1 %2543, %v1803_v30  }
 0x6ed   :  { %1914 = vperm.xlu0 %2544, %v1804_v31   ;;  %v2637_v31 = vld [vmem:[%s3930_s5 + $0x2c] sm:$0xf] }
 0x6ee   :  { %v1708_v38 = vpop.xlane.xlu2 %1707 }
 0x6ef   :  { %v1712_v49 = vadd.f32 1e-09, %v1708_v38 }
 0x6f1   :  { %2622 = vrcp.f32 %v1712_v49 }
 0x6f3   :  { %1919 = vperm.xlu2 %2542, %v1805_v23   ;;  %v2638_v23 = vld [vmem:[%s3930_s5 + $0x10] sm:$0xf] }
 0x6f4   :  { %1924 = vperm.xlu1 %2543, %v1806_v56  }
 0x6f5   :  { %1929 = vperm.xlu0 %2544, %v1807_v15   ;;  %v2639_v15 = vld [vmem:[%s3930_s5 + $0xc] sm:$0xf] }
 0x6f7   :  { %v2623_v26 = vpop.eup %2622 }
 0x6f8   :  { %v1745_v32 = vperm.slane %v2623_v26, 0  ;;  %v1746_v20 = vperm.slane %v2623_v26, 1  ;;  %v1747_v3 = vperm.slane %v2623_v26, 2  ;;  %v1748_v40 = vperm.slane %v2623_v26, 3 }
 0x6f9   :  { %v1749_v63 = vperm.slane %v2623_v26, 4  ;;  %v1750_v0 = vperm.slane %v2623_v26, 5  ;;  %v1751_v18 = vperm.slane %v2623_v26, 6 }
 0x6fa   :  { %v1809_v43 = vmul.f32 %v1745_v32, %v3459_v53  ;;  %v1810_v60 = vmul.f32 %v1746_v20, %v3463_v50  ;;  %v1811_v13 = vmul.f32 %v1747_v3, %v3479_v45  ;;  %v1812_v48 = vmul.f32 %v1748_v40, %v3473_v41  ;;  %v2632_v41 = vld [vmem:[%s3930_s5 + $0x4] sm:$0xf] }
 0x6fb   :  { %1934 = vperm.xlu2 %2542, %v1808_v10   ;;  %v1813_v36 = vmul.f32 %v1749_v63, %v3476_v46  ;;  %v1752_v53 = vperm.slane %v2623_v26, 7  ;;  %v1814_v50 = vmul.f32 %v1750_v0, %v3491_v42  ;;  %v1815_v58 = vmul.f32 %v1751_v18, %v3485_v22 }
 0x6fc   :  { %1939 = vperm.xlu1 %2543, %v1809_v43  }
 0x6fd   :  { %1944 = vperm.xlu0 %2544, %v1810_v60   ;;  %v1816_v62 = vmul.f32 %v1752_v53, %v3488_v29 }
 0x703   :  { %1949 = vperm.xlu2 %2542, %v1811_v13  }
 0x704   :  { %1954 = vperm.xlu1 %2543, %v1812_v48  }
 0x705   :  { %1959 = vperm.xlu0 %2544, %v1813_v36  }
 0x70b   :  { %1964 = vperm.xlu2 %2542, %v1814_v50  }
 0x70c   :  { %1969 = vperm.xlu1 %2543, %v1815_v58  }
 0x70d   :  { %1974 = vperm.xlu0 %2544, %v1816_v62  }
 0x717   :  { %v1825_v45 = vpop.permute.xlu2 %1824 }
 0x718   :  { %v1978_v46 = vmul.f32 %v2632_v41, %v1825_v45  ;;  %v2391_v55 = vperm.slane %v1825_v45, %v3982_v21 }
 0x71a   :  { %v2016_v22 = vsel %vm834_vm2, %v1978_v46, 0.0 }
 0x71b   :  { %v2017_v4 = vrot.slane %v2016_v22, 4 }
 0x71d   :  { %v2018_v2 = vadd.f32 %v2017_v4, %v2016_v22 }
 0x71f   :  { %v3592_v5 = vpop.permute.xlu2 %1844  ;;  %v2019_v57 = vrot.slane %v2018_v2, 2 }
 0x720   :  { %v1982_v42 = vmul.f32 %v2633_v11, %v3592_v5  ;;  %v2395_v58 = vperm.slane %v3592_v5, %v3982_v21 }
 0x721   :  { %v2020_v49 = vadd.f32 %v2019_v57, %v2018_v2 }
 0x722   :  { %v2044_v29 = vsel %vm834_vm2, %v1982_v42, 0.0 }
 0x723   :  { %v2045_v33 = vrot.slane %v2044_v29, 4  ;;  %v2021_v0 = vrot.slane %v2020_v49, 1 }
 0x725   :  { %v2046_v39 = vadd.f32 %v2045_v33, %v2044_v29 }
 0x727   :  { %v2047_v24 = vrot.slane %v2046_v39, 2 }
 0x729   :  { %v2048_v26 = vadd.f32 %v2047_v24, %v2046_v39 }
 0x72b   :  { %v2049_v50 = vrot.slane %v2048_v26, 1 }
 0x72d   :  { %v3603_v14 = vpop.permute.xlu2 %1859 }
 0x72e   :  { %v1985_v37 = vmul.f32 %v2634_v19, %v3603_v14  ;;  %v1830_v16 = vpop.permute.xlu0 %1829  ;;  %v1820_v17 = vpop.permute.xlu1 %1819  ;;  %v2640_v19 = vld [vmem:[%s3930_s5 + $0x38] sm:$0xf]  ;;  %v2398_v39 = vperm.slane %v3603_v14, %v3982_v21 }
 0x72f   :  { %v1979_v35 = vmul.f32 %v2635_v7, %v1830_v16  ;;  %v1977_v61 = vmul.f32 %v2636_v1, %v1820_v17  ;;  %v2390_v30 = vperm.slane %v1820_v17, %v3982_v21  ;;  %v2392_v32 = vperm.slane %v1830_v16, %v3982_v21 }
 0x730   :  { %v2065_v44 = vsel %vm834_vm2, %v1985_v37, 0.0  ;;  %v2022_v17 = vadd.f32 %v2021_v0, %v2020_v49 }
 0x731   :  { %v2023_v47 = vsel %vm834_vm2, %v1979_v35, 0.0  ;;  %v2009_v28 = vsel %vm834_vm2, %v1977_v61, 0.0  ;;  %v2066_v12 = vrot.slane %v2065_v44, 4  ;;  %v2422_v63 = vsel %vm997_vm3, %v2391_v55, %v2390_v30  ;;  %v2641_v35 = vld [vmem:[%s3930_s5 + $0x1c] sm:$0xf] }
 0x732   :  { %v2024_v25 = vrot.slane %v2023_v47, 4  ;;  %v2010_v6 = vrot.slane %v2009_v28, 4  ;;  %v2423_v42 = vsel %vm999_vm4, %v2392_v32, %v2422_v63  ;;  %v3652_v61 = vadd.f32 %v2049_v50, %v2048_v26 }
 0x733   :  { %v2067_v43 = vadd.f32 %v2066_v12, %v2065_v44  ;;  %v2642_v12 = vld [vmem:[%s3930_s5 + $0x18] sm:$0xf] }
 0x734   :  { %v2025_v9 = vadd.f32 %v2024_v25, %v2023_v47  ;;  %v2011_v59 = vadd.f32 %v2010_v6, %v2009_v28 }
 0x735   :  { %v3618_v51 = vpop.permute.xlu2 %1874  ;;  %v2068_v41 = vrot.slane %v2067_v43, 2 }
 0x736   :  { %v2026_v27 = vrot.slane %v2025_v9, 2  ;;  %v2012_v52 = vrot.slane %v2011_v59, 2  ;;  %v1988_v8 = vmul.f32 %v2637_v31, %v3618_v51  ;;  %v1840_v38 = vpop.permute.xlu0 %1839  ;;  %v1835_v34 = vpop.permute.xlu1 %1834 }
 0x737   :  { %v1981_v56 = vmul.f32 %v2638_v23, %v1840_v38  ;;  %v1980_v54 = vmul.f32 %v2639_v15, %v1835_v34  ;;  %v2393_v36 = vperm.slane %v1835_v34, %v3982_v21  ;;  %v2394_v11 = vperm.slane %v1840_v38, %v3982_v21 }
 0x738   :  { %v2013_v20 = vadd.f32 %v2012_v52, %v2011_v59  ;;  %v2086_v10 = vsel %vm834_vm2, %v1988_v8, 0.0  ;;  %v2027_v60 = vadd.f32 %v2026_v27, %v2025_v9  ;;  %v2069_v44 = vadd.f32 %v2068_v41, %v2067_v43  ;;  %v2645_v41 = vld [vmem:[%s3930_s5 + $0x24] sm:$0xf] }
 0x739   :  { %v2037_v3 = vsel %vm834_vm2, %v1981_v56, 0.0  ;;  %v2030_v40 = vsel %vm834_vm2, %v1980_v54, 0.0  ;;  %v2087_v53 = vrot.slane %v2086_v10, 4  ;;  %v2424_v33 = vsel %vm1001_vm5, %v2393_v36, %v2423_v42 }
 0x73a   :  { %v2038_v13 = vrot.slane %v2037_v3, 4  ;;  %v2031_v48 = vrot.slane %v2030_v40, 4  ;;  %v2014_v18 = vrot.slane %v2013_v20, 1  ;;  %v2028_v46 = vrot.slane %v2027_v60, 1 }
 0x73b   :  { %v2088_v7 = vadd.f32 %v2087_v53, %v2086_v10  ;;  %v2425_v6 = vsel %vm1003_vm6, %v2394_v11, %v2424_v33  ;;  %v2070_v55 = vrot.slane %v2069_v44, 1  ;;  %v2401_v23 = vperm.slane %v3618_v51, %v3982_v21  ;;  %v2643_v10 = vld [vmem:[%s3930_s5 + $0x44] sm:$0xf]  ;;  %v2644_v53 = vld [vmem:[%s3930_s5 + $0x28] sm:$0xf] }
 0x73c   :  { %v2039_v62 = vadd.f32 %v2038_v13, %v2037_v3  ;;  %v2032_v45 = vadd.f32 %v2031_v48, %v2030_v40  ;;  %v2015_v2 = vadd.f32 %v2014_v18, %v2013_v20  ;;  %v2029_v25 = vadd.f32 %v2028_v46, %v2027_v60 }
 0x73d   :  { %v3642_v22 = vpop.permute.xlu2 %1889  ;;  %v2089_v52 = vrot.slane %v2088_v7, 2  ;;  %v2426_v34 = vsel %vm1005_vm7, %v2395_v58, %v2425_v6 }
 0x73e   :  { %v2040_v29 = vrot.slane %v2039_v62, 2  ;;  %v2033_v4 = vrot.slane %v2032_v45, 2  ;;  %v1991_v5 = vmul.f32 %v2640_v19, %v3642_v22  ;;  %v1855_v37 = vpop.permute.xlu0 %1854  ;;  %v1850_v16 = vpop.permute.xlu1 %1849  ;;  %v2265_v14 = vsel %vm997_vm3, %v2022_v17, %v2015_v2 }
 0x73f   :  { %v1984_v1 = vmul.f32 %v2641_v35, %v1855_v37  ;;  %v2397_v59 = vperm.slane %v1855_v37, %v3982_v21  ;;  %v1983_v27 = vmul.f32 %v2642_v12, %v1850_v16  ;;  %v2396_v31 = vperm.slane %v1850_v16, %v3982_v21 }
 0x740   :  { %v2034_v47 = vadd.f32 %v2033_v4, %v2032_v45  ;;  %v2107_v28 = vsel %vm834_vm2, %v1991_v5, 0.0  ;;  %v2041_v24 = vadd.f32 %v2040_v29, %v2039_v62  ;;  %v3677_v40 = vadd.f32 %v2089_v52, %v2088_v7 }
 0x741   :  { %v2058_v57 = vsel %vm834_vm2, %v1984_v1, 0.0  ;;  %v2108_v30 = vrot.slane %v2107_v28, 4  ;;  %v2051_v49 = vsel %vm834_vm2, %v1983_v27, 0.0  ;;  %v2427_v15 = vsel %vm1007_vm8, %v2396_v31, %v2426_v34  ;;  %v2648_v34 = vld [vmem:[%s3930_s5 + $0x30] sm:$0xf] }
 0x742   :  { %v2059_v9 = vrot.slane %v2058_v57, 4  ;;  %v2035_v8 = vrot.slane %v2034_v47, 1  ;;  %v2052_v56 = vrot.slane %v2051_v49, 4  ;;  %v2042_v26 = vrot.slane %v2041_v24, 1 }
 0x743   :  { %v2428_v20 = vsel %vm1009_vm9, %v2397_v59, %v2427_v15  ;;  %v2266_v63 = vsel %vm999_vm4, %v2029_v25, %v2265_v14  ;;  %v2109_v0 = vadd.f32 %v2108_v30, %v2107_v28  ;;  %v3692_v16 = vadd.f32 %v2070_v55, %v2069_v44  ;;  %v2646_v44 = vld [vmem:[%s3930_s5 + $0x50] sm:$0xf]  ;;  %v2647_v14 = vld [vmem:[%s3930_s5 + $0x34] sm:$0xf] }
 0x744   :  { %v2060_v38 = vadd.f32 %v2059_v9, %v2058_v57  ;;  %v2053_v13 = vadd.f32 %v2052_v56, %v2051_v49  ;;  %v2454_v48 = vsel %vm1036_vm10, %v2428_v20, 0.0  ;;  %v2036_v36 = vadd.f32 %v2035_v8, %v2034_v47 }
 0x745   :  { %v3670_v54 = vpop.permute.xlu2 %1904  ;;  %2458 = vst [vmem:[#allocation8] sm:$0xff] %v2454_v48  ;;  %v2043_v11 = vadd.f32 %v2042_v26, %v2041_v24  ;;  %v2110_v35 = vrot.slane %v2109_v0, 2  ;;  %v2091_v6 = vrot.slane %v3677_v40, 1  ;;  %v2404_v57 = vperm.slane %v3642_v22, %v3982_v21 }
 0x746   :  { %v2061_v32 = vrot.slane %v2060_v38, 2  ;;  %v1994_v43 = vmul.f32 %v2643_v10, %v3670_v54  ;;  %v1870_v60 = vpop.permute.xlu0 %1869  ;;  %v1865_v3 = vpop.permute.xlu1 %1864  ;;  %v2054_v62 = vrot.slane %v2053_v13, 2  ;;  %v2267_v17 = vsel %vm1001_vm5, %v2036_v36, %v2266_v63 }
 0x747   :  { %v1987_v50 = vmul.f32 %v2644_v53, %v1870_v60  ;;  %v1986_v46 = vmul.f32 %v2645_v41, %v1865_v3  ;;  %v2400_v29 = vperm.slane %v1870_v60, %v3982_v21  ;;  %v2399_v4 = vperm.slane %v1865_v3, %v3982_v21 }
 0x748   :  { %v2128_v18 = vsel %vm834_vm2, %v1994_v43, 0.0  ;;  %v2062_v58 = vadd.f32 %v2061_v32, %v2060_v38  ;;  %v2055_v33 = vadd.f32 %v2054_v62, %v2053_v13  ;;  %v2268_v30 = vsel %vm1003_vm6, %v2043_v11, %v2267_v17  ;;  %v2650_v17 = vld [vmem:[%s3930_s5 + $0x3c] sm:$0xf] }
 0x749   :  { %v2129_v45 = vrot.slane %v2128_v18, 4  ;;  %v2079_v42 = vsel %vm834_vm2, %v1987_v50, 0.0  ;;  %v2072_v37 = vsel %vm834_vm2, %v1986_v46, 0.0  ;;  %v2429_v7 = vsel %vm997_vm3, %v2399_v4, %v2398_v39 }
 0x74a   :  { %v2080_v5 = vrot.slane %v2079_v42, 4  ;;  %v2073_v2 = vrot.slane %v2072_v37, 4  ;;  %v2063_v1 = vrot.slane %v2062_v58, 1  ;;  %v2056_v47 = vrot.slane %v2055_v33, 1 }
 0x74b   :  { %v2130_v19 = vadd.f32 %v2129_v45, %v2128_v18  ;;  %v2430_v27 = vsel %vm999_vm4, %v2400_v29, %v2429_v7  ;;  %v3714_v55 = vadd.f32 %v2110_v35, %v2109_v0  ;;  %v2269_v13 = vsel %vm1005_vm7, %v3652_v61, %v2268_v30  ;;  %v2649_v61 = vld [vmem:[%s3930_s5 + $0x5c] sm:$0xf] }
 0x74c   :  { %v2081_v28 = vadd.f32 %v2080_v5, %v2079_v42  ;;  %v2074_v24 = vadd.f32 %v2073_v2, %v2072_v37  ;;  %v2057_v31 = vadd.f32 %v2056_v47, %v2055_v33  ;;  %v2064_v56 = vadd.f32 %v2063_v1, %v2062_v58 }
 0x74d   :  { %v3696_v25 = vpop.permute.xlu2 %1919  ;;  %v2131_v12 = vrot.slane %v2130_v19, 2  ;;  %v2431_v3 = vsel %vm1001_vm5, %v2401_v23, %v2430_v27  ;;  %v3728_v53 = vadd.f32 %v2091_v6, %v3677_v40  ;;  %v2112_v40 = vrot.slane %v3714_v55, 1 }
 0x74e   :  { %v1997_v9 = vmul.f32 %v2646_v44, %v3696_v25  ;;  %v1885_v59 = vpop.permute.xlu0 %1884  ;;  %v1880_v39 = vpop.permute.xlu1 %1879  ;;  %v2082_v8 = vrot.slane %v2081_v28, 2  ;;  %v2075_v15 = vrot.slane %v2074_v24, 2  ;;  %v2270_v18 = vsel %vm1007_vm8, %v2057_v31, %v2269_v13 }
 0x74f   :  { %v1990_v52 = vmul.f32 %v2647_v14, %v1885_v59  ;;  %v1989_v49 = vmul.f32 %v2648_v34, %v1880_v39  ;;  %v2402_v43 = vperm.slane %v1880_v39, %v3982_v21  ;;  %v2132_v60 = vadd.f32 %v2131_v12, %v2130_v19 }
 0x750   :  { %v2149_v38 = vsel %vm834_vm2, %v1997_v9, 0.0  ;;  %v2083_v48 = vadd.f32 %v2082_v8, %v2081_v28  ;;  %v2403_v0 = vperm.slane %v1885_v59, %v3982_v21  ;;  %v2076_v50 = vadd.f32 %v2075_v15, %v2074_v24  ;;  %v2651_v24 = vld [vmem:[%s3930_s5 + $0x40] sm:$0xf]  ;;  %v2652_v15 = vld [vmem:[%s3930_s5 + $0x68] sm:$0xf] }
 0x751   :  { %v2100_v26 = vsel %vm834_vm2, %v1990_v52, 0.0  ;;  %v2150_v32 = vrot.slane %v2149_v38, 4  ;;  %v2093_v10 = vsel %vm834_vm2, %v1989_v49, 0.0  ;;  %v2432_v62 = vsel %vm1003_vm6, %v2402_v43, %v2431_v3  ;;  %v2653_v43 = vld [vmem:[%s3930_s5 + $0x48] sm:$0xf] }
 0x752   :  { %v2101_v20 = vrot.slane %v2100_v26, 4  ;;  %v2094_v63 = vrot.slane %v2093_v10, 4  ;;  %v2271_v41 = vsel %vm1009_vm9, %v2064_v56, %v2270_v18  ;;  %v2133_v42 = vrot.slane %v2132_v60, 1 }
 0x753   :  { %v2151_v23 = vadd.f32 %v2150_v32, %v2149_v38  ;;  %v2407_v29 = vperm.slane %v3670_v54, %v3982_v21  ;;  %2510 = vmatmul.msk.f32.vlgmr.msrb.gmra.mxu0 %vm121_vm0, %v2271_v41  ;;  %v2084_v19 = vrot.slane %v2083_v48, 1  ;;  %v2433_v5 = vsel %vm1005_vm7, %v2403_v0, %v2432_v62  ;;  %v2654_v0 = vld [vmem:[%s3930_s5 + $0x4c] sm:$0xf] }
 0x754   :  { %v2102_v36 = vadd.f32 %v2101_v20, %v2100_v26  ;;  %v2095_v58 = vadd.f32 %v2094_v63, %v2093_v10  ;;  %v2077_v7 = vrot.slane %v2076_v50, 1  ;;  %v2410_v35 = vperm.slane %v3696_v25, %v3982_v21 }
 0x755   :  { %v3731_v51 = vpop.permute.xlu2 %1934  ;;  %v2152_v47 = vrot.slane %v2151_v23, 2  ;;  %v3754_v9 = vadd.f32 %v2133_v42, %v2132_v60  ;;  %v2434_v39 = vsel %vm1007_vm8, %v2404_v57, %v2433_v5  ;;  %v3760_v27 = vadd.f32 %v2084_v19, %v2083_v48 }
 0x756   :  { %v2103_v45 = vrot.slane %v2102_v36, 2  ;;  %v2000_v46 = vmul.f32 %v2649_v61, %v3731_v51  ;;  %v1895_v11 = vpop.permute.xlu1 %1894  ;;  %v2096_v4 = vrot.slane %v2095_v58, 2  ;;  %v2078_v31 = vadd.f32 %v2077_v7, %v2076_v50 }
 0x757   :  { %v1900_v33 = vpop.permute.xlu0 %1899  ;;  %v1992_v2 = vmul.f32 %v2650_v17, %v1895_v11  ;;  %v2405_v54 = vperm.slane %v1895_v11, %v3982_v21  ;;  %v3768_v56 = vadd.f32 %v2152_v47, %v2151_v23  ;;  %v2413_v42 = vperm.slane %v3731_v51, %v3982_v21 }
 0x758   :  { %v2170_v37 = vsel %vm834_vm2, %v2000_v46, 0.0  ;;  %v2104_v28 = vadd.f32 %v2103_v45, %v2102_v36  ;;  %v1993_v44 = vmul.f32 %v2651_v24, %v1900_v33  ;;  %v2097_v59 = vadd.f32 %v2096_v4, %v2095_v58 }
 0x759   :  { %v2171_v1 = vrot.slane %v2170_v37, 4  ;;  %v2114_v6 = vsel %vm834_vm2, %v1992_v2, 0.0  ;;  %v2435_v14 = vsel %vm1009_vm9, %v2405_v54, %v2434_v39  ;;  %v2406_v30 = vperm.slane %v1900_v33, %v3982_v21 }
 0x75a   :  { %v2115_v12 = vrot.slane %v2114_v6, 4  ;;  %v2121_v52 = vsel %vm834_vm2, %v1993_v44, 0.0  ;;  %v2455_v34 = vsel %vm1036_vm10, %v2435_v14, 0.0  ;;  %v2105_v22 = vrot.slane %v2104_v28, 1  ;;  %v2655_v44 = vld [vmem:[%s3930_s5 + $0x54] sm:$0xf] }
 0x75b   :  { %v2172_v8 = vadd.f32 %v2171_v1, %v2170_v37  ;;  %2459 = vst [vmem:[#allocation8 + $0x8] sm:$0xff] %v2455_v34  ;;  %v2122_v57 = vrot.slane %v2121_v52, 4  ;;  %v2098_v20 = vrot.slane %v2097_v59, 1  ;;  %v2436_v48 = vsel %vm997_vm3, %v2407_v29, %v2406_v30  ;;  %v2657_v34 = vld [vmem:[%s3930_s5 + $0x74] sm:$0xf] }
 0x75c   :  { %v2116_v38 = vadd.f32 %v2115_v12, %v2114_v6  ;;  %v2272_v11 = vsel %vm997_vm3, %v2078_v31, %v3692_v16  ;;  %v2154_v33 = vrot.slane %v3768_v56, 1  ;;  %v2106_v19 = vadd.f32 %v2105_v22, %v2104_v28 }
 0x75d   :  { %v3766_v49 = vpop.permute.xlu2 %1949  ;;  %v2123_v13 = vadd.f32 %v2122_v57, %v2121_v52  ;;  %v2173_v50 = vrot.slane %v2172_v8, 2  ;;  %v2099_v17 = vadd.f32 %v2098_v20, %v2097_v59  ;;  %v2113_v1 = vadd.f32 %v2112_v40, %v3714_v55  ;;  %v2656_v52 = vld [vmem:[%s3930_s5 + $0x58] sm:$0xf] }
 0x75e   :  { %v2003_v26 = vmul.f32 %v2652_v15, %v3766_v49  ;;  %v1910_v32 = vpop.permute.xlu1 %1909  ;;  %v2117_v10 = vrot.slane %v2116_v38, 2  ;;  %v2273_v31 = vsel %vm999_vm4, %v3760_v27, %v2272_v11 }
 0x75f   :  { %v1995_v60 = vmul.f32 %v2653_v43, %v1910_v32  ;;  %v2408_v3 = vperm.slane %v1910_v32, %v3982_v21  ;;  %v1915_v63 = vpop.permute.xlu0 %1914  ;;  %v2124_v45 = vrot.slane %v2123_v13, 2  ;;  %v3796_v54 = vadd.f32 %v2173_v50, %v2172_v8 }
 0x760   :  { %v2191_v36 = vsel %vm834_vm2, %v2003_v26, 0.0  ;;  %v1996_v18 = vmul.f32 %v2654_v0, %v1915_v63  ;;  %v2409_v23 = vperm.slane %v1915_v63, %v3982_v21  ;;  %v2118_v29 = vadd.f32 %v2117_v10, %v2116_v38 }
 0x761   :  { %v2192_v58 = vrot.slane %v2191_v36, 4  ;;  %v2135_v62 = vsel %vm834_vm2, %v1995_v60, 0.0  ;;  %v2437_v61 = vsel %vm999_vm4, %v2408_v3, %v2436_v48  ;;  %v2125_v5 = vadd.f32 %v2124_v45, %v2123_v13 }
 0x762   :  { %v2136_v41 = vrot.slane %v2135_v62, 4  ;;  %v2142_v46 = vsel %vm834_vm2, %v1996_v18, 0.0  ;;  %v2438_v7 = vsel %vm1001_vm5, %v2409_v23, %v2437_v61  ;;  %v2119_v14 = vrot.slane %v2118_v29, 1 }
 0x763   :  { %v2143_v4 = vrot.slane %v2142_v46, 4  ;;  %v2126_v16 = vrot.slane %v2125_v5, 1  ;;  %v3798_v47 = vadd.f32 %v2192_v58, %v2191_v36  ;;  %v2439_v40 = vsel %vm1003_vm6, %v2410_v35, %v2438_v7  ;;  %v2659_v7 = vld [vmem:[%s3930_s5 + $0x64] sm:$0xf] }
 0x764   :  { %v2137_v37 = vadd.f32 %v2136_v41, %v2135_v62  ;;  %v2175_v26 = vrot.slane %v3796_v54, 1  ;;  %v2120_v10 = vadd.f32 %v2119_v14, %v2118_v29  ;;  %v2274_v63 = vsel %vm1001_vm5, %v3728_v53, %v2273_v31 }
 0x765   :  { %v2144_v2 = vadd.f32 %v2143_v4, %v2142_v46  ;;  %v3800_v6 = vpop.permute.xlu2 %1964  ;;  %v2127_v8 = vadd.f32 %v2126_v16, %v2125_v5  ;;  %v2194_v35 = vrot.slane %v3798_v47, 2  ;;  %v2275_v0 = vsel %vm1003_vm6, %v2099_v17, %v2274_v63 }
 0x766   :  { %v2138_v51 = vrot.slane %v2137_v37, 2  ;;  %v1925_v24 = vpop.permute.xlu1 %1924  ;;  %v2006_v22 = vmul.f32 %v2657_v34, %v3800_v6  ;;  %v2276_v62 = vsel %vm1005_vm7, %v2106_v19, %v2275_v0  ;;  %v2345_v19 = vld [vmem:[#allocation2 + $0x270] sm:$0xff]  ;;  %v2416_v14 = vperm.slane %v3766_v49, %v3982_v21 }
 0x767   :  { %v2145_v28 = vrot.slane %v2144_v2, 2  ;;  %v1998_v59 = vmul.f32 %v2655_v44, %v1925_v24  ;;  %v2411_v39 = vperm.slane %v1925_v24, %v3982_v21  ;;  %v1930_v12 = vpop.permute.xlu0 %1929  ;;  %v2279_v13 = vsel %vm997_vm3, %v3754_v9, %v2127_v8  ;;  %v2658_v9 = vld [vmem:[%s3930_s5 + $0x60] sm:$0xf]  ;;  %v2344_v44 = vld [vmem:[#allocation2 + $0x268] sm:$0xff] }
 0x768   :  { %v2139_v55 = vadd.f32 %v2138_v51, %v2137_v37  ;;  %v1999_v30 = vmul.f32 %v2656_v52, %v1930_v12  ;;  %v2412_v3 = vperm.slane %v1930_v12, %v3982_v21  ;;  %v2212_v36 = vsel %vm834_vm2, %v2006_v22, 0.0  ;;  %v2346_v37 = vld [vmem:[#allocation2 + $0x278] sm:$0xff] }
 0x769   :  { %v2146_v38 = vadd.f32 %v2145_v28, %v2144_v2  ;;  %v2156_v25 = vsel %vm834_vm2, %v1998_v59, 0.0  ;;  %v2440_v20 = vsel %vm1005_vm7, %v2411_v39, %v2439_v40  ;;  %v2277_v53 = vsel %vm1007_vm8, %v2113_v1, %v2276_v62  ;;  %2347 = vmatpush.msrb.mxu2 %v2346_v37  ;;  %2514 = vmatpush.msra.mxu3 %v2346_v37  ;;  %v2340_v62 = vld [vmem:[#allocation2 + $0x248] sm:$0xff] }
 0x76a   :  { %v2140_v57 = vrot.slane %v2139_v55, 1  ;;  %v2157_v15 = vrot.slane %v2156_v25, 4  ;;  %v2163_v27 = vsel %vm834_vm2, %v1999_v30, 0.0  ;;  %v2441_v58 = vsel %vm1007_vm8, %v2412_v3, %v2440_v20  ;;  %v2343_v30 = vld [vmem:[#allocation2 + $0x260] sm:$0xff]  ;;  %v2341_v3 = vld [vmem:[#allocation2 + $0x250] sm:$0xff] }
 0x76b   :  { %v2147_v32 = vrot.slane %v2146_v38, 1  ;;  %v2164_v60 = vrot.slane %v2163_v27, 4  ;;  %v2442_v41 = vsel %vm1009_vm9, %v2413_v42, %v2441_v58  ;;  %v2278_v5 = vsel %vm1009_vm9, %v2120_v10, %v2277_v53  ;;  %2348 = vmatpush.msrb.mxu2 %v2345_v19  ;;  %2515 = vmatpush.msra.mxu3 %v2345_v19 }
 0x76c   :  { %v2158_v43 = vadd.f32 %v2157_v15, %v2156_v25  ;;  %v2141_v48 = vadd.f32 %v2140_v57, %v2139_v55  ;;  %v2456_v4 = vsel %vm1036_vm10, %v2442_v41, 0.0  ;;  %v2213_v17 = vrot.slane %v2212_v36, 4  ;;  %2511 = vmatmul.msk.f32.gmra.mxu0 %vm121_vm0, %v2278_v5  ;;  %v2342_v57 = vld [vmem:[#allocation2 + $0x258] sm:$0xff] }
 0x76d   :  { %v2165_v50 = vadd.f32 %v2164_v60, %v2163_v27  ;;  %v2148_v45 = vadd.f32 %v2147_v32, %v2146_v38  ;;  %2460 = vst [vmem:[#allocation8 + $0x10] sm:$0xff] %v2456_v4  ;;  %v2155_v59 = vadd.f32 %v2154_v33, %v3768_v56  ;;  %v3855_v31 = vadd.f32 %v2194_v35, %v3798_v47  ;;  %v2660_v35 = vld [vmem:[%s3930_s5 + $0x6c] sm:$0xf] }
 0x76e   :  { %v2159_v18 = vrot.slane %v2158_v43, 2  ;;  %v1940_v23 = vpop.permute.xlu1 %1939  ;;  %v2280_v12 = vsel %vm999_vm4, %v2141_v48, %v2279_v13  ;;  %2349 = vmatpush.msrb.mxu2 %v2344_v44  ;;  %v3859_v33 = vadd.f32 %v2213_v17, %v2212_v36  ;;  %v2176_v49 = vadd.f32 %v2175_v26, %v3796_v54  ;;  %2516 = vmatpush.msra.mxu3 %v2344_v44  ;;  %v2661_v54 = vld [vmem:[%s3930_s5 + $0x70] sm:$0xf] }
 0x76f   :  { %v2001_v61 = vmul.f32 %v2658_v9, %v1940_v23  ;;  %v1945_v46 = vpop.permute.xlu0 %1944  ;;  %v2166_v29 = vrot.slane %v2165_v50, 2  ;;  %v2414_v2 = vperm.slane %v1940_v23, %v3982_v21  ;;  %v2281_v56 = vsel %vm1001_vm5, %v2148_v45, %v2280_v12  ;;  %v2337_v12 = vld [vmem:[#allocation2 + $0x230] sm:$0xff] }
 0x770   :  { %v2160_v11 = vadd.f32 %v2159_v18, %v2158_v43  ;;  %v2002_v1 = vmul.f32 %v2659_v7, %v1945_v46  ;;  %v2415_v28 = vperm.slane %v1945_v46, %v3982_v21  ;;  %2350 = vmatpush.msrb.mxu2 %v2343_v30  ;;  %v2282_v60 = vsel %vm1003_vm6, %v2155_v59, %v2281_v56 }
 0x771   :  { %v2177_v42 = vsel %vm834_vm2, %v2001_v61, 0.0  ;;  %v2167_v51 = vadd.f32 %v2166_v29, %v2165_v50  ;;  %2517 = vmatpush.msra.mxu3 %v2343_v30  ;;  %v2339_v61 = vld [vmem:[#allocation2 + $0x240] sm:$0xff]  ;;  %v2215_v46 = vrot.slane %v3859_v33, 2  ;;  %v2196_v4 = vrot.slane %v3855_v31, 1 }
 0x772   :  { %v2161_v16 = vrot.slane %v2160_v11, 1  ;;  %v2178_v24 = vrot.slane %v2177_v42, 4  ;;  %v2184_v39 = vsel %vm834_vm2, %v2002_v1, 0.0  ;;  %v2443_v38 = vsel %vm997_vm3, %v2415_v28, %v2414_v2  ;;  %2351 = vmatpush.msrb.mxu2 %v2342_v57  ;;  %v2662_v1 = vld [vmem:[%s3930_s5 + $0x78] sm:$0xf] }
 0x773   :  { %v2168_v55 = vrot.slane %v2167_v51, 1  ;;  %v2185_v52 = vrot.slane %v2184_v39, 4  ;;  %v2444_v47 = vsel %vm999_vm4, %v2416_v14, %v2443_v38  ;;  %2518 = vmatpush.msra.mxu3 %v2342_v57  ;;  %v2419_v5 = vperm.slane %v3800_v6, %v3982_v21  ;;  %v2663_v6 = vld [vmem:[%s3930_s5 + $0x7c] sm:$0xf]  ;;  %s2775_s5 = smov [#allocation8]  }
 0x774   :  { %v2179_v40 = vadd.f32 %v2178_v24, %v2177_v42  ;;  %v2162_v8 = vadd.f32 %v2161_v16, %v2160_v11  ;;  %2352 = vmatpush.msrb.mxu2 %v2341_v3  ;;  %v2338_v42 = vld [vmem:[#allocation2 + $0x238] sm:$0xff]  ;;  %v2216_v14 = vadd.f32 %v2215_v46, %v3859_v33  ;;  %s2479_s0 = sshll.u32 %s2775_s5, 4  ;;  %v2551_v46 = vld [vmem:[%s3934_s9 + $0x6] ss:$0 sm:$0xff]  ;;  %s2776_s9 = smov [#allocation7]   ;;  %s2480_s0 = int_to_ptr.vmem [resolvable:$true] %s2479_s0 }
 0x775   :  { %v2186_v22 = vadd.f32 %v2185_v52, %v2184_v39  ;;  %v2169_v27 = vadd.f32 %v2168_v55, %v2167_v51  ;;  %2519 = vmatpush.msra.mxu3 %v2341_v3  ;;  %s2466_s11 = sshll.u32 %s2776_s9, 4  ;;  %s2467_s11 = int_to_ptr.vmem [resolvable:$true] %s2466_s11 }
 0x776   :  { %v2180_v34 = vrot.slane %v2179_v40, 2  ;;  %v1955_v25 = vpop.permute.xlu1 %1954  ;;  %v2283_v36 = vsel %vm1005_vm7, %v2162_v8, %v2282_v60  ;;  %2353 = vmatpush.msrb.mxu2 %v2340_v62 }
 0x777   :  { %v2004_v15 = vmul.f32 %v2660_v35, %v1955_v25  ;;  %v2417_v32 = vperm.slane %v1955_v25, %v3982_v21  ;;  %v1960_v20 = vpop.permute.xlu0 %1959  ;;  %v2187_v43 = vrot.slane %v2186_v22, 2  ;;  %v2284_v45 = vsel %vm1007_vm8, %v2169_v27, %v2283_v36  ;;  %2520 = vmatpush.msra.mxu3 %v2340_v62  ;;  %v2335_v35 = vld [vmem:[#allocation2 + $0x220] sm:$0xff] }
 0x778   :  { %v2181_v10 = vadd.f32 %v2180_v34, %v2179_v40  ;;  %v2005_v26 = vmul.f32 %v2661_v54, %v1960_v20  ;;  %v2418_v48 = vperm.slane %v1960_v20, %v3982_v21  ;;  %v2285_v9 = vsel %vm1009_vm9, %v2176_v49, %v2284_v45  ;;  %2354 = vmatpush.msrb.mxu2 %v2339_v61  ;;  %v2336_v34 = vld [vmem:[#allocation2 + $0x228] sm:$0xff]  ;;  %v2331_v45 = vld [vmem:[#allocation2 + $0x200] sm:$0xff] }
 0x779   :  { %v2198_v63 = vsel %vm834_vm2, %v2004_v15, 0.0  ;;  %v2445_v13 = vsel %vm1001_vm5, %v2417_v32, %v2444_v47  ;;  %v2188_v18 = vadd.f32 %v2187_v43, %v2186_v22  ;;  %2512 = vmatmul.msk.f32.gmra.mxu0 %vm121_vm0, %v2285_v9  ;;  %2521 = vmatpush.msra.mxu3 %v2339_v61  ;;  %v2197_v49 = vadd.f32 %v2196_v4, %v3855_v31  ;;  %v2333_v31 = vld [vmem:[#allocation2 + $0x210] sm:$0xff] }
 0x77a   :  { %v2182_v0 = vrot.slane %v2181_v10, 1  ;;  %v2199_v50 = vrot.slane %v2198_v63, 4  ;;  %v2205_v58 = vsel %vm834_vm2, %v2005_v26, 0.0  ;;  %v2446_v29 = vsel %vm1003_vm6, %v2418_v48, %v2445_v13  ;;  %2355 = vmatpush.msrb.mxu2 %v2338_v42  ;;  %v2332_v48 = vld [vmem:[#allocation2 + $0x208] sm:$0xff] }
 0x77b   :  { %v2206_v23 = vrot.slane %v2205_v58, 4  ;;  %v2189_v41 = vrot.slane %v2188_v18, 1  ;;  %v2447_v44 = vsel %vm1005_vm7, %v2419_v5, %v2446_v29  ;;  %2522 = vmatpush.msra.mxu3 %v2338_v42  ;;  %v2217_v43 = vrot.slane %v2216_v14, 1 }
 0x77c   :  { %v2200_v53 = vadd.f32 %v2199_v50, %v2198_v63  ;;  %v2183_v37 = vadd.f32 %v2182_v0, %v2181_v10  ;;  %2356 = vmatpush.msrb.mxu2 %v2337_v12  ;;  %v2334_v10 = vld [vmem:[#allocation2 + $0x218] sm:$0xff] }
 0x77d   :  { %v2207_v11 = vadd.f32 %v2206_v23, %v2205_v58  ;;  %v2190_v2 = vadd.f32 %v2189_v41, %v2188_v18  ;;  %2523 = vmatpush.msra.mxu3 %v2337_v12  ;;  %v2218_v36 = vadd.f32 %v2217_v43, %v2216_v14 }
 0x77e   :  { %v2201_v19 = vrot.slane %v2200_v53, 2  ;;  %v1970_v17 = vpop.permute.xlu1 %1969  ;;  %2357 = vmatpush.msrb.mxu2 %v2336_v34 }
 0x77f   :  { %v2208_v7 = vrot.slane %v2207_v11, 2  ;;  %v2007_v16 = vmul.f32 %v2662_v1, %v1970_v17  ;;  %v2420_v51 = vperm.slane %v1970_v17, %v3982_v21  ;;  %v1975_v24 = vpop.permute.xlu0 %1974  ;;  %2524 = vmatpush.msra.mxu3 %v2336_v34 }
 0x780   :  { %v2202_v28 = vadd.f32 %v2201_v19, %v2200_v53  ;;  %v2008_v59 = vmul.f32 %v2663_v6, %v1975_v24  ;;  %v2421_v39 = vperm.slane %v1975_v24, %v3982_v21  ;;  %v2286_v21 = vsel %vm997_vm3, %v2190_v2, %v2183_v37  ;;  %2358 = vmatpush.msrb.mxu2 %v2335_v35 }
 0x781   :  { %v2209_v55 = vadd.f32 %v2208_v7, %v2207_v11  ;;  %v2219_v40 = vsel %vm834_vm2, %v2007_v16, 0.0  ;;  %v2448_v52 = vsel %vm1007_vm8, %v2420_v51, %v2447_v44  ;;  %v2287_v27 = vsel %vm999_vm4, %v2197_v49, %v2286_v21  ;;  %2525 = vmatpush.msra.mxu3 %v2335_v35  ;;  %v629_v11 = vpop.f32.mrf.mxu1 }
 0x782   :  { %v2203_v30 = vrot.slane %v2202_v28, 1  ;;  %v2220_v8 = vrot.slane %v2219_v40, 4  ;;  %v2226_v38 = vsel %vm834_vm2, %v2008_v59, 0.0  ;;  %v2449_v56 = vsel %vm1009_vm9, %v2421_v39, %v2448_v52  ;;  %2359 = vmatpush.msrb.mxu2 %v2334_v10 }
 0x783   :  { %v2210_v22 = vrot.slane %v2209_v55, 1  ;;  %v2227_v25 = vrot.slane %v2226_v38, 4  ;;  %v2457_v33 = vsel %vm1036_vm10, %v2449_v56, 0.0  ;;  %2526 = vmatpush.msra.mxu3 %v2334_v10 }
 0x784   :  { %v2204_v57 = vadd.f32 %v2203_v30, %v2202_v28  ;;  %v2221_v47 = vadd.f32 %v2220_v8, %v2219_v40  ;;  %2461 = vst [vmem:[#allocation8 + $0x18] sm:$0xff] %v2457_v33  ;;  %2360 = vmatpush.msrb.mxu2 %v2333_v31 }
 0x785   :  { %v2228_v15 = vadd.f32 %v2227_v25, %v2226_v38  ;;  %v2211_v32 = vadd.f32 %v2210_v22, %v2209_v55  ;;  %2527 = vmatpush.msra.mxu3 %v2333_v31  ;;  %2487 = dma.vmem_to_hbm [thread:$0]  %s2480_s0, 512, %s2482_s12, [#allocation9], %s2769_s25, %s2769_s25, %s2770_s26  }
 0x786   :  { %v2222_v20 = vrot.slane %v2221_v47, 2  ;;  %v2288_v26 = vsel %vm1001_vm5, %v2204_v57, %v2287_v27  ;;  %2361 = vmatpush.msrb.mxu2 %v2332_v48 }
 0x787   :  { %v2229_v54 = vrot.slane %v2228_v15, 2  ;;  %v2289_v13 = vsel %vm1003_vm6, %v2211_v32, %v2288_v26  ;;  %2528 = vmatpush.msra.mxu3 %v2332_v48 }
 0x788   :  { %v2223_v60 = vadd.f32 %v2222_v20, %v2221_v47  ;;  %v2290_v58 = vsel %vm1005_vm7, %v2218_v36, %v2289_v13  ;;  %2362 = vmatpush.msrb.mxu2 %v2331_v45 }
 0x789   :  { %v2230_v3 = vadd.f32 %v2229_v54, %v2228_v15  ;;  %2529 = vmatpush.msra.mxu3 %v2331_v45  ;;  %v632_v19 = vpop.f32.mrf.mxu1 }
 0x78a   :  { %v2224_v63 = vrot.slane %v2223_v60, 1 }
 0x78b   :  { %v2231_v0 = vrot.slane %v2230_v3, 1 }
 0x78c   :  { %v2225_v18 = vadd.f32 %v2224_v63, %v2223_v60 }
 0x78d   :  { %v2232_v50 = vadd.f32 %v2231_v0, %v2230_v3 }
 0x78e   :  { %v2291_v62 = vsel %vm1007_vm8, %v2225_v18, %v2290_v58 }
 0x78f   :  { %v2292_v23 = vsel %vm1009_vm9, %v2232_v50, %v2291_v62 }
 0x790   :  { %2513 = vmatmul.msk.f32.gmra.mxu0 %vm121_vm0, %v2292_v23 }
 0x791   :  { %v635_v1 = vpop.f32.mrf.mxu1 }
 0x799   :  { %v638_v44 = vpop.f32.mrf.mxu1 }
 0x7d0   :  { %v2318_v41 = vpop.f32.mrf.mxu0 }
 0x7d1   :  { %2363 = vmatmul.f32.vlgmr.msrb.gmra.mxu2 %v2318_v41 }
 0x7e9   :  { %v2321_v53 = vpop.f32.mrf.mxu0 }
 0x7ea   :  { %2366 = vmatmul.f32.vlgmr.msra.gmra.mxu3 %v2321_v53 }
 0x7f6   :  { %v2324_v9 = vpop.f32.mrf.mxu0 }
 0x7f7   :  { %2369 = vmatmul.f32.gmra.mxu3 %v2324_v9 }
 0x80d   :  { %v2327_v61 = vpop.f32.mrf.mxu0 }
 0x80e   :  { %2372 = vmatmul.f32.gmra.mxu3 %v2327_v61 }
 0x854   :  { %v2364_v29 = vpop.f32.mrf.mxu2 }
 0x855   :  { %v2365_v4 = vadd.f32 %v2364_v29, %v629_v11 }
 0x857   :  { %v2378_v5 = vadd.f32 %v2551_v46, %v2365_v4 }
 0x859   :  { %2624 = vtanh.f32 %v2378_v5 }
 0x85f   :  { %v2625_v37 = vpop.eup %2624 }
 0x860   :  { %2386 = vst [vmem:[#allocation7] sm:$0xff] %v2625_v37 }
 0x86d   :  { %v2367_v17 = vpop.f32.mrf.mxu3 }
 0x86e   :  { %v2368_v42 = vadd.f32 %v2367_v17, %v632_v19 }
 0x870   :  { %v2379_v2 = vadd.f32 %v2551_v46, %v2368_v42 }
 0x872   :  { %2626 = vtanh.f32 %v2379_v2 }
 0x878   :  { %v2627_v7 = vpop.eup %2626 }
 0x879   :  { %2387 = vst [vmem:[#allocation7 + $0x8] sm:$0xff] %v2627_v7 }
 0x87a   :  { %v2370_v16 = vpop.f32.mrf.mxu3 }
 0x87b   :  { %v2371_v51 = vadd.f32 %v2370_v16, %v635_v1 }
 0x87d   :  { %v2380_v24 = vadd.f32 %v2551_v46, %v2371_v51 }
 0x87f   :  { %2628 = vtanh.f32 %v2380_v24 }
 0x885   :  { %v2629_v28 = vpop.eup %2628 }
 0x886   :  { %2388 = vst [vmem:[#allocation7 + $0x10] sm:$0xff] %v2629_v28 }
 0x891   :  { %v2373_v6 = vpop.f32.mrf.mxu3 }
 0x892   :  { %v2374_v59 = vadd.f32 %v2373_v6, %v638_v44 }
 0x894   :  { %v2381_v39 = vadd.f32 %v2551_v46, %v2374_v59 }
 0x896   :  { %2630 = vtanh.f32 %v2381_v39 }
 0x89c   :  { %v2631_v12 = vpop.eup %2630 }
 0x89d   :  { %2389 = vst [vmem:[#allocation7 + $0x18] sm:$0xff] %v2631_v12 }
 0x89e   :  { %2474 = dma.vmem_to_hbm [thread:$0]  %s2467_s11, 512, %s2469_s3, [#allocation4], %s2769_s25, %s2769_s25, %s2770_s26  }
 0x89f   :  { %2764 = dma.done.wait [#allocation4], 512  }
 0x8a0   :  { %2765 = vsyncadd [#allocation4], 4294966784 }
 0x8a1   :  { %2766 = dma.done.wait [#allocation9], 512  }
 0x8a2   :  { %2767 = vsyncadd [#allocation9], 4294966784 }
 0x8a3   :  { %2496 = vsyncpa [#allocation3], 1 }
 0x8a4   :  { %2497 = vsyncpa [#allocation6], 1 }
 0x8a5   :  { %2498 = vsyncpa [#allocation4], 1 }
 0x8a6   :  { %2499 = vsyncpa [#allocation9], 1 }

</bundles_post_ra>
